<compile_context>
chip_gen: v7x
topology: tpu7x:2x2x1
jax: 0.10.0
libtpu: 0.0.40
codegen_flags: <defaults>
</compile_context>

<pallas_src>
import functools
from typing import List

import jax
import jax.numpy as jnp
import numpy as np
from jax.experimental import pallas as pl
from jax.experimental.pallas import tpu as pltpu


# ----------------------------------------------------------------------------
# Fused block kernel: conv1(+bias+PReLU) -> VMEM bf16 intermediate -> conv2(+bias+PReLU)
# ----------------------------------------------------------------------------
def _backbone_block_kernel(x_ref, w1_ref, b1_ref, a1_ref, m1_ref,
                           w2_ref, b2_ref, a2_ref, o_ref, h_ref,
                           *, taps1, win1, p1out, win2, p2out):
    """One batch image per grid step.

    x_ref : (PP1, Cin)       bf16  flattened zero-padded conv1 input (row stride win1)
    w1_ref: (T1, Cmid, Cin)  bf16  per-tap conv1 weights
    b1_ref: (Cmid, 1) f32    a1_ref: (Cmid, 1) f32   (PReLU alpha)
    m1_ref: (1, P1OUT) f32   column-validity mask (zeroes wrap-around garbage cols)
    w2_ref: (9, Cout, Cmid)  bf16  per-tap conv2 weights
    b2_ref: (Cout, 1) f32    a2_ref: (Cout, 1) f32
    o_ref : (Cout, P2OUT) f32  lane-dense output (reshapes to NCHW outside)
    h_ref : (PP2, Cmid) bf16 VMEM scratch = conv2's "same"-padded input
    """
    cmid = h_ref.shape[1]

    # ---- conv1: sum of per-tap GEMMs, one consecutive f32 accumulation chain.
    acc1 = jnp.zeros((cmid, p1out), jnp.float32)
    for t, (kh, kw) in enumerate(taps1):
        off = kh * win1 + kw                       # static python int
        xs = x_ref[pl.ds(off, p1out), :]           # (P1OUT, Cin) sublane-offset view
        acc1 = acc1 + jax.lax.dot_general(
            w1_ref[t], xs,
            dimension_numbers=(((1,), (1,)), ((), ())),   # contract Cin
            preferred_element_type=jnp.float32)
    acc1 = acc1 + b1_ref[...]
    y1 = jnp.where(acc1 > 0, acc1, a1_ref[...] * acc1)    # PReLU (f32)
    y1 = y1 * m1_ref[...]                                  # zero wrapped garbage columns

    # ---- hand-off: conv2's zero-padded input lives only in VMEM, as bf16.
    # conv1's flattened output shifted by (win2 + 1) lands exactly on conv2's
    # padded grid (garbage columns -> pad positions, already zeroed above).
    h_ref[...] = jnp.zeros(h_ref.shape, h_ref.dtype)
    h_ref[pl.ds(win2 + 1, p1out), :] = y1.T.astype(h_ref.dtype)

    # ---- conv2: same per-tap GEMM pattern, lane-dense (Cout, P2OUT) accumulator.
    acc2 = jnp.zeros(o_ref.shape, jnp.float32)
    for t in range(9):
        kh, kw = divmod(t, 3)
        off = kh * win2 + kw
        hs = h_ref[pl.ds(off, p2out), :]           # (P2OUT, Cmid)
        acc2 = acc2 + jax.lax.dot_general(
            w2_ref[t], hs,
            dimension_numbers=(((1,), (1,)), ((), ())),
            preferred_element_type=jnp.float32)
    acc2 = acc2 + b2_ref[...]
    o_ref[...] = jnp.where(acc2 > 0, acc2, a2_ref[...] * acc2)


# ----------------------------------------------------------------------------
# Wrapper pieces
# ----------------------------------------------------------------------------
def _prep_conv1_input(x_nchw_bf16, s2d):
    """Flattened zero-padded conv1 operand, (N, PP1, Cin_eff) bf16.

    The flattened row stride is win1 = (conv1 output width + 2) so conv1's
    output aligns with conv2's padded input by a constant offset (see kernel).
    stride-2 convs are rewritten as space-to-depth + 2x2 stride-1 convs.
    """
    N, C, H, W = x_nchw_bf16.shape
    xh = jnp.transpose(x_nchw_bf16, (0, 2, 3, 1))          # small bf16 relayout, fused with pads
    if not s2d:
        ho, wo, kh1, kw1 = H, W, 3, 3
        win1 = wo + 2
        xh = jnp.pad(xh, ((0, 0), (1, 2), (1, 1), (0, 0)))  # rows: ho + kh1
        xin = xh.reshape(N, (ho + kh1) * win1, C)
        cin_eff = C
    else:
        ho, wo, kh1, kw1 = (H - 1) // 2 + 1, (W - 1) // 2 + 1, 2, 2
        Hp, Wp = H + 2, W + 2
        xh = jnp.pad(xh, ((0, 0), (1, 1 + Hp % 2), (1, 1 + Wp % 2), (0, 0)))
        hs, ws = (Hp + Hp % 2) // 2, (Wp + Wp % 2) // 2
        # space-to-depth: 3x3 stride-2 conv == 2x2 stride-1 conv over 4*C channels
        xh = (xh.reshape(N, hs, 2, ws, 2, C)
                .transpose(0, 1, 3, 2, 4, 5)
                .reshape(N, hs, ws, 4 * C))
        win1 = wo + 2
        xh = jnp.pad(xh, ((0, 0), (0, ho + kh1 - hs), (0, win1 - ws), (0, 0)))
        xin = xh.reshape(N, (ho + kh1) * win1, 4 * C)
        cin_eff = 4 * C
    geom = dict(ho1=ho, wo1=wo, win1=win1, kh1=kh1, kw1=kw1, cin_eff=cin_eff)
    return xin, geom


def _run_block(xin, pk, g):
    """One fused pallas_call for a whole BackboneBlock. Returns NCHW f32."""
    N, pp1, cin_eff = xin.shape
    t1 = pk["w1"].shape[0]
    cout = pk["w2"].shape[1]
    ho1, wo1, win1 = g["ho1"], g["wo1"], g["win1"]
    taps1 = tuple((i, j) for i in range(g["kh1"]) for j in range(g["kw1"]))
    p1out = ho1 * win1
    win2 = wo1 + 2                       # == win1 by construction (constant-shift hand-off)
    p2out = ho1 * win2
    pp2 = (ho1 + 3) * win2
    mask = ((np.arange(p1out) % win1) < wo1).astype(np.float32)[None, :]

    kern = functools.partial(_backbone_block_kernel, taps1=taps1, win1=win1,
                             p1out=p1out, win2=win2, p2out=p2out)
    out = pl.pallas_call(
        kern,
        out_shape=jax.ShapeDtypeStruct((N, cout, p2out), jnp.float32),
        grid=(N,),
        in_specs=[
            pl.BlockSpec((None, pp1, cin_eff), lambda n: (n, 0, 0)),
            pl.BlockSpec((t1, cout, cin_eff), lambda n: (0, 0, 0)),
            pl.BlockSpec((cout, 1), lambda n: (0, 0)),
            pl.BlockSpec((cout, 1), lambda n: (0, 0)),
            pl.BlockSpec((1, p1out), lambda n: (0, 0)),
            pl.BlockSpec((9, cout, cout), lambda n: (0, 0, 0)),
            pl.BlockSpec((cout, 1), lambda n: (0, 0)),
            pl.BlockSpec((cout, 1), lambda n: (0, 0)),
        ],
        out_specs=pl.BlockSpec((None, cout, p2out), lambda n: (n, 0, 0)),
        scratch_shapes=[pltpu.VMEM((pp2, cout), jnp.bfloat16)],
        compiler_params=pltpu.CompilerParams(
            dimension_semantics=("parallel",)),
    )(xin, pk["w1"], pk["b1"], pk["a1"], jnp.asarray(mask),
      pk["w2"], pk["b2"], pk["a2"])

    # (N, Cout, Ho*Win2) -> NCHW: reshape + static slice only, no transpose.
    return out.reshape(N, cout, ho1, win2)[:, :, :, :wo1]


# ----------------------------------------------------------------------------
# Parameters
# ----------------------------------------------------------------------------
def init_backbone_params(hidden_channels: List[int], key):
    """Raw (PyTorch-like) params: HWIO conv weights, bias, shared PReLU alpha=0.25."""
    params = []
    for cin, cout in zip(hidden_channels[:-1], hidden_channels[1:]):
        key, k1, k2, k3, k4 = jax.random.split(key, 5)
        stride = 1 if cin == 3 else 2
        params.append(dict(
            stride=stride,
            w1=jax.random.normal(k1, (3, 3, cin, cout), jnp.float32) * 0.1,
            b1=jax.random.normal(k2, (cout,), jnp.float32) * 0.01,
            a1=jnp.float32(0.25),
            w2=jax.random.normal(k3, (3, 3, cout, cout), jnp.float32) * 0.1,
            b2=jax.random.normal(k4, (cout,), jnp.float32) * 0.01,
            a2=jnp.float32(0.25),
        ))
    return params


def pack_backbone_params(params):
    """Hoist all weight/bias/alpha preprocessing out of the per-forward path."""
    packed = []
    for p in params:
        cin, cout = p["w1"].shape[2], p["w1"].shape[3]
        if p["stride"] == 1:
            w1 = jnp.transpose(p["w1"], (0, 1, 3, 2)).reshape(9, cout, cin)
        else:
            # stride-2 3x3 -> 2x2 stride-1 conv over space-to-depth'd 4*cin channels
            w = jnp.zeros((2, 2, 2, 2, cin, cout), p["w1"].dtype)
            for kh in range(3):
                for kw in range(3):
                    w = w.at[kh // 2, kw // 2, kh % 2, kw % 2].set(p["w1"][kh, kw])
            w1 = (w.reshape(2, 2, 4 * cin, cout)
                   .transpose(0, 1, 3, 2)
                   .reshape(4, cout, 4 * cin))
        packed.append(dict(
            w1=w1.astype(jnp.bfloat16),
            b1=p["b1"].reshape(cout, 1).astype(jnp.float32),
            a1=jnp.broadcast_to(jnp.asarray(p["a1"], jnp.float32).reshape(-1, 1), (cout, 1)),
            w2=jnp.transpose(p["w2"], (0, 1, 3, 2)).reshape(9, cout, cout).astype(jnp.bfloat16),
            b2=p["b2"].reshape(cout, 1).astype(jnp.float32),
            a2=jnp.broadcast_to(jnp.asarray(p["a2"], jnp.float32).reshape(-1, 1), (cout, 1)),
        ))
    return packed


# ----------------------------------------------------------------------------
# Forward (matches Backbone.forward: returns list of per-block NCHW features)
# ----------------------------------------------------------------------------
@jax.jit
def backbone_forward(packed_params, x_nchw):
    feats = []
    cur = x_nchw
    for pk in packed_params:
        s2d = pk["w1"].shape[0] == 4           # 4 taps <=> stride-2 conv1 (space-to-depth)
        xin, geom = _prep_conv1_input(cur.astype(jnp.bfloat16), s2d)
        feat = _run_block(xin, pk, geom)       # one fused pallas_call per block
        feats.append(feat)
        cur = feat
    return feats


# ----------------------------------------------------------------------------
# Pure-JAX reference (lax conv, same bf16 operand rounding points)
# ----------------------------------------------------------------------------
def _ref_conv_prelu(x_nhwc, w_hwio, bias, alpha, stride):
    y = jax.lax.conv_general_dilated(
        x_nhwc.astype(jnp.bfloat16), w_hwio.astype(jnp.bfloat16),
        window_strides=(stride, stride), padding=[(1, 1), (1, 1)],
        dimension_numbers=("NHWC", "HWIO", "NHWC"),
        preferred_element_type=jnp.float32)
    y = y + bias.reshape(1, 1, 1, -1)
    return jnp.where(y > 0, y, alpha * y)


def _ref_backbone(params, x_nchw):
    x = jnp.transpose(x_nchw, (0, 2, 3, 1))
    feats = []
    for p in params:
        x = _ref_conv_prelu(x, p["w1"], p["b1"], p["a1"], p["stride"])
        x = _ref_conv_prelu(x, p["w2"], p["b2"], p["a2"], 1)
        feats.append(jnp.transpose(x, (0, 3, 1, 2)))
    return feats


if __name__ == "__main__":
    key = jax.random.PRNGKey(0)
    k_x, k_p = jax.random.split(key)

    hidden_channels = [3, 8, 16]                 # block1: stride 1 (cin==3), block2: stride 2
    x = jax.random.normal(k_x, (2, 3, 16, 16), jnp.float32)   # NCHW, like PyTorch
    raw_params = init_backbone_params(hidden_channels, k_p)
    packed = pack_backbone_params(raw_params)    # done once, outside the forward pass

    feats = backbone_forward(packed, x)
    feats = [jax.block_until_ready(f) for f in feats]

    assert feats[0].shape == (2, 8, 16, 16), feats[0].shape
    assert feats[1].shape == (2, 16, 8, 8), feats[1].shape

    ref_feats = _ref_backbone(raw_params, x)
    # bf16-level tolerance: kernel and reference round the (identical-valued)
    # intermediates to bf16 at the same points, but f32 accumulation-order
    # differences can occasionally flip a bf16 rounding, giving ~1e-3 abs diffs.
    for f, r in zip(feats, ref_feats):
        np.testing.assert_allclose(np.asarray(f), np.asarray(r), rtol=3e-3, atol=3e-3)

    print("KERNEL_OK")
</pallas_src>

<mosaic_0001>
module attributes {stable_mosaic.version = 11 : i64} {
  func.func @_backbone_block_kernel(%arg0: i32, %arg1: memref<1x342x3xbf16, #tpu.memory_space<vmem>>, %arg2: memref<9x8x3xbf16, #tpu.memory_space<vmem>>, %arg3: memref<8x1xf32, #tpu.memory_space<vmem>>, %arg4: memref<8x1xf32, #tpu.memory_space<vmem>>, %arg5: memref<1x288xf32, #tpu.memory_space<vmem>>, %arg6: memref<9x8x8xbf16, #tpu.memory_space<vmem>>, %arg7: memref<8x1xf32, #tpu.memory_space<vmem>>, %arg8: memref<8x1xf32, #tpu.memory_space<vmem>>, %arg9: memref<1x8x288xf32, #tpu.memory_space<vmem>>, %arg10: memref<342x8xbf16, #tpu.memory_space<vmem>>) attributes {dimension_semantics = [#tpu.dimension_semantics<parallel>], iteration_bounds = array<i64: 2>, scalar_prefetch = 0 : i64, scratch_operands = 1 : i64, tpu.core_type = #tpu.core_type<tc>, window_params = [{transform_indices = @transform_0, window_bounds = array<i64: 1, 342, 3>}, {pipeline_mode = #tpu.pipeline_mode<synchronous>, transform_indices = @transform_1, window_bounds = array<i64: 9, 8, 3>}, {pipeline_mode = #tpu.pipeline_mode<synchronous>, transform_indices = @transform_2, window_bounds = array<i64: 8, 1>}, {pipeline_mode = #tpu.pipeline_mode<synchronous>, transform_indices = @transform_3, window_bounds = array<i64: 8, 1>}, {pipeline_mode = #tpu.pipeline_mode<synchronous>, transform_indices = @transform_4, window_bounds = array<i64: 1, 288>}, {pipeline_mode = #tpu.pipeline_mode<synchronous>, transform_indices = @transform_5, window_bounds = array<i64: 9, 8, 8>}, {pipeline_mode = #tpu.pipeline_mode<synchronous>, transform_indices = @transform_6, window_bounds = array<i64: 8, 1>}, {pipeline_mode = #tpu.pipeline_mode<synchronous>, transform_indices = @transform_7, window_bounds = array<i64: 8, 1>}, {transform_indices = @transform_8, window_bounds = array<i64: 1, 8, 288>}]} {
    %cst = arith.constant 0.000000e+00 : f32
    %0 = vector.broadcast %cst : f32 to vector<8x288xf32>
    %c0 = arith.constant 0 : index
    %c0_0 = arith.constant 0 : index
    %c0_1 = arith.constant 0 : index
    %1 = vector.load %arg1[%c0, %c0_0, %c0_1] : memref<1x342x3xbf16, #tpu.memory_space<vmem>>, vector<1x288x3xbf16>
    %2 = vector.shape_cast %1 : vector<1x288x3xbf16> to vector<288x3xbf16>
    %c0_2 = arith.constant 0 : index
    %c0_3 = arith.constant 0 : index
    %c0_4 = arith.constant 0 : index
    %3 = vector.load %arg2[%c0_2, %c0_3, %c0_4] : memref<9x8x3xbf16, #tpu.memory_space<vmem>>, vector<1x8x3xbf16>
    %4 = vector.shape_cast %3 : vector<1x8x3xbf16> to vector<8x3xbf16>
    %cst_5 = arith.constant dense<0.000000e+00> : vector<8x288xf32>
    %5 = tpu.matmul %4, %2, %cst_5 {dimension_numbers = #tpu.dot_dimension_numbers<[1], [1], [0], [0], [0, 0, 1, 0], [], []>} : vector<8x3xbf16>, vector<288x3xbf16>, vector<8x288xf32> -> vector<8x288xf32>
    %6 = arith.addf %0, %5 : vector<8x288xf32>
    %c0_6 = arith.constant 0 : index
    %c1 = arith.constant 1 : index
    %c0_7 = arith.constant 0 : index
    %7 = vector.load %arg1[%c0_6, %c1, %c0_7] : memref<1x342x3xbf16, #tpu.memory_space<vmem>>, vector<1x288x3xbf16>
    %8 = vector.shape_cast %7 : vector<1x288x3xbf16> to vector<288x3xbf16>
    %c1_8 = arith.constant 1 : index
    %c0_9 = arith.constant 0 : index
    %c0_10 = arith.constant 0 : index
    %9 = vector.load %arg2[%c1_8, %c0_9, %c0_10] : memref<9x8x3xbf16, #tpu.memory_space<vmem>>, vector<1x8x3xbf16>
    %10 = vector.shape_cast %9 : vector<1x8x3xbf16> to vector<8x3xbf16>
    %cst_11 = arith.constant dense<0.000000e+00> : vector<8x288xf32>
    %11 = tpu.matmul %10, %8, %cst_11 {dimension_numbers = #tpu.dot_dimension_numbers<[1], [1], [0], [0], [0, 0, 1, 0], [], []>} : vector<8x3xbf16>, vector<288x3xbf16>, vector<8x288xf32> -> vector<8x288xf32>
    %12 = arith.addf %6, %11 : vector<8x288xf32>
    %c0_12 = arith.constant 0 : index
    %c2 = arith.constant 2 : index
    %c0_13 = arith.constant 0 : index
    %13 = vector.load %arg1[%c0_12, %c2, %c0_13] : memref<1x342x3xbf16, #tpu.memory_space<vmem>>, vector<1x288x3xbf16>
    %14 = vector.shape_cast %13 : vector<1x288x3xbf16> to vector<288x3xbf16>
    %c2_14 = arith.constant 2 : index
    %c0_15 = arith.constant 0 : index
    %c0_16 = arith.constant 0 : index
    %15 = vector.load %arg2[%c2_14, %c0_15, %c0_16] : memref<9x8x3xbf16, #tpu.memory_space<vmem>>, vector<1x8x3xbf16>
    %16 = vector.shape_cast %15 : vector<1x8x3xbf16> to vector<8x3xbf16>
    %cst_17 = arith.constant dense<0.000000e+00> : vector<8x288xf32>
    %17 = tpu.matmul %16, %14, %cst_17 {dimension_numbers = #tpu.dot_dimension_numbers<[1], [1], [0], [0], [0, 0, 1, 0], [], []>} : vector<8x3xbf16>, vector<288x3xbf16>, vector<8x288xf32> -> vector<8x288xf32>
    %18 = arith.addf %12, %17 : vector<8x288xf32>
    %c0_18 = arith.constant 0 : index
    %c18 = arith.constant 18 : index
    %c0_19 = arith.constant 0 : index
    %19 = vector.load %arg1[%c0_18, %c18, %c0_19] : memref<1x342x3xbf16, #tpu.memory_space<vmem>>, vector<1x288x3xbf16>
    %20 = vector.shape_cast %19 : vector<1x288x3xbf16> to vector<288x3xbf16>
    %c3 = arith.constant 3 : index
    %c0_20 = arith.constant 0 : index
    %c0_21 = arith.constant 0 : index
    %21 = vector.load %arg2[%c3, %c0_20, %c0_21] : memref<9x8x3xbf16, #tpu.memory_space<vmem>>, vector<1x8x3xbf16>
    %22 = vector.shape_cast %21 : vector<1x8x3xbf16> to vector<8x3xbf16>
    %cst_22 = arith.constant dense<0.000000e+00> : vector<8x288xf32>
    %23 = tpu.matmul %22, %20, %cst_22 {dimension_numbers = #tpu.dot_dimension_numbers<[1], [1], [0], [0], [0, 0, 1, 0], [], []>} : vector<8x3xbf16>, vector<288x3xbf16>, vector<8x288xf32> -> vector<8x288xf32>
    %24 = arith.addf %18, %23 : vector<8x288xf32>
    %c0_23 = arith.constant 0 : index
    %c19 = arith.constant 19 : index
    %c0_24 = arith.constant 0 : index
    %25 = vector.load %arg1[%c0_23, %c19, %c0_24] : memref<1x342x3xbf16, #tpu.memory_space<vmem>>, vector<1x288x3xbf16>
    %26 = vector.shape_cast %25 : vector<1x288x3xbf16> to vector<288x3xbf16>
    %c4 = arith.constant 4 : index
    %c0_25 = arith.constant 0 : index
    %c0_26 = arith.constant 0 : index
    %27 = vector.load %arg2[%c4, %c0_25, %c0_26] : memref<9x8x3xbf16, #tpu.memory_space<vmem>>, vector<1x8x3xbf16>
    %28 = vector.shape_cast %27 : vector<1x8x3xbf16> to vector<8x3xbf16>
    %cst_27 = arith.constant dense<0.000000e+00> : vector<8x288xf32>
    %29 = tpu.matmul %28, %26, %cst_27 {dimension_numbers = #tpu.dot_dimension_numbers<[1], [1], [0], [0], [0, 0, 1, 0], [], []>} : vector<8x3xbf16>, vector<288x3xbf16>, vector<8x288xf32> -> vector<8x288xf32>
    %30 = arith.addf %24, %29 : vector<8x288xf32>
    %c0_28 = arith.constant 0 : index
    %c20 = arith.constant 20 : index
    %c0_29 = arith.constant 0 : index
    %31 = vector.load %arg1[%c0_28, %c20, %c0_29] : memref<1x342x3xbf16, #tpu.memory_space<vmem>>, vector<1x288x3xbf16>
    %32 = vector.shape_cast %31 : vector<1x288x3xbf16> to vector<288x3xbf16>
    %c5 = arith.constant 5 : index
    %c0_30 = arith.constant 0 : index
    %c0_31 = arith.constant 0 : index
    %33 = vector.load %arg2[%c5, %c0_30, %c0_31] : memref<9x8x3xbf16, #tpu.memory_space<vmem>>, vector<1x8x3xbf16>
    %34 = vector.shape_cast %33 : vector<1x8x3xbf16> to vector<8x3xbf16>
    %cst_32 = arith.constant dense<0.000000e+00> : vector<8x288xf32>
    %35 = tpu.matmul %34, %32, %cst_32 {dimension_numbers = #tpu.dot_dimension_numbers<[1], [1], [0], [0], [0, 0, 1, 0], [], []>} : vector<8x3xbf16>, vector<288x3xbf16>, vector<8x288xf32> -> vector<8x288xf32>
    %36 = arith.addf %30, %35 : vector<8x288xf32>
    %c0_33 = arith.constant 0 : index
    %c36 = arith.constant 36 : index
    %c0_34 = arith.constant 0 : index
    %37 = vector.load %arg1[%c0_33, %c36, %c0_34] : memref<1x342x3xbf16, #tpu.memory_space<vmem>>, vector<1x288x3xbf16>
    %38 = vector.shape_cast %37 : vector<1x288x3xbf16> to vector<288x3xbf16>
    %c6 = arith.constant 6 : index
    %c0_35 = arith.constant 0 : index
    %c0_36 = arith.constant 0 : index
    %39 = vector.load %arg2[%c6, %c0_35, %c0_36] : memref<9x8x3xbf16, #tpu.memory_space<vmem>>, vector<1x8x3xbf16>
    %40 = vector.shape_cast %39 : vector<1x8x3xbf16> to vector<8x3xbf16>
    %cst_37 = arith.constant dense<0.000000e+00> : vector<8x288xf32>
    %41 = tpu.matmul %40, %38, %cst_37 {dimension_numbers = #tpu.dot_dimension_numbers<[1], [1], [0], [0], [0, 0, 1, 0], [], []>} : vector<8x3xbf16>, vector<288x3xbf16>, vector<8x288xf32> -> vector<8x288xf32>
    %42 = arith.addf %36, %41 : vector<8x288xf32>
    %c0_38 = arith.constant 0 : index
    %c37 = arith.constant 37 : index
    %c0_39 = arith.constant 0 : index
    %43 = vector.load %arg1[%c0_38, %c37, %c0_39] : memref<1x342x3xbf16, #tpu.memory_space<vmem>>, vector<1x288x3xbf16>
    %44 = vector.shape_cast %43 : vector<1x288x3xbf16> to vector<288x3xbf16>
    %c7 = arith.constant 7 : index
    %c0_40 = arith.constant 0 : index
    %c0_41 = arith.constant 0 : index
    %45 = vector.load %arg2[%c7, %c0_40, %c0_41] : memref<9x8x3xbf16, #tpu.memory_space<vmem>>, vector<1x8x3xbf16>
    %46 = vector.shape_cast %45 : vector<1x8x3xbf16> to vector<8x3xbf16>
    %cst_42 = arith.constant dense<0.000000e+00> : vector<8x288xf32>
    %47 = tpu.matmul %46, %44, %cst_42 {dimension_numbers = #tpu.dot_dimension_numbers<[1], [1], [0], [0], [0, 0, 1, 0], [], []>} : vector<8x3xbf16>, vector<288x3xbf16>, vector<8x288xf32> -> vector<8x288xf32>
    %48 = arith.addf %42, %47 : vector<8x288xf32>
    %c0_43 = arith.constant 0 : index
    %c38 = arith.constant 38 : index
    %c0_44 = arith.constant 0 : index
    %49 = vector.load %arg1[%c0_43, %c38, %c0_44] : memref<1x342x3xbf16, #tpu.memory_space<vmem>>, vector<1x288x3xbf16>
    %50 = vector.shape_cast %49 : vector<1x288x3xbf16> to vector<288x3xbf16>
    %c8 = arith.constant 8 : index
    %c0_45 = arith.constant 0 : index
    %c0_46 = arith.constant 0 : index
    %51 = vector.load %arg2[%c8, %c0_45, %c0_46] : memref<9x8x3xbf16, #tpu.memory_space<vmem>>, vector<1x8x3xbf16>
    %52 = vector.shape_cast %51 : vector<1x8x3xbf16> to vector<8x3xbf16>
    %cst_47 = arith.constant dense<0.000000e+00> : vector<8x288xf32>
    %53 = tpu.matmul %52, %50, %cst_47 {dimension_numbers = #tpu.dot_dimension_numbers<[1], [1], [0], [0], [0, 0, 1, 0], [], []>} : vector<8x3xbf16>, vector<288x3xbf16>, vector<8x288xf32> -> vector<8x288xf32>
    %54 = arith.addf %48, %53 : vector<8x288xf32>
    %c0_48 = arith.constant 0 : index
    %c0_49 = arith.constant 0 : index
    %55 = vector.load %arg3[%c0_48, %c0_49] : memref<8x1xf32, #tpu.memory_space<vmem>>, vector<8x1xf32>
    %56 = vector.broadcast %55 : vector<8x1xf32> to vector<8x288xf32>
    %57 = arith.addf %54, %56 : vector<8x288xf32>
    %cst_50 = arith.constant 0.000000e+00 : f32
    %58 = vector.broadcast %cst_50 : f32 to vector<8x288xf32>
    %59 = arith.cmpf ogt, %57, %58 : vector<8x288xf32>
    %c0_51 = arith.constant 0 : index
    %c0_52 = arith.constant 0 : index
    %60 = vector.load %arg4[%c0_51, %c0_52] : memref<8x1xf32, #tpu.memory_space<vmem>>, vector<8x1xf32>
    %61 = vector.broadcast %60 : vector<8x1xf32> to vector<8x288xf32>
    %62 = arith.mulf %61, %57 : vector<8x288xf32>
    %63 = arith.select %59, %57, %62 : vector<8x288xi1>, vector<8x288xf32>
    %c0_53 = arith.constant 0 : index
    %c0_54 = arith.constant 0 : index
    %64 = vector.load %arg5[%c0_53, %c0_54] : memref<1x288xf32, #tpu.memory_space<vmem>>, vector<1x288xf32>
    %65 = vector.broadcast %64 : vector<1x288xf32> to vector<8x288xf32>
    %66 = arith.mulf %63, %65 : vector<8x288xf32>
    %cst_55 = arith.constant 0.000000e+00 : bf16
    %67 = vector.broadcast %cst_55 : bf16 to vector<342x8xbf16>
    %c0_56 = arith.constant 0 : index
    %c0_57 = arith.constant 0 : index
    %68 = vector.load %arg10[%c0_56, %c0_57] : memref<342x8xbf16, #tpu.memory_space<vmem>>, vector<342x8xbf16>
    tpu.vector_store %arg10[%c0_56, %c0_57], %67 {strides = array<i32>} : memref<342x8xbf16, #tpu.memory_space<vmem>>, vector<342x8xbf16>,
    %69 = tpu.transpose %66, [1, 0] : vector<8x288xf32> -> vector<288x8xf32>
    %70 = arith.truncf %69 : vector<288x8xf32> to vector<288x8xbf16>
    %c19_58 = arith.constant 19 : index
    %c0_59 = arith.constant 0 : index
    %71 = vector.load %arg10[%c19_58, %c0_59] : memref<342x8xbf16, #tpu.memory_space<vmem>>, vector<288x8xbf16>
    tpu.vector_store %arg10[%c19_58, %c0_59], %70 {strides = array<i32>} : memref<342x8xbf16, #tpu.memory_space<vmem>>, vector<288x8xbf16>,
    %cst_60 = arith.constant 0.000000e+00 : f32
    %72 = vector.broadcast %cst_60 : f32 to vector<8x288xf32>
    %c0_61 = arith.constant 0 : index
    %c0_62 = arith.constant 0 : index
    %73 = vector.load %arg10[%c0_61, %c0_62] : memref<342x8xbf16, #tpu.memory_space<vmem>>, vector<288x8xbf16>
    %c0_63 = arith.constant 0 : index
    %c0_64 = arith.constant 0 : index
    %c0_65 = arith.constant 0 : index
    %74 = vector.load %arg6[%c0_63, %c0_64, %c0_65] : memref<9x8x8xbf16, #tpu.memory_space<vmem>>, vector<1x8x8xbf16>
    %75 = vector.shape_cast %74 : vector<1x8x8xbf16> to vector<8x8xbf16>
    %cst_66 = arith.constant dense<0.000000e+00> : vector<8x288xf32>
    %76 = tpu.matmul %75, %73, %cst_66 {dimension_numbers = #tpu.dot_dimension_numbers<[1], [1], [0], [0], [0, 0, 1, 0], [], []>} : vector<8x8xbf16>, vector<288x8xbf16>, vector<8x288xf32> -> vector<8x288xf32>
    %77 = arith.addf %72, %76 : vector<8x288xf32>
    %c1_67 = arith.constant 1 : index
    %c0_68 = arith.constant 0 : index
    %78 = vector.load %arg10[%c1_67, %c0_68] : memref<342x8xbf16, #tpu.memory_space<vmem>>, vector<288x8xbf16>
    %c1_69 = arith.constant 1 : index
    %c0_70 = arith.constant 0 : index
    %c0_71 = arith.constant 0 : index
    %79 = vector.load %arg6[%c1_69, %c0_70, %c0_71] : memref<9x8x8xbf16, #tpu.memory_space<vmem>>, vector<1x8x8xbf16>
    %80 = vector.shape_cast %79 : vector<1x8x8xbf16> to vector<8x8xbf16>
    %cst_72 = arith.constant dense<0.000000e+00> : vector<8x288xf32>
    %81 = tpu.matmul %80, %78, %cst_72 {dimension_numbers = #tpu.dot_dimension_numbers<[1], [1], [0], [0], [0, 0, 1, 0], [], []>} : vector<8x8xbf16>, vector<288x8xbf16>, vector<8x288xf32> -> vector<8x288xf32>
    %82 = arith.addf %77, %81 : vector<8x288xf32>
    %c2_73 = arith.constant 2 : index
    %c0_74 = arith.constant 0 : index
    %83 = vector.load %arg10[%c2_73, %c0_74] : memref<342x8xbf16, #tpu.memory_space<vmem>>, vector<288x8xbf16>
    %c2_75 = arith.constant 2 : index
    %c0_76 = arith.constant 0 : index
    %c0_77 = arith.constant 0 : index
    %84 = vector.load %arg6[%c2_75, %c0_76, %c0_77] : memref<9x8x8xbf16, #tpu.memory_space<vmem>>, vector<1x8x8xbf16>
    %85 = vector.shape_cast %84 : vector<1x8x8xbf16> to vector<8x8xbf16>
    %cst_78 = arith.constant dense<0.000000e+00> : vector<8x288xf32>
    %86 = tpu.matmul %85, %83, %cst_78 {dimension_numbers = #tpu.dot_dimension_numbers<[1], [1], [0], [0], [0, 0, 1, 0], [], []>} : vector<8x8xbf16>, vector<288x8xbf16>, vector<8x288xf32> -> vector<8x288xf32>
    %87 = arith.addf %82, %86 : vector<8x288xf32>
    %c18_79 = arith.constant 18 : index
    %c0_80 = arith.constant 0 : index
    %88 = vector.load %arg10[%c18_79, %c0_80] : memref<342x8xbf16, #tpu.memory_space<vmem>>, vector<288x8xbf16>
    %c3_81 = arith.constant 3 : index
    %c0_82 = arith.constant 0 : index
    %c0_83 = arith.constant 0 : index
    %89 = vector.load %arg6[%c3_81, %c0_82, %c0_83] : memref<9x8x8xbf16, #tpu.memory_space<vmem>>, vector<1x8x8xbf16>
    %90 = vector.shape_cast %89 : vector<1x8x8xbf16> to vector<8x8xbf16>
    %cst_84 = arith.constant dense<0.000000e+00> : vector<8x288xf32>
    %91 = tpu.matmul %90, %88, %cst_84 {dimension_numbers = #tpu.dot_dimension_numbers<[1], [1], [0], [0], [0, 0, 1, 0], [], []>} : vector<8x8xbf16>, vector<288x8xbf16>, vector<8x288xf32> -> vector<8x288xf32>
    %92 = arith.addf %87, %91 : vector<8x288xf32>
    %c19_85 = arith.constant 19 : index
    %c0_86 = arith.constant 0 : index
    %93 = vector.load %arg10[%c19_85, %c0_86] : memref<342x8xbf16, #tpu.memory_space<vmem>>, vector<288x8xbf16>
    %c4_87 = arith.constant 4 : index
    %c0_88 = arith.constant 0 : index
    %c0_89 = arith.constant 0 : index
    %94 = vector.load %arg6[%c4_87, %c0_88, %c0_89] : memref<9x8x8xbf16, #tpu.memory_space<vmem>>, vector<1x8x8xbf16>
    %95 = vector.shape_cast %94 : vector<1x8x8xbf16> to vector<8x8xbf16>
    %cst_90 = arith.constant dense<0.000000e+00> : vector<8x288xf32>
    %96 = tpu.matmul %95, %93, %cst_90 {dimension_numbers = #tpu.dot_dimension_numbers<[1], [1], [0], [0], [0, 0, 1, 0], [], []>} : vector<8x8xbf16>, vector<288x8xbf16>, vector<8x288xf32> -> vector<8x288xf32>
    %97 = arith.addf %92, %96 : vector<8x288xf32>
    %c20_91 = arith.constant 20 : index
    %c0_92 = arith.constant 0 : index
    %98 = vector.load %arg10[%c20_91, %c0_92] : memref<342x8xbf16, #tpu.memory_space<vmem>>, vector<288x8xbf16>
    %c5_93 = arith.constant 5 : index
    %c0_94 = arith.constant 0 : index
    %c0_95 = arith.constant 0 : index
    %99 = vector.load %arg6[%c5_93, %c0_94, %c0_95] : memref<9x8x8xbf16, #tpu.memory_space<vmem>>, vector<1x8x8xbf16>
    %100 = vector.shape_cast %99 : vector<1x8x8xbf16> to vector<8x8xbf16>
    %cst_96 = arith.constant dense<0.000000e+00> : vector<8x288xf32>
    %101 = tpu.matmul %100, %98, %cst_96 {dimension_numbers = #tpu.dot_dimension_numbers<[1], [1], [0], [0], [0, 0, 1, 0], [], []>} : vector<8x8xbf16>, vector<288x8xbf16>, vector<8x288xf32> -> vector<8x288xf32>
    %102 = arith.addf %97, %101 : vector<8x288xf32>
    %c36_97 = arith.constant 36 : index
    %c0_98 = arith.constant 0 : index
    %103 = vector.load %arg10[%c36_97, %c0_98] : memref<342x8xbf16, #tpu.memory_space<vmem>>, vector<288x8xbf16>
    %c6_99 = arith.constant 6 : index
    %c0_100 = arith.constant 0 : index
    %c0_101 = arith.constant 0 : index
    %104 = vector.load %arg6[%c6_99, %c0_100, %c0_101] : memref<9x8x8xbf16, #tpu.memory_space<vmem>>, vector<1x8x8xbf16>
    %105 = vector.shape_cast %104 : vector<1x8x8xbf16> to vector<8x8xbf16>
    %cst_102 = arith.constant dense<0.000000e+00> : vector<8x288xf32>
    %106 = tpu.matmul %105, %103, %cst_102 {dimension_numbers = #tpu.dot_dimension_numbers<[1], [1], [0], [0], [0, 0, 1, 0], [], []>} : vector<8x8xbf16>, vector<288x8xbf16>, vector<8x288xf32> -> vector<8x288xf32>
    %107 = arith.addf %102, %106 : vector<8x288xf32>
    %c37_103 = arith.constant 37 : index
    %c0_104 = arith.constant 0 : index
    %108 = vector.load %arg10[%c37_103, %c0_104] : memref<342x8xbf16, #tpu.memory_space<vmem>>, vector<288x8xbf16>
    %c7_105 = arith.constant 7 : index
    %c0_106 = arith.constant 0 : index
    %c0_107 = arith.constant 0 : index
    %109 = vector.load %arg6[%c7_105, %c0_106, %c0_107] : memref<9x8x8xbf16, #tpu.memory_space<vmem>>, vector<1x8x8xbf16>
    %110 = vector.shape_cast %109 : vector<1x8x8xbf16> to vector<8x8xbf16>
    %cst_108 = arith.constant dense<0.000000e+00> : vector<8x288xf32>
    %111 = tpu.matmul %110, %108, %cst_108 {dimension_numbers = #tpu.dot_dimension_numbers<[1], [1], [0], [0], [0, 0, 1, 0], [], []>} : vector<8x8xbf16>, vector<288x8xbf16>, vector<8x288xf32> -> vector<8x288xf32>
    %112 = arith.addf %107, %111 : vector<8x288xf32>
    %c38_109 = arith.constant 38 : index
    %c0_110 = arith.constant 0 : index
    %113 = vector.load %arg10[%c38_109, %c0_110] : memref<342x8xbf16, #tpu.memory_space<vmem>>, vector<288x8xbf16>
    %c8_111 = arith.constant 8 : index
    %c0_112 = arith.constant 0 : index
    %c0_113 = arith.constant 0 : index
    %114 = vector.load %arg6[%c8_111, %c0_112, %c0_113] : memref<9x8x8xbf16, #tpu.memory_space<vmem>>, vector<1x8x8xbf16>
    %115 = vector.shape_cast %114 : vector<1x8x8xbf16> to vector<8x8xbf16>
    %cst_114 = arith.constant dense<0.000000e+00> : vector<8x288xf32>
    %116 = tpu.matmul %115, %113, %cst_114 {dimension_numbers = #tpu.dot_dimension_numbers<[1], [1], [0], [0], [0, 0, 1, 0], [], []>} : vector<8x8xbf16>, vector<288x8xbf16>, vector<8x288xf32> -> vector<8x288xf32>
    %117 = arith.addf %112, %116 : vector<8x288xf32>
    %c0_115 = arith.constant 0 : index
    %c0_116 = arith.constant 0 : index
    %118 = vector.load %arg7[%c0_115, %c0_116] : memref<8x1xf32, #tpu.memory_space<vmem>>, vector<8x1xf32>
    %119 = vector.broadcast %118 : vector<8x1xf32> to vector<8x288xf32>
    %120 = arith.addf %117, %119 : vector<8x288xf32>
    %cst_117 = arith.constant 0.000000e+00 : f32
    %121 = vector.broadcast %cst_117 : f32 to vector<8x288xf32>
    %122 = arith.cmpf ogt, %120, %121 : vector<8x288xf32>
    %c0_118 = arith.constant 0 : index
    %c0_119 = arith.constant 0 : index
    %123 = vector.load %arg8[%c0_118, %c0_119] : memref<8x1xf32, #tpu.memory_space<vmem>>, vector<8x1xf32>
    %124 = vector.broadcast %123 : vector<8x1xf32> to vector<8x288xf32>
    %125 = arith.mulf %124, %120 : vector<8x288xf32>
    %126 = arith.select %122, %120, %125 : vector<8x288xi1>, vector<8x288xf32>
    %c0_120 = arith.constant 0 : index
    %c0_121 = arith.constant 0 : index
    %c0_122 = arith.constant 0 : index
    %127 = vector.load %arg9[%c0_120, %c0_121, %c0_122] : memref<1x8x288xf32, #tpu.memory_space<vmem>>, vector<1x8x288xf32>
    %128 = vector.shape_cast %127 : vector<1x8x288xf32> to vector<8x288xf32>
    %129 = vector.shape_cast %126 : vector<8x288xf32> to vector<1x8x288xf32>
    tpu.vector_store %arg9[%c0_120, %c0_121, %c0_122], %129 {strides = array<i32>} : memref<1x8x288xf32, #tpu.memory_space<vmem>>, vector<1x8x288xf32>,
    return
  }
  func.func @transform_0(%arg0: i32) -> (i32, i32, i32) {
    %c0_i32 = arith.constant 0 : i32
    %c0_i32_0 = arith.constant 0 : i32
    %c0_i32_1 = arith.constant 0 : i32
    return %arg0, %c0_i32, %c0_i32_0 : i32, i32, i32
  }
  func.func @transform_1(%arg0: i32) -> (i32, i32, i32) {
    %c0_i32 = arith.constant 0 : i32
    %c0_i32_0 = arith.constant 0 : i32
    %c0_i32_1 = arith.constant 0 : i32
    %c0_i32_2 = arith.constant 0 : i32
    return %c0_i32, %c0_i32_0, %c0_i32_1 : i32, i32, i32
  }
  func.func @transform_2(%arg0: i32) -> (i32, i32) {
    %c0_i32 = arith.constant 0 : i32
    %c0_i32_0 = arith.constant 0 : i32
    %c0_i32_1 = arith.constant 0 : i32
    return %c0_i32, %c0_i32_0 : i32, i32
  }
  func.func @transform_3(%arg0: i32) -> (i32, i32) {
    %c0_i32 = arith.constant 0 : i32
    %c0_i32_0 = arith.constant 0 : i32
    %c0_i32_1 = arith.constant 0 : i32
    return %c0_i32, %c0_i32_0 : i32, i32
  }
  func.func @transform_4(%arg0: i32) -> (i32, i32) {
    %c0_i32 = arith.constant 0 : i32
    %c0_i32_0 = arith.constant 0 : i32
    %c0_i32_1 = arith.constant 0 : i32
    return %c0_i32, %c0_i32_0 : i32, i32
  }
  func.func @transform_5(%arg0: i32) -> (i32, i32, i32) {
    %c0_i32 = arith.constant 0 : i32
    %c0_i32_0 = arith.constant 0 : i32
    %c0_i32_1 = arith.constant 0 : i32
    %c0_i32_2 = arith.constant 0 : i32
    return %c0_i32, %c0_i32_0, %c0_i32_1 : i32, i32, i32
  }
  func.func @transform_6(%arg0: i32) -> (i32, i32) {
    %c0_i32 = arith.constant 0 : i32
    %c0_i32_0 = arith.constant 0 : i32
    %c0_i32_1 = arith.constant 0 : i32
    return %c0_i32, %c0_i32_0 : i32, i32
  }
  func.func @transform_7(%arg0: i32) -> (i32, i32) {
    %c0_i32 = arith.constant 0 : i32
    %c0_i32_0 = arith.constant 0 : i32
    %c0_i32_1 = arith.constant 0 : i32
    return %c0_i32, %c0_i32_0 : i32, i32
  }
  func.func @transform_8(%arg0: i32) -> (i32, i32, i32) {
    %c0_i32 = arith.constant 0 : i32
    %c0_i32_0 = arith.constant 0 : i32
    %c0_i32_1 = arith.constant 0 : i32
    return %arg0, %c0_i32, %c0_i32_0 : i32, i32, i32
  }
}

module attributes {stable_mosaic.version = 11 : i64} {
  func.func @_backbone_block_kernel(%arg0: i32, %arg1: memref<1x100x32xbf16, #tpu.memory_space<vmem>>, %arg2: memref<4x16x32xbf16, #tpu.memory_space<vmem>>, %arg3: memref<16x1xf32, #tpu.memory_space<vmem>>, %arg4: memref<16x1xf32, #tpu.memory_space<vmem>>, %arg5: memref<1x80xf32, #tpu.memory_space<vmem>>, %arg6: memref<9x16x16xbf16, #tpu.memory_space<vmem>>, %arg7: memref<16x1xf32, #tpu.memory_space<vmem>>, %arg8: memref<16x1xf32, #tpu.memory_space<vmem>>, %arg9: memref<1x16x80xf32, #tpu.memory_space<vmem>>, %arg10: memref<110x16xbf16, #tpu.memory_space<vmem>>) attributes {dimension_semantics = [#tpu.dimension_semantics<parallel>], iteration_bounds = array<i64: 2>, scalar_prefetch = 0 : i64, scratch_operands = 1 : i64, tpu.core_type = #tpu.core_type<tc>, window_params = [{transform_indices = @transform_0, window_bounds = array<i64: 1, 100, 32>}, {pipeline_mode = #tpu.pipeline_mode<synchronous>, transform_indices = @transform_1, window_bounds = array<i64: 4, 16, 32>}, {pipeline_mode = #tpu.pipeline_mode<synchronous>, transform_indices = @transform_2, window_bounds = array<i64: 16, 1>}, {pipeline_mode = #tpu.pipeline_mode<synchronous>, transform_indices = @transform_3, window_bounds = array<i64: 16, 1>}, {pipeline_mode = #tpu.pipeline_mode<synchronous>, transform_indices = @transform_4, window_bounds = array<i64: 1, 80>}, {pipeline_mode = #tpu.pipeline_mode<synchronous>, transform_indices = @transform_5, window_bounds = array<i64: 9, 16, 16>}, {pipeline_mode = #tpu.pipeline_mode<synchronous>, transform_indices = @transform_6, window_bounds = array<i64: 16, 1>}, {pipeline_mode = #tpu.pipeline_mode<synchronous>, transform_indices = @transform_7, window_bounds = array<i64: 16, 1>}, {transform_indices = @transform_8, window_bounds = array<i64: 1, 16, 80>}]} {
    %cst = arith.constant 0.000000e+00 : f32
    %0 = vector.broadcast %cst : f32 to vector<16x80xf32>
    %c0 = arith.constant 0 : index
    %c0_0 = arith.constant 0 : index
    %c0_1 = arith.constant 0 : index
    %1 = vector.load %arg1[%c0, %c0_0, %c0_1] : memref<1x100x32xbf16, #tpu.memory_space<vmem>>, vector<1x80x32xbf16>
    %2 = vector.shape_cast %1 : vector<1x80x32xbf16> to vector<80x32xbf16>
    %c0_2 = arith.constant 0 : index
    %c0_3 = arith.constant 0 : index
    %c0_4 = arith.constant 0 : index
    %3 = vector.load %arg2[%c0_2, %c0_3, %c0_4] : memref<4x16x32xbf16, #tpu.memory_space<vmem>>, vector<1x16x32xbf16>
    %4 = vector.shape_cast %3 : vector<1x16x32xbf16> to vector<16x32xbf16>
    %cst_5 = arith.constant dense<0.000000e+00> : vector<16x80xf32>
    %5 = tpu.matmul %4, %2, %cst_5 {dimension_numbers = #tpu.dot_dimension_numbers<[1], [1], [0], [0], [0, 0, 1, 0], [], []>} : vector<16x32xbf16>, vector<80x32xbf16>, vector<16x80xf32> -> vector<16x80xf32>
    %6 = arith.addf %0, %5 : vector<16x80xf32>
    %c0_6 = arith.constant 0 : index
    %c1 = arith.constant 1 : index
    %c0_7 = arith.constant 0 : index
    %7 = vector.load %arg1[%c0_6, %c1, %c0_7] : memref<1x100x32xbf16, #tpu.memory_space<vmem>>, vector<1x80x32xbf16>
    %8 = vector.shape_cast %7 : vector<1x80x32xbf16> to vector<80x32xbf16>
    %c1_8 = arith.constant 1 : index
    %c0_9 = arith.constant 0 : index
    %c0_10 = arith.constant 0 : index
    %9 = vector.load %arg2[%c1_8, %c0_9, %c0_10] : memref<4x16x32xbf16, #tpu.memory_space<vmem>>, vector<1x16x32xbf16>
    %10 = vector.shape_cast %9 : vector<1x16x32xbf16> to vector<16x32xbf16>
    %cst_11 = arith.constant dense<0.000000e+00> : vector<16x80xf32>
    %11 = tpu.matmul %10, %8, %cst_11 {dimension_numbers = #tpu.dot_dimension_numbers<[1], [1], [0], [0], [0, 0, 1, 0], [], []>} : vector<16x32xbf16>, vector<80x32xbf16>, vector<16x80xf32> -> vector<16x80xf32>
    %12 = arith.addf %6, %11 : vector<16x80xf32>
    %c0_12 = arith.constant 0 : index
    %c10 = arith.constant 10 : index
    %c0_13 = arith.constant 0 : index
    %13 = vector.load %arg1[%c0_12, %c10, %c0_13] : memref<1x100x32xbf16, #tpu.memory_space<vmem>>, vector<1x80x32xbf16>
    %14 = vector.shape_cast %13 : vector<1x80x32xbf16> to vector<80x32xbf16>
    %c2 = arith.constant 2 : index
    %c0_14 = arith.constant 0 : index
    %c0_15 = arith.constant 0 : index
    %15 = vector.load %arg2[%c2, %c0_14, %c0_15] : memref<4x16x32xbf16, #tpu.memory_space<vmem>>, vector<1x16x32xbf16>
    %16 = vector.shape_cast %15 : vector<1x16x32xbf16> to vector<16x32xbf16>
    %cst_16 = arith.constant dense<0.000000e+00> : vector<16x80xf32>
    %17 = tpu.matmul %16, %14, %cst_16 {dimension_numbers = #tpu.dot_dimension_numbers<[1], [1], [0], [0], [0, 0, 1, 0], [], []>} : vector<16x32xbf16>, vector<80x32xbf16>, vector<16x80xf32> -> vector<16x80xf32>
    %18 = arith.addf %12, %17 : vector<16x80xf32>
    %c0_17 = arith.constant 0 : index
    %c11 = arith.constant 11 : index
    %c0_18 = arith.constant 0 : index
    %19 = vector.load %arg1[%c0_17, %c11, %c0_18] : memref<1x100x32xbf16, #tpu.memory_space<vmem>>, vector<1x80x32xbf16>
    %20 = vector.shape_cast %19 : vector<1x80x32xbf16> to vector<80x32xbf16>
    %c3 = arith.constant 3 : index
    %c0_19 = arith.constant 0 : index
    %c0_20 = arith.constant 0 : index
    %21 = vector.load %arg2[%c3, %c0_19, %c0_20] : memref<4x16x32xbf16, #tpu.memory_space<vmem>>, vector<1x16x32xbf16>
    %22 = vector.shape_cast %21 : vector<1x16x32xbf16> to vector<16x32xbf16>
    %cst_21 = arith.constant dense<0.000000e+00> : vector<16x80xf32>
    %23 = tpu.matmul %22, %20, %cst_21 {dimension_numbers = #tpu.dot_dimension_numbers<[1], [1], [0], [0], [0, 0, 1, 0], [], []>} : vector<16x32xbf16>, vector<80x32xbf16>, vector<16x80xf32> -> vector<16x80xf32>
    %24 = arith.addf %18, %23 : vector<16x80xf32>
    %c0_22 = arith.constant 0 : index
    %c0_23 = arith.constant 0 : index
    %25 = vector.load %arg3[%c0_22, %c0_23] : memref<16x1xf32, #tpu.memory_space<vmem>>, vector<16x1xf32>
    %26 = vector.broadcast %25 : vector<16x1xf32> to vector<16x80xf32>
    %27 = arith.addf %24, %26 : vector<16x80xf32>
    %cst_24 = arith.constant 0.000000e+00 : f32
    %28 = vector.broadcast %cst_24 : f32 to vector<16x80xf32>
    %29 = arith.cmpf ogt, %27, %28 : vector<16x80xf32>
    %c0_25 = arith.constant 0 : index
    %c0_26 = arith.constant 0 : index
    %30 = vector.load %arg4[%c0_25, %c0_26] : memref<16x1xf32, #tpu.memory_space<vmem>>, vector<16x1xf32>
    %31 = vector.broadcast %30 : vector<16x1xf32> to vector<16x80xf32>
    %32 = arith.mulf %31, %27 : vector<16x80xf32>
    %33 = arith.select %29, %27, %32 : vector<16x80xi1>, vector<16x80xf32>
    %c0_27 = arith.constant 0 : index
    %c0_28 = arith.constant 0 : index
    %34 = vector.load %arg5[%c0_27, %c0_28] : memref<1x80xf32, #tpu.memory_space<vmem>>, vector<1x80xf32>
    %35 = vector.broadcast %34 : vector<1x80xf32> to vector<16x80xf32>
    %36 = arith.mulf %33, %35 : vector<16x80xf32>
    %cst_29 = arith.constant 0.000000e+00 : bf16
    %37 = vector.broadcast %cst_29 : bf16 to vector<110x16xbf16>
    %c0_30 = arith.constant 0 : index
    %c0_31 = arith.constant 0 : index
    %38 = vector.load %arg10[%c0_30, %c0_31] : memref<110x16xbf16, #tpu.memory_space<vmem>>, vector<110x16xbf16>
    tpu.vector_store %arg10[%c0_30, %c0_31], %37 {strides = array<i32>} : memref<110x16xbf16, #tpu.memory_space<vmem>>, vector<110x16xbf16>,
    %39 = tpu.transpose %36, [1, 0] : vector<16x80xf32> -> vector<80x16xf32>
    %40 = arith.truncf %39 : vector<80x16xf32> to vector<80x16xbf16>
    %c11_32 = arith.constant 11 : index
    %c0_33 = arith.constant 0 : index
    %41 = vector.load %arg10[%c11_32, %c0_33] : memref<110x16xbf16, #tpu.memory_space<vmem>>, vector<80x16xbf16>
    tpu.vector_store %arg10[%c11_32, %c0_33], %40 {strides = array<i32>} : memref<110x16xbf16, #tpu.memory_space<vmem>>, vector<80x16xbf16>,
    %cst_34 = arith.constant 0.000000e+00 : f32
    %42 = vector.broadcast %cst_34 : f32 to vector<16x80xf32>
    %c0_35 = arith.constant 0 : index
    %c0_36 = arith.constant 0 : index
    %43 = vector.load %arg10[%c0_35, %c0_36] : memref<110x16xbf16, #tpu.memory_space<vmem>>, vector<80x16xbf16>
    %c0_37 = arith.constant 0 : index
    %c0_38 = arith.constant 0 : index
    %c0_39 = arith.constant 0 : index
    %44 = vector.load %arg6[%c0_37, %c0_38, %c0_39] : memref<9x16x16xbf16, #tpu.memory_space<vmem>>, vector<1x16x16xbf16>
    %45 = vector.shape_cast %44 : vector<1x16x16xbf16> to vector<16x16xbf16>
    %cst_40 = arith.constant dense<0.000000e+00> : vector<16x80xf32>
    %46 = tpu.matmul %45, %43, %cst_40 {dimension_numbers = #tpu.dot_dimension_numbers<[1], [1], [0], [0], [0, 0, 1, 0], [], []>} : vector<16x16xbf16>, vector<80x16xbf16>, vector<16x80xf32> -> vector<16x80xf32>
    %47 = arith.addf %42, %46 : vector<16x80xf32>
    %c1_41 = arith.constant 1 : index
    %c0_42 = arith.constant 0 : index
    %48 = vector.load %arg10[%c1_41, %c0_42] : memref<110x16xbf16, #tpu.memory_space<vmem>>, vector<80x16xbf16>
    %c1_43 = arith.constant 1 : index
    %c0_44 = arith.constant 0 : index
    %c0_45 = arith.constant 0 : index
    %49 = vector.load %arg6[%c1_43, %c0_44, %c0_45] : memref<9x16x16xbf16, #tpu.memory_space<vmem>>, vector<1x16x16xbf16>
    %50 = vector.shape_cast %49 : vector<1x16x16xbf16> to vector<16x16xbf16>
    %cst_46 = arith.constant dense<0.000000e+00> : vector<16x80xf32>
    %51 = tpu.matmul %50, %48, %cst_46 {dimension_numbers = #tpu.dot_dimension_numbers<[1], [1], [0], [0], [0, 0, 1, 0], [], []>} : vector<16x16xbf16>, vector<80x16xbf16>, vector<16x80xf32> -> vector<16x80xf32>
    %52 = arith.addf %47, %51 : vector<16x80xf32>
    %c2_47 = arith.constant 2 : index
    %c0_48 = arith.constant 0 : index
    %53 = vector.load %arg10[%c2_47, %c0_48] : memref<110x16xbf16, #tpu.memory_space<vmem>>, vector<80x16xbf16>
    %c2_49 = arith.constant 2 : index
    %c0_50 = arith.constant 0 : index
    %c0_51 = arith.constant 0 : index
    %54 = vector.load %arg6[%c2_49, %c0_50, %c0_51] : memref<9x16x16xbf16, #tpu.memory_space<vmem>>, vector<1x16x16xbf16>
    %55 = vector.shape_cast %54 : vector<1x16x16xbf16> to vector<16x16xbf16>
    %cst_52 = arith.constant dense<0.000000e+00> : vector<16x80xf32>
    %56 = tpu.matmul %55, %53, %cst_52 {dimension_numbers = #tpu.dot_dimension_numbers<[1], [1], [0], [0], [0, 0, 1, 0], [], []>} : vector<16x16xbf16>, vector<80x16xbf16>, vector<16x80xf32> -> vector<16x80xf32>
    %57 = arith.addf %52, %56 : vector<16x80xf32>
    %c10_53 = arith.constant 10 : index
    %c0_54 = arith.constant 0 : index
    %58 = vector.load %arg10[%c10_53, %c0_54] : memref<110x16xbf16, #tpu.memory_space<vmem>>, vector<80x16xbf16>
    %c3_55 = arith.constant 3 : index
    %c0_56 = arith.constant 0 : index
    %c0_57 = arith.constant 0 : index
    %59 = vector.load %arg6[%c3_55, %c0_56, %c0_57] : memref<9x16x16xbf16, #tpu.memory_space<vmem>>, vector<1x16x16xbf16>
    %60 = vector.shape_cast %59 : vector<1x16x16xbf16> to vector<16x16xbf16>
    %cst_58 = arith.constant dense<0.000000e+00> : vector<16x80xf32>
    %61 = tpu.matmul %60, %58, %cst_58 {dimension_numbers = #tpu.dot_dimension_numbers<[1], [1], [0], [0], [0, 0, 1, 0], [], []>} : vector<16x16xbf16>, vector<80x16xbf16>, vector<16x80xf32> -> vector<16x80xf32>
    %62 = arith.addf %57, %61 : vector<16x80xf32>
    %c11_59 = arith.constant 11 : index
    %c0_60 = arith.constant 0 : index
    %63 = vector.load %arg10[%c11_59, %c0_60] : memref<110x16xbf16, #tpu.memory_space<vmem>>, vector<80x16xbf16>
    %c4 = arith.constant 4 : index
    %c0_61 = arith.constant 0 : index
    %c0_62 = arith.constant 0 : index
    %64 = vector.load %arg6[%c4, %c0_61, %c0_62] : memref<9x16x16xbf16, #tpu.memory_space<vmem>>, vector<1x16x16xbf16>
    %65 = vector.shape_cast %64 : vector<1x16x16xbf16> to vector<16x16xbf16>
    %cst_63 = arith.constant dense<0.000000e+00> : vector<16x80xf32>
    %66 = tpu.matmul %65, %63, %cst_63 {dimension_numbers = #tpu.dot_dimension_numbers<[1], [1], [0], [0], [0, 0, 1, 0], [], []>} : vector<16x16xbf16>, vector<80x16xbf16>, vector<16x80xf32> -> vector<16x80xf32>
    %67 = arith.addf %62, %66 : vector<16x80xf32>
    %c12 = arith.constant 12 : index
    %c0_64 = arith.constant 0 : index
    %68 = vector.load %arg10[%c12, %c0_64] : memref<110x16xbf16, #tpu.memory_space<vmem>>, vector<80x16xbf16>
    %c5 = arith.constant 5 : index
    %c0_65 = arith.constant 0 : index
    %c0_66 = arith.constant 0 : index
    %69 = vector.load %arg6[%c5, %c0_65, %c0_66] : memref<9x16x16xbf16, #tpu.memory_space<vmem>>, vector<1x16x16xbf16>
    %70 = vector.shape_cast %69 : vector<1x16x16xbf16> to vector<16x16xbf16>
    %cst_67 = arith.constant dense<0.000000e+00> : vector<16x80xf32>
    %71 = tpu.matmul %70, %68, %cst_67 {dimension_numbers = #tpu.dot_dimension_numbers<[1], [1], [0], [0], [0, 0, 1, 0], [], []>} : vector<16x16xbf16>, vector<80x16xbf16>, vector<16x80xf32> -> vector<16x80xf32>
    %72 = arith.addf %67, %71 : vector<16x80xf32>
    %c20 = arith.constant 20 : index
    %c0_68 = arith.constant 0 : index
    %73 = vector.load %arg10[%c20, %c0_68] : memref<110x16xbf16, #tpu.memory_space<vmem>>, vector<80x16xbf16>
    %c6 = arith.constant 6 : index
    %c0_69 = arith.constant 0 : index
    %c0_70 = arith.constant 0 : index
    %74 = vector.load %arg6[%c6, %c0_69, %c0_70] : memref<9x16x16xbf16, #tpu.memory_space<vmem>>, vector<1x16x16xbf16>
    %75 = vector.shape_cast %74 : vector<1x16x16xbf16> to vector<16x16xbf16>
    %cst_71 = arith.constant dense<0.000000e+00> : vector<16x80xf32>
    %76 = tpu.matmul %75, %73, %cst_71 {dimension_numbers = #tpu.dot_dimension_numbers<[1], [1], [0], [0], [0, 0, 1, 0], [], []>} : vector<16x16xbf16>, vector<80x16xbf16>, vector<16x80xf32> -> vector<16x80xf32>
    %77 = arith.addf %72, %76 : vector<16x80xf32>
    %c21 = arith.constant 21 : index
    %c0_72 = arith.constant 0 : index
    %78 = vector.load %arg10[%c21, %c0_72] : memref<110x16xbf16, #tpu.memory_space<vmem>>, vector<80x16xbf16>
    %c7 = arith.constant 7 : index
    %c0_73 = arith.constant 0 : index
    %c0_74 = arith.constant 0 : index
    %79 = vector.load %arg6[%c7, %c0_73, %c0_74] : memref<9x16x16xbf16, #tpu.memory_space<vmem>>, vector<1x16x16xbf16>
    %80 = vector.shape_cast %79 : vector<1x16x16xbf16> to vector<16x16xbf16>
    %cst_75 = arith.constant dense<0.000000e+00> : vector<16x80xf32>
    %81 = tpu.matmul %80, %78, %cst_75 {dimension_numbers = #tpu.dot_dimension_numbers<[1], [1], [0], [0], [0, 0, 1, 0], [], []>} : vector<16x16xbf16>, vector<80x16xbf16>, vector<16x80xf32> -> vector<16x80xf32>
    %82 = arith.addf %77, %81 : vector<16x80xf32>
    %c22 = arith.constant 22 : index
    %c0_76 = arith.constant 0 : index
    %83 = vector.load %arg10[%c22, %c0_76] : memref<110x16xbf16, #tpu.memory_space<vmem>>, vector<80x16xbf16>
    %c8 = arith.constant 8 : index
    %c0_77 = arith.constant 0 : index
    %c0_78 = arith.constant 0 : index
    %84 = vector.load %arg6[%c8, %c0_77, %c0_78] : memref<9x16x16xbf16, #tpu.memory_space<vmem>>, vector<1x16x16xbf16>
    %85 = vector.shape_cast %84 : vector<1x16x16xbf16> to vector<16x16xbf16>
    %cst_79 = arith.constant dense<0.000000e+00> : vector<16x80xf32>
    %86 = tpu.matmul %85, %83, %cst_79 {dimension_numbers = #tpu.dot_dimension_numbers<[1], [1], [0], [0], [0, 0, 1, 0], [], []>} : vector<16x16xbf16>, vector<80x16xbf16>, vector<16x80xf32> -> vector<16x80xf32>
    %87 = arith.addf %82, %86 : vector<16x80xf32>
    %c0_80 = arith.constant 0 : index
    %c0_81 = arith.constant 0 : index
    %88 = vector.load %arg7[%c0_80, %c0_81] : memref<16x1xf32, #tpu.memory_space<vmem>>, vector<16x1xf32>
    %89 = vector.broadcast %88 : vector<16x1xf32> to vector<16x80xf32>
    %90 = arith.addf %87, %89 : vector<16x80xf32>
    %cst_82 = arith.constant 0.000000e+00 : f32
    %91 = vector.broadcast %cst_82 : f32 to vector<16x80xf32>
    %92 = arith.cmpf ogt, %90, %91 : vector<16x80xf32>
    %c0_83 = arith.constant 0 : index
    %c0_84 = arith.constant 0 : index
    %93 = vector.load %arg8[%c0_83, %c0_84] : memref<16x1xf32, #tpu.memory_space<vmem>>, vector<16x1xf32>
    %94 = vector.broadcast %93 : vector<16x1xf32> to vector<16x80xf32>
    %95 = arith.mulf %94, %90 : vector<16x80xf32>
    %96 = arith.select %92, %90, %95 : vector<16x80xi1>, vector<16x80xf32>
    %c0_85 = arith.constant 0 : index
    %c0_86 = arith.constant 0 : index
    %c0_87 = arith.constant 0 : index
    %97 = vector.load %arg9[%c0_85, %c0_86, %c0_87] : memref<1x16x80xf32, #tpu.memory_space<vmem>>, vector<1x16x80xf32>
    %98 = vector.shape_cast %97 : vector<1x16x80xf32> to vector<16x80xf32>
    %99 = vector.shape_cast %96 : vector<16x80xf32> to vector<1x16x80xf32>
    tpu.vector_store %arg9[%c0_85, %c0_86, %c0_87], %99 {strides = array<i32>} : memref<1x16x80xf32, #tpu.memory_space<vmem>>, vector<1x16x80xf32>,
    return
  }
  func.func @transform_0(%arg0: i32) -> (i32, i32, i32) {
    %c0_i32 = arith.constant 0 : i32
    %c0_i32_0 = arith.constant 0 : i32
    %c0_i32_1 = arith.constant 0 : i32
    return %arg0, %c0_i32, %c0_i32_0 : i32, i32, i32
  }
  func.func @transform_1(%arg0: i32) -> (i32, i32, i32) {
    %c0_i32 = arith.constant 0 : i32
    %c0_i32_0 = arith.constant 0 : i32
    %c0_i32_1 = arith.constant 0 : i32
    %c0_i32_2 = arith.constant 0 : i32
    return %c0_i32, %c0_i32_0, %c0_i32_1 : i32, i32, i32
  }
  func.func @transform_2(%arg0: i32) -> (i32, i32) {
    %c0_i32 = arith.constant 0 : i32
    %c0_i32_0 = arith.constant 0 : i32
    %c0_i32_1 = arith.constant 0 : i32
    return %c0_i32, %c0_i32_0 : i32, i32
  }
  func.func @transform_3(%arg0: i32) -> (i32, i32) {
    %c0_i32 = arith.constant 0 : i32
    %c0_i32_0 = arith.constant 0 : i32
    %c0_i32_1 = arith.constant 0 : i32
    return %c0_i32, %c0_i32_0 : i32, i32
  }
  func.func @transform_4(%arg0: i32) -> (i32, i32) {
    %c0_i32 = arith.constant 0 : i32
    %c0_i32_0 = arith.constant 0 : i32
    %c0_i32_1 = arith.constant 0 : i32
    return %c0_i32, %c0_i32_0 : i32, i32
  }
  func.func @transform_5(%arg0: i32) -> (i32, i32, i32) {
    %c0_i32 = arith.constant 0 : i32
    %c0_i32_0 = arith.constant 0 : i32
    %c0_i32_1 = arith.constant 0 : i32
    %c0_i32_2 = arith.constant 0 : i32
    return %c0_i32, %c0_i32_0, %c0_i32_1 : i32, i32, i32
  }
  func.func @transform_6(%arg0: i32) -> (i32, i32) {
    %c0_i32 = arith.constant 0 : i32
    %c0_i32_0 = arith.constant 0 : i32
    %c0_i32_1 = arith.constant 0 : i32
    return %c0_i32, %c0_i32_0 : i32, i32
  }
  func.func @transform_7(%arg0: i32) -> (i32, i32) {
    %c0_i32 = arith.constant 0 : i32
    %c0_i32_0 = arith.constant 0 : i32
    %c0_i32_1 = arith.constant 0 : i32
    return %c0_i32, %c0_i32_0 : i32, i32
  }
  func.func @transform_8(%arg0: i32) -> (i32, i32, i32) {
    %c0_i32 = arith.constant 0 : i32
    %c0_i32_0 = arith.constant 0 : i32
    %c0_i32_1 = arith.constant 0 : i32
    return %arg0, %c0_i32, %c0_i32_0 : i32, i32, i32
  }
}

</mosaic_0001>

<bundles_post_ra>
// kernel: backbone_forward.3
= control target key start
LH: loop header
LB: loop body
LE: loop exit
PB: predicated region body
PF: predicated region fallthrough
CT: control target
= control target key end

     0   :  { %s2560_s27 = smov 0   ;;  %s3065_s0 = inlined_call_operand.vmem [shape: bf16[2,100,32], index: 0, kind: input, shape index: {}]   ;;  %s3066_s1 = inlined_call_operand.vmem [shape: bf16[4,16,32], index: 1, kind: input, shape index: {}]   ;;  %s3067_s2 = inlined_call_operand.vmem [shape: f32[16,1], index: 2, kind: input, shape index: {}]   ;;  %s3068_s3 = inlined_call_operand.vmem [shape: f32[16,1], index: 3, kind: input, shape index: {}]   ;;  %s3069_s4 = inlined_call_operand.vmem [shape: f32[1,80], index: 4, kind: input, shape index: {}]   ;;  %s3070_s5 = inlined_call_operand.vmem [shape: bf16[9,16,16], index: 5, kind: input, shape index: {}]   ;;  %s3071_s6 = inlined_call_operand.vmem [shape: f32[16,1], index: 6, kind: input, shape index: {}]   ;;  %s3072_s7 = inlined_call_operand.vmem [shape: f32[16,1], index: 7, kind: input, shape index: {}]   ;;  %s3073_s8 = inlined_call_operand.vmem [shape: f32[2,16,80], index: 8, kind: output, shape index: {}]  }
   0x1 LB: > { %s2066_s28 = sadd.s32 4294967295, %s2510_s27   ;;  %p2070_p0 = scmp.ge.s32.totalorder %s2510_s27, 1  ;;  %s2510_s27 = sphi %s2560_s27, %s18_s27  }
   0x2   : > { %p262_p1 = scmp.lt.s32.totalorder %s2510_s27, 3 }
   0x4   : > { %p263_p2 = pnand %p2070_p0, %p262_p1 }
   0x5   : > { %p296_p3 = scmp.lt.s32.totalorder (!%p263_p2), %s2066_s28, 1  ;;  %v2512_v0 = vmov (!%p263_p2), 0.0   ;;  %vm2513_vm0 = vmmov (!%p263_p2), 0   ;;  %v783_v1 = vld [vmem:[%s3068_s3] sm:$0xff] (!%p263_p2)  ;;  %vm401_vm1 = vcmask (!%p263_p2), 261120   ;;  %v2514_v2 = vmov (!%p263_p2), 0  }
   0x6   : > { %266 = sbr.rel (%p263_p2) target bundleno = 909 (0x38d), region = 52  ;;  %2274 = vmatprep.subr.bf16.mxu1 (!%p263_p2), %v2512_v0  ;;  %2260 = vmatprep.subr.bf16.mxu0 (!%p263_p2), %v2512_v0  ;;  %v784_v3 = vld [vmem:[%s3068_s3 + $0x8] sm:$0xff] (!%p263_p2)  ;;  %v767_v4 = vld [vmem:[%s3067_s2] sm:$0xff] (!%p263_p2)  ;;  %vm356_vm2 = vsmask.f32 (!%p263_p2), 7424  ;;  %vm567_vm4 = vcmask (!%p263_p2), 1046528  }
   0x7   : > { %2270 = vmatprep.mubr.msk.bf16.mxu0 (!%p263_p2), %vm2513_vm0, %v2512_v0  ;;  %2284 = vmatprep.mubr.msk.bf16.mxu1 (!%p263_p2), %vm2513_vm0, %v2512_v0  ;;  %v1976_v16 = vld [vmem:[%s3071_s6] sm:$0xff] (!%p263_p2)  ;;  %v1977_v24 = vld [vmem:[%s3071_s6 + $0x8] sm:$0xff] (!%p263_p2)  ;;  %vm652_vm3 = vsmask.f32 (!%p263_p2), 6400  ;;  %vm808_vm5 = vcmask (!%p263_p2), 125952   ;;  %vm999_vm8 = vcmask (!%p263_p2), 125953  }
   0x8   : > { %2455 = vset.pattern.permute.xlu1 (!%p263_p2), %v2514_v2  ;;  %2454 = vset.pattern.permute.xlu0 (!%p263_p2), %v2514_v2  ;;  %v1992_v29 = vld [vmem:[%s3072_s7] sm:$0xff] (!%p263_p2)  ;;  %v768_v34 = vld [vmem:[%s3067_s2 + $0x8] sm:$0xff] (!%p263_p2)  ;;  %810 = vst.msk [vmem:[#allocation2 + $0x4] sm:$0xf] (!%p263_p2), %vm808_vm5, %v2514_v2  ;;  %809 = vst.msk [vmem:[#allocation2] sm:$0xf] (!%p263_p2), %vm808_vm5, %v2514_v2 }
   0x9   : > { %787 = vperm.xlu1 (!%p263_p2), %2455, %v783_v1   ;;  %771 = vperm.xlu0 (!%p263_p2), %2454, %v767_v4   ;;  %v1993_v35 = vld [vmem:[%s3072_s7 + $0x8] sm:$0xff] (!%p263_p2)  ;;  %811 = vst.msk [vmem:[#allocation2 + $0x8] sm:$0xf] (!%p263_p2), %vm808_vm5, %v2514_v2  ;;  %812 = vst.msk [vmem:[#allocation2 + $0xc] sm:$0xf] (!%p263_p2), %vm808_vm5, %v2514_v2  ;;  %vm1112_vm14 = vcmask (!%p263_p2), 130048  }
   0xa   : > { %813 = vst.msk [vmem:[#allocation2 + $0x10] sm:$0xf] (!%p263_p2), %vm808_vm5, %v2514_v2  ;;  %814 = vst.msk [vmem:[#allocation2 + $0x14] sm:$0xf] (!%p263_p2), %vm808_vm5, %v2514_v2  ;;  %vm1000_vm9 = vsmask.f32 (!%p263_p2), 7942 }
   0xb   : > { %815 = vst.msk [vmem:[#allocation2 + $0x18] sm:$0xf] (!%p263_p2), %vm808_vm5, %v2514_v2  ;;  %816 = vst.msk [vmem:[#allocation2 + $0x1c] sm:$0xf] (!%p263_p2), %vm808_vm5, %v2514_v2  ;;  %vm886_vm11 = vsmask.f32 (!%p263_p2), 1280 }
   0xc   : > { %817 = vst.msk [vmem:[#allocation2 + $0x20] sm:$0xf] (!%p263_p2), %vm808_vm5, %v2514_v2  ;;  %818 = vst.msk [vmem:[#allocation2 + $0x24] sm:$0xf] (!%p263_p2), %vm808_vm5, %v2514_v2  ;;  %vm887_vm12 = vsmask.f32 (!%p263_p2), 5392 }
   0xd   : > { %s3077_s28 = smov (!%p296_p3, %s2066_s28), 1  ;;  %792 = vperm.xlu1 %2455, %v784_v3   ;;  %776 = vperm.xlu0 %2454, %v768_v34   ;;  %819 = vst.msk [vmem:[#allocation2 + $0x28] sm:$0xf] %vm808_vm5, %v2514_v2  ;;  %820 = vst.msk [vmem:[#allocation2 + $0x2c] sm:$0xf] %vm808_vm5, %v2514_v2  ;;  %vm1014_vm15 = vcmask 123904  }
   0xe   : > { %s2442_s29 = smul.u32 52, %s3077_s28  ;;  %821 = vst.msk [vmem:[#allocation2 + $0x30] sm:$0xf] %vm808_vm5, %v2514_v2  ;;  %vm1001_vm10 = vmand %vm999_vm8, %vm1000_vm9  ;;  %s2171_s15 = sshll.u32 %s3077_s28, 4 }
   0xf   : > { %vm2745_vm13 = vmor %vm886_vm11, %vm887_vm12  ;;  %s305_s18 = scalar_lea.vmem %s3073_s8, %s2171_s15 }
  0x10   : > { %s2583_s12 = scalar_lea.vmem %s3065_s0, %s2442_s29 }
  0x11   : > { %v2456_v5 = vld [vmem:[%s2583_s12] sm:$0xff]   ;;  %v2457_v6 = vld [vmem:[%s2583_s12 + $0x8] sm:$0xff]   ;;  %v2458_v10 = vld [vmem:[%s2583_s12 + $0x10] sm:$0xff]   ;;  %1980 = vperm.xlu1 %2455, %v1976_v16  }
  0x12   : > { %v469_v7 = vsel %vm401_vm1, %v2456_v5, 0  ;;  %v358_v8 = vshrl.u32 %v2456_v5, 16  ;;  %v360_v9 = vshll.u32 %v2456_v5, 16  ;;  %v365_v11 = vshll.u32 %v2457_v6, 16  ;;  %v2459_v22 = vld [vmem:[%s2583_s12 + $0x18] sm:$0xff]   ;;  %v2460_v33 = vld [vmem:[%s2583_s12 + $0x20] sm:$0xff]  }
  0x13   : > { %2275 = vmatpush3.bf16.xpose.msra.mxu1 %v469_v7  ;;  %v369_v13 = vshrl.u32 %v2457_v6, 16  ;;  %v373_v14 = vshll.u32 %v2458_v10, 16  ;;  %v471_v19 = vsel %vm401_vm1, %v2457_v6, 0  ;;  %v377_v26 = vshrl.u32 %v2458_v10, 16  ;;  %v2624_v36 = vld [vmem:[%s2583_s12 + $0x4] sm:$0xfe]  }
  0x14   : > { %v362_v12 = vrot.slane %v360_v9, 1  ;;  %2276 = vmatprep.subr.bf16.mxu1 %v2512_v0  ;;  %v367_v15 = vrot.slane %v365_v11, 1  ;;  %v381_v27 = vshll.u32 %v2459_v22, 16  ;;  %v473_v30 = vsel %vm401_vm1, %v2458_v10, 0  ;;  %v2627_v37 = vld [vmem:[%s2583_s12 + $0xc] sm:$0xff]   ;;  %v2641_v54 = vld [vmem:[%s2583_s12 + $0x14] sm:$0xff]  }
  0x15   : > { %v375_v21 = vrot.slane %v373_v14, 1  ;;  %1985 = vperm.xlu1 %2455, %v1977_v24   ;;  %v385_v39 = vshrl.u32 %v2459_v22, 16  ;;  %v389_v40 = vshll.u32 %v2460_v33, 16  ;;  %v2461_v41 = vld [vmem:[%s2583_s12 + $0x28] ss:$0 sps:$4 sm:$0x11]  }
  0x16   : > { %v363_v17 = vor.u32 %v362_v12, %v358_v8  ;;  %v371_v20 = vor.u32 %v369_v13, %v367_v15  ;;  %v383_v32 = vrot.slane %v381_v27, 1  ;;  %v654_v42 = vshrl.u32 %v2624_v36, 16  ;;  %v2467_v8 = vld [vmem:[%s2583_s12 + $0x1c] sm:$0xff]  }
  0x17   : > { %v379_v31 = vor.u32 %v377_v26, %v375_v21  ;;  %v662_v43 = vshrl.u32 %v2627_v37, 16  ;;  %v475_v45 = vsel %vm401_vm1, %v2459_v22, 0  ;;  %v391_v47 = vrot.slane %v389_v40, 1  ;;  %v2463_v9 = vld [vmem:[%s3066_s1] sm:$0xff]  }
  0x18   : > { %v368_v18 = vsel %vm356_vm2, %v363_v17, %v367_v15  ;;  %v376_v25 = vsel %vm356_vm2, %v371_v20, %v375_v21  ;;  %v387_v46 = vor.u32 %v385_v39, %v383_v32  ;;  %v393_v48 = vshrl.u32 %v2460_v33, 16  ;;  %v2468_v22 = vld [vmem:[%s2583_s12 + $0x24] sm:$0xff]  }
  0x19   : > { %v406_v23 = vsel %vm401_vm1, %v368_v18, 0  ;;  %v409_v28 = vsel %vm401_vm1, %v376_v25, 0  ;;  %1996 = vperm.xlu1 %2455, %v1992_v29   ;;  %v384_v38 = vsel %vm356_vm2, %v379_v31, %v383_v32  ;;  %v397_v49 = vshll.u32 %v2461_v41, 16  ;;  %v2462_v18 = vld [vmem:[%s3066_s1 + $0x8] sm:$0xff]  }
  0x1a   : > { %2261 = vmatpush3.bf16.xpose.msra.mxu0 %v406_v23  ;;  %v412_v44 = vsel %vm401_vm1, %v384_v38, 0  ;;  %v657_v50 = vshll.u32 %v2624_v36, 16  ;;  %v665_v51 = vshll.u32 %v2627_v37, 16  ;;  %v656_v52 = vrot.slane %v654_v42, 1 }
  0x1b   : > { %2262 = vmatprep.subr.bf16.mxu0 %v2512_v0  ;;  %2277 = vmatpush3.bf16.xpose.msra.mxu1 %v471_v19  ;;  %v664_v53 = vrot.slane %v662_v43, 1  ;;  %v392_v55 = vsel %vm356_vm2, %v387_v46, %v391_v47  ;;  %v477_v59 = vsel %vm401_vm1, %v2460_v33, 0  ;;  %v395_v60 = vor.u32 %v393_v48, %v391_v47  ;;  %v2469_v33 = vld [vmem:[%s2583_s12 + $0x2c] ss:$0 sps:$4 sm:$0x33]  }
  0x1c   : > { %2278 = vmatprep.subr.bf16.mxu1 %v2512_v0  ;;  %v659_v56 = vrot.slane %v657_v50, 2  ;;  %v667_v57 = vrot.slane %v665_v51, 2  ;;  %v415_v58 = vsel %vm401_vm1, %v392_v55, 0  ;;  %v399_v61 = vrot.slane %v397_v49, 1  ;;  %v2471_v55 = vld [vmem:[%s3066_s1 + $0x18] sm:$0xff]  }
  0x1d   : > { %2001 = vperm.xlu1 %2455, %v1993_v35   ;;  %v671_v1 = vshrl.u32 %v2641_v54, 16  ;;  %v674_v3 = vshll.u32 %v2641_v54, 16  ;;  %v568_v12 = vrot.slane %v2624_v36, 1  ;;  %v569_v13 = vrot.slane %v2627_v37, 1 }
  0x1e   : > { %v660_v62 = vor.u32 %v659_v56, %v656_v52  ;;  %v668_v63 = vor.u32 %v667_v57, %v664_v53  ;;  %v400_v4 = vsel %vm356_vm2, %v395_v60, %v399_v61  ;;  %v680_v15 = vshrl.u32 %v2467_v8, 16  ;;  %v2470_v49 = vld [vmem:[%s2583_s12 + $0x2c] ss:$0 sps:$4 sm:$0x11]   ;;  %v2472_v57 = vld [vmem:[%s3066_s1 + $0x10] sm:$0xff]  }
  0x1f   : > { %v673_v6 = vrot.slane %v671_v1, 1  ;;  %v676_v7 = vrot.slane %v674_v3, 2  ;;  %v418_v10 = vsel %vm401_vm1, %v400_v4, 0  ;;  %v683_v16 = vshll.u32 %v2467_v8, 16 }
  0x20   : > { %v669_v5 = vsel %vm652_vm3, %v660_v62, %v668_v63  ;;  %v570_v17 = vsel %vm567_vm4, %v568_v12, %v569_v13  ;;  %v682_v20 = vrot.slane %v680_v15, 1  ;;  %v571_v25 = vrot.slane %v2641_v54, 1 }
  0x21   : > { %v710_v11 = vsel %vm401_vm1, %v669_v5, 0  ;;  %v677_v14 = vor.u32 %v676_v7, %v673_v6  ;;  %v685_v21 = vrot.slane %v683_v16, 2  ;;  %v583_v23 = vsel %vm401_vm1, %v570_v17, 0 }
  0x22   : > { %2263 = vmatpush3.bf16.xpose.msra.mxu0 %v409_v28  ;;  %v689_v27 = vshrl.u32 %v2468_v22, 16  ;;  %v692_v28 = vshll.u32 %v2468_v22, 16  ;;  %v572_v29 = vsel %vm567_vm4, %v569_v13, %v571_v25  ;;  %v573_v36 = vrot.slane %v2467_v8, 1 }
  0x23   : > { %2264 = vmatprep.subr.bf16.mxu0 %v2512_v0  ;;  %2279 = vmatpush3.bf16.xpose.msra.mxu1 %v473_v30  ;;  %v678_v19 = vsel %vm652_vm3, %v668_v63, %v677_v14  ;;  %v686_v26 = vor.u32 %v685_v21, %v682_v20  ;;  %v586_v34 = vsel %vm401_vm1, %v572_v29, 0  ;;  %v698_v38 = vshrl.u32 %v2469_v33, 16 }
  0x24   : > { %2280 = vmatprep.subr.bf16.mxu1 %v2512_v0  ;;  %v713_v24 = vsel %vm401_vm1, %v678_v19, 0  ;;  %v691_v31 = vrot.slane %v689_v27, 1  ;;  %v694_v32 = vrot.slane %v692_v28, 2  ;;  %v701_v39 = vshll.u32 %v2469_v33, 16 }
  0x25   : > { %v687_v30 = vsel %vm652_vm3, %v677_v14, %v686_v26  ;;  %v574_v40 = vsel %vm567_vm4, %v571_v25, %v573_v36  ;;  %v700_v42 = vrot.slane %v698_v38, 1  ;;  %v575_v46 = vrot.slane %v2468_v22, 1  ;;  %v1002_v38 = vld [vmem:[#allocation2 + $0x4] sm:$0xe] }
  0x26   : > { %v716_v35 = vsel %vm401_vm1, %v687_v30, 0  ;;  %v695_v37 = vor.u32 %v694_v32, %v691_v31  ;;  %v703_v43 = vrot.slane %v701_v39, 2  ;;  %v577_v53 = vrot.slane %v2470_v49, 1 }
  0x27   : > { %v576_v48 = vsel %vm567_vm4, %v573_v36, %v575_v46 }
  0x28   : > { %v696_v41 = vsel %vm652_vm3, %v686_v26, %v695_v37  ;;  %v704_v47 = vor.u32 %v703_v43, %v700_v42  ;;  %v592_v51 = vsel %vm401_vm1, %v576_v48, 0  ;;  %v578_v54 = vsel %vm567_vm4, %v575_v46, %v577_v53 }
  0x29   : > { %v595_v56 = vsel %vm401_vm1, %v578_v54, 0 }
  0x2a   : > { %2265 = vmatpush3.bf16.xpose.msra.mxu0 %v412_v44  ;;  %v589_v44 = vsel %vm401_vm1, %v574_v40, 0  ;;  %v705_v50 = vsel %vm652_vm3, %v695_v37, %v704_v47 }
  0x2b   : > { %2266 = vmatprep.subr.bf16.mxu0 %v2512_v0  ;;  %2281 = vmatpush3.bf16.xpose.msra.mxu1 %v475_v45  ;;  %v719_v45 = vsel %vm401_vm1, %v696_v41, 0  ;;  %v722_v52 = vsel %vm401_vm1, %v705_v50, 0 }
  0x2c   : > { %2282 = vmatprep.subr.bf16.mxu1 %v2512_v0 }
  0x32   : > { %2267 = vmatpush3.bf16.xpose.msra.mxu0 %v415_v58 }
  0x33   : > { %2268 = vmatprep.subr.bf16.mxu0 %v2512_v0  ;;  %2283 = vmatpush3.bf16.xpose.msra.mxu1 %v477_v59 }
  0x34   : > { %2302 = vmatprep.subr.bf16.mxu1 %v2512_v0 }
  0x3a   : > { %2269 = vmatpush3.bf16.xpose.msra.mxu0 %v418_v10  ;;  %2285 = vmatmul.mubr.msk.bf16.vlgmr.msra.gmra.mrb[0].mxu1 %vm401_vm1, %v2463_v9 }
  0x3b   : > { %2288 = vmatprep.subr.bf16.mxu0 %v2512_v0  ;;  %2303 = vmatpush3.bf16.xpose.msra.mxu1 %v710_v11 }
  0x3c   : > { %2304 = vmatprep.subr.bf16.mxu1 %v2512_v0  ;;  %2312 = vmatprep.mubr.msk.bf16.mxu1 %vm2513_vm0, %v2512_v0 }
  0x41   : > { %2271 = vmatmul.mubr.msk.bf16.vlgmr.msra.gmra.mrb[0].mxu0 %vm401_vm1, %v2462_v18 }
  0x42   : > { %2289 = vmatpush3.bf16.xpose.msra.mxu0 %v583_v23  ;;  %2298 = vmatprep.mubr.msk.bf16.mxu0 %vm2513_vm0, %v2512_v0  ;;  %v2101_v23 = vld [vmem:[%s3069_s4] ss:$0 sm:$0xff] }
  0x43   : > { %2290 = vmatprep.subr.bf16.mxu0 %v2512_v0  ;;  %2305 = vmatpush3.bf16.xpose.msra.mxu1 %v713_v24 }
  0x44   : > { %2306 = vmatprep.subr.bf16.mxu1 %v2512_v0 }
  0x4a   : > { %2291 = vmatpush3.bf16.xpose.msra.mxu0 %v586_v34 }
  0x4b   : > { %2292 = vmatprep.subr.bf16.mxu0 %v2512_v0  ;;  %2307 = vmatpush3.bf16.xpose.msra.mxu1 %v716_v35 }
  0x4c   : > { %2308 = vmatprep.subr.bf16.mxu1 %v2512_v0 }
  0x52   : > { %2293 = vmatpush3.bf16.xpose.msra.mxu0 %v589_v44 }
  0x53   : > { %2294 = vmatprep.subr.bf16.mxu0 %v2512_v0  ;;  %2309 = vmatpush3.bf16.xpose.msra.mxu1 %v719_v45 }
  0x54   : > { %2310 = vmatprep.subr.bf16.mxu1 %v2512_v0 }
  0x5a   : > { %2295 = vmatpush3.bf16.xpose.msra.mxu0 %v592_v51 }
  0x5b   : > { %2296 = vmatprep.subr.bf16.mxu0 %v2512_v0  ;;  %2311 = vmatpush3.bf16.xpose.msra.mxu1 %v722_v52 }
  0x5c   : > { %2330 = vmatprep.subr.bf16.mxu1 %v2512_v0 }
  0x62   : > { %2297 = vmatpush3.bf16.xpose.msra.mxu0 %v595_v56  ;;  %2313 = vmatmul.mubr.msk.bf16.vlgmr.msra.gmra.mrb[4].mxu1 %vm401_vm1, %v2471_v55 }
  0x63   : > { %2316 = vmatprep.subr.bf16.mxu0 %v2512_v0  ;;  %2340 = vmatprep.mubr.msk.bf16.mxu1 %vm2513_vm0, %v2512_v0 }
  0x69   : > { %2299 = vmatmul.mubr.msk.bf16.vlgmr.msra.gmra.mrb[4].mxu0 %vm401_vm1, %v2472_v57  ;;  %vm1015_vm1 = vmand %vm1014_vm15, %vm886_vm11 }
  0x6a   : > { %2326 = vmatprep.mubr.msk.bf16.mxu0 %vm2513_vm0, %v2512_v0 }
  0x88   : > { %v772_v10 = vpop.permute.xlu0 %771  ;;  %v788_v14 = vpop.permute.xlu1 %787 }
  0x8c   : > { %v777_v20 = vpop.permute.xlu0 %776  ;;  %v793_v24 = vpop.permute.xlu1 %792 }
 0x10d   : > { %v513_v58 = vpop.f32.mrb[0].mxu1 }
 0x10e   : > { %v2286_v59 = vpop.f32.mrb[1].mxu1 }
 0x10f   : > { %v516_v60 = vpop.f32.mrb[2].mxu1  ;;  %v1019_v59 = vld [vmem:[#allocation2] sm:$0xf] }
 0x110   : > { %v2287_v61 = vpop.f32.mrb[3].mxu1 }
 0x114   : > { %v454_v62 = vpop.f32.mrb[0].mxu0 }
 0x115   : > { %v514_v63 = vadd.f32 %v513_v58, %v454_v62  ;;  %v2272_v1 = vpop.f32.mrb[1].mxu0 }
 0x116   : > { %v457_v3 = vpop.f32.mrb[2].mxu0 }
 0x117   : > { %v517_v4 = vadd.f32 %v516_v60, %v457_v3  ;;  %v2273_v5 = vpop.f32.mrb[3].mxu0 }
 0x135   : > { %v758_v6 = vpop.f32.mrb[4].mxu1 }
 0x136   : > { %v2314_v7 = vpop.f32.mrb[5].mxu1 }
 0x137   : > { %v761_v8 = vpop.f32.mrb[6].mxu1 }
 0x138   : > { %v2315_v9 = vpop.f32.mrb[7].mxu1 }
 0x13c   : > { %v631_v11 = vpop.f32.mrb[4].mxu0 }
 0x13d   : > { %v638_v12 = vadd.f32 %v631_v11, %v514_v63  ;;  %v2300_v13 = vpop.f32.mrb[5].mxu0 }
 0x13e   : > { %v634_v2 = vpop.f32.mrb[6].mxu0 }
 0x13f   : > { %v765_v15 = vadd.f32 %v758_v6, %v638_v12  ;;  %v639_v16 = vadd.f32 %v634_v2, %v517_v4  ;;  %v2301_v17 = vpop.f32.mrb[7].mxu0 }
 0x141   : > { %v779_v18 = vadd.f32 %v772_v10, %v765_v15  ;;  %v766_v19 = vadd.f32 %v761_v8, %v639_v16 }
 0x143   : > { %v795_v21 = vmul.f32 %v788_v14, %v779_v18  ;;  %v780_v22 = vadd.f32 %v777_v20, %v766_v19  ;;  %vm781_vm6 = vcmp.gt.f32.partialorder %v779_v18, 0.0 }
 0x145   : > { %vm782_vm7 = vcmp.gt.f32.partialorder %v780_v22, 0.0  ;;  %v796_v25 = vmul.f32 %v793_v24, %v780_v22  ;;  %v797_v26 = vsel %vm781_vm6, %v779_v18, %v795_v21 }
 0x146   : > { %v806_v27 = vmul.f32 %v2101_v23, %v797_v26 }
 0x147   : > { %v798_v28 = vsel %vm782_vm7, %v780_v22, %v796_v25 }
 0x148   : > { %824 = vxpose.xlu0.b32.start [1/2] (short) (narrow) %v806_v27, 80  ;;  %v807_v29 = vmul.f32 %v2101_v23, %v798_v28 }
 0x14c   : > { %825 = vxpose.xlu0.b32.end [2/2] (short) (narrow) %v807_v29, 80 }
 0x1c8   : > { %v840_v30 = vpop.trf.xlu0 }
 0x1c9   : > { %v2172_v31 = vpack.c.bf16 %v840_v30, %v840_v30 }
 0x1cb   : > { %v890_v32 = vshrl.u32 %v2172_v31, 16  ;;  %v893_v33 = vshll.u32 %v2172_v31, 16 }
 0x1cc   : > { %v841_v34 = vpop.trf.xlu0 }
 0x1cd   : > { %v892_v35 = vrot.slane %v890_v32, 6  ;;  %v895_v36 = vrot.slane %v893_v33, 7  ;;  %v2173_v37 = vpack.c.bf16 %v841_v34, %v841_v34 }
 0x1cf   : > { %v896_v39 = vor.u32 %v895_v36, %v892_v35  ;;  %v899_v40 = vshrl.u32 %v2173_v37, 16  ;;  %v902_v41 = vshll.u32 %v2173_v37, 16 }
 0x1d0   : > { %v842_v42 = vpop.trf.xlu0 }
 0x1d1   : > { %v1003_v43 = vsel %vm1001_vm10, %v896_v39, %v1002_v38  ;;  %v901_v44 = vrot.slane %v899_v40, 6  ;;  %v904_v45 = vrot.slane %v902_v41, 7  ;;  %v2174_v47 = vpack.c.bf16 %v842_v42, %v842_v42 }
 0x1d2   : > { %1004 = vst [vmem:[#allocation2 + $0x4] sm:$0xe] %v1003_v43  ;;  %v897_v48 = vrot.slane %v896_v39, 4 }
 0x1d3   : > { %v905_v49 = vor.u32 %v904_v45, %v901_v44  ;;  %v909_v50 = vshrl.u32 %v2174_v47, 16  ;;  %v912_v51 = vshll.u32 %v2174_v47, 16 }
 0x1d4   : > { %v843_v52 = vpop.trf.xlu0 }
 0x1d5   : > { %v906_v53 = vsel %vm2745_vm13, %v897_v48, %v905_v49  ;;  %v2175_v54 = vpack.c.bf16 %v843_v52, %v843_v52  ;;  %v911_v55 = vrot.slane %v909_v50, 6  ;;  %v914_v56 = vrot.slane %v912_v51, 7 }
 0x1d6   : > { %1005 = vst.msk [vmem:[#allocation2 + $0x8] sm:$0xf] %vm808_vm5, %v906_v53  ;;  %v907_v60 = vrot.slane %v905_v49, 4 }
 0x1d7   : > { %v919_v57 = vshrl.u32 %v2175_v54, 16  ;;  %v922_v58 = vshll.u32 %v2175_v54, 16  ;;  %v915_v61 = vor.u32 %v914_v56, %v911_v55 }
 0x1d8   : > { %v844_v62 = vpop.trf.xlu0 }
 0x1d9   : > { %v921_v63 = vrot.slane %v919_v57, 6  ;;  %v924_v1 = vrot.slane %v922_v58, 7  ;;  %v2176_v3 = vpack.c.bf16 %v844_v62, %v844_v62  ;;  %v2752_v4 = vld [vmem:[#allocation2 + $0x4] sm:$0xf]  ;;  %v916_v5 = vsel %vm2745_vm13, %v907_v60, %v915_v61 }
 0x1da   : > { %v2115_v6 = vcombine.low %v1019_v59, %v2752_v4  ;;  %v917_v7 = vrot.slane %v915_v61, 4  ;;  %1006 = vst.msk [vmem:[#allocation2 + $0xc] sm:$0xf] %vm808_vm5, %v916_v5 }
 0x1db   : > { %v925_v8 = vor.u32 %v924_v1, %v921_v63  ;;  %v929_v9 = vshrl.u32 %v2176_v3, 16  ;;  %v932_v10 = vshll.u32 %v2176_v3, 16 }
 0x1dc   : > { %v845_v11 = vpop.trf.xlu0  ;;  %v1180_v12 = vsel %vm1112_vm14, %v2115_v6, 0  ;;  %v1071_v16 = vshll.u32 %v2115_v6, 16  ;;  %v1069_v30 = vshrl.u32 %v2115_v6, 16 }
 0x1dd   : > { %v926_v13 = vsel %vm2745_vm13, %v917_v7, %v925_v8  ;;  %v931_v14 = vrot.slane %v929_v9, 6  ;;  %v934_v2 = vrot.slane %v932_v10, 7  ;;  %2331 = vmatpush3.bf16.xpose.msra.mxu1 %v1180_v12  ;;  %v2177_v15 = vpack.c.bf16 %v845_v11, %v845_v11 }
 0x1de   : > { %1007 = vst.msk [vmem:[#allocation2 + $0x10] sm:$0xf] %vm808_vm5, %v926_v13  ;;  %2332 = vmatprep.subr.bf16.mxu1 %v2512_v0  ;;  %v927_v17 = vrot.slane %v925_v8, 4  ;;  %v1073_v27 = vrot.slane %v1071_v16, 1 }
 0x1df   : > { %v935_v18 = vor.u32 %v934_v2, %v931_v14  ;;  %v939_v19 = vshrl.u32 %v2177_v15, 16  ;;  %v942_v20 = vshll.u32 %v2177_v15, 16 }
 0x1e0   : > { %v846_v21 = vpop.trf.xlu0  ;;  %v1074_v40 = vor.u32 %v1073_v27, %v1069_v30 }
 0x1e1   : > { %v936_v22 = vsel %vm2745_vm13, %v927_v17, %v935_v18  ;;  %v2178_v23 = vpack.c.bf16 %v846_v21, %v846_v21  ;;  %v941_v24 = vrot.slane %v939_v19, 6  ;;  %v944_v25 = vrot.slane %v942_v20, 7  ;;  %v2766_v26 = vld [vmem:[#allocation2 + $0x8] sm:$0xff]  }
 0x1e2   : > { %1008 = vst.msk [vmem:[#allocation2 + $0x14] sm:$0xf] %vm808_vm5, %v936_v22  ;;  %v937_v31 = vrot.slane %v935_v18, 4  ;;  %v1182_v34 = vsel %vm1112_vm14, %v2766_v26, 0  ;;  %v1076_v35 = vshll.u32 %v2766_v26, 16  ;;  %v1080_v55 = vshrl.u32 %v2766_v26, 16 }
 0x1e3   : > { %v949_v28 = vshrl.u32 %v2178_v23, 16  ;;  %v952_v29 = vshll.u32 %v2178_v23, 16  ;;  %v945_v32 = vor.u32 %v944_v25, %v941_v24  ;;  %v1016_v22 = vld [vmem:[#allocation2 + $0x2c] sm:$0x3] }
 0x1e4   : > { %v847_v33 = vpop.trf.xlu0  ;;  %v1078_v41 = vrot.slane %v1076_v35, 1 }
 0x1e5   : > { %v951_v36 = vrot.slane %v949_v28, 6  ;;  %v954_v37 = vrot.slane %v952_v29, 7  ;;  %v2179_v38 = vpack.c.bf16 %v847_v33, %v847_v33  ;;  %2333 = vmatpush3.bf16.xpose.msra.mxu1 %v1182_v34  ;;  %v946_v39 = vsel %vm2745_vm13, %v937_v31, %v945_v32  ;;  %v2810_v31 = vld [vmem:[#allocation2 + $0x8] sm:$0xf]  ;;  %v2812_v33 = vld [vmem:[#allocation2 + $0xc] sm:$0xff]  }
 0x1e6   : > { %2334 = vmatprep.subr.bf16.mxu1 %v2512_v0  ;;  %v947_v42 = vrot.slane %v945_v32, 4  ;;  %1009 = vst.msk [vmem:[#allocation2 + $0x18] sm:$0xf] %vm808_vm5, %v946_v39  ;;  %v1079_v48 = vsel %vm356_vm2, %v1074_v40, %v1078_v41  ;;  %v1082_v3 = vor.u32 %v1080_v55, %v1078_v41  ;;  %v1315_v32 = vld [vmem:[#allocation2 + $0x4] sm:$0xe] }
 0x1e7   : > { %v955_v43 = vor.u32 %v954_v37, %v951_v36  ;;  %v959_v44 = vshrl.u32 %v2179_v38, 16  ;;  %v962_v45 = vshll.u32 %v2179_v38, 16  ;;  %v1117_v54 = vsel %vm1112_vm14, %v1079_v48, 0 }
 0x1e8   : > { %v848_v47 = vpop.trf.xlu0  ;;  %2317 = vmatpush3.bf16.xpose.msra.mxu0 %v1117_v54  ;;  %v2817_v34 = vcombine.low %v1315_v32, %v2810_v31  ;;  %v1363_v38 = vrot.slane %v2812_v33, 1  ;;  %v1458_v32 = vshll.u32 %v2812_v33, 16 }
 0x1e9   : > { %v956_v49 = vsel %vm2745_vm13, %v947_v42, %v955_v43  ;;  %v961_v50 = vrot.slane %v959_v44, 6  ;;  %v964_v51 = vrot.slane %v962_v45, 7  ;;  %v2778_v52 = vld [vmem:[#allocation2 + $0x10] sm:$0xff]   ;;  %v2180_v53 = vpack.c.bf16 %v848_v47, %v848_v47  ;;  %2318 = vmatprep.subr.bf16.mxu0 %v2512_v0  ;;  %v2478_v45 = vld [vmem:[%s3070_s5] sm:$0xff]  }
 0x1ea   : > { %1010 = vst.msk [vmem:[#allocation2 + $0x1c] sm:$0xf] %vm808_vm5, %v956_v49  ;;  %v957_v56 = vrot.slane %v955_v43, 4  ;;  %v1184_v58 = vsel %vm1112_vm14, %v2778_v52, 0  ;;  %v1084_v59 = vshll.u32 %v2778_v52, 16  ;;  %v1088_v17 = vshrl.u32 %v2778_v52, 16 }
 0x1eb   : > { %v965_v57 = vor.u32 %v964_v51, %v961_v50  ;;  %v969_v60 = vshrl.u32 %v2180_v53, 16  ;;  %v972_v61 = vshll.u32 %v2180_v53, 16  ;;  %v1362_v42 = vrot.slane %v2817_v34, 1 }
 0x1ec   : > { %v849_v62 = vpop.trf.xlu0  ;;  %v1086_v5 = vrot.slane %v1084_v59, 1 }
 0x1ed   : > { %v966_v63 = vsel %vm2745_vm13, %v957_v56, %v965_v57  ;;  %v2181_v1 = vpack.c.bf16 %v849_v62, %v849_v62  ;;  %2335 = vmatpush3.bf16.xpose.msra.mxu1 %v1184_v58  ;;  %v971_v6 = vrot.slane %v969_v60, 6  ;;  %v974_v7 = vrot.slane %v972_v61, 7  ;;  %v2836_v49 = vld [vmem:[#allocation2 + $0x14] sm:$0xff]   ;;  %v1231_v56 = vld [vmem:[#allocation2] sm:$0xe] }
 0x1ee   : > { %1011 = vst.msk [vmem:[#allocation2 + $0x20] sm:$0xf] %vm808_vm5, %v966_v63  ;;  %2336 = vmatprep.subr.bf16.mxu1 %v2512_v0  ;;  %v1087_v10 = vsel %vm356_vm2, %v1082_v3, %v1086_v5  ;;  %v967_v11 = vrot.slane %v965_v57, 4  ;;  %v1090_v25 = vor.u32 %v1088_v17, %v1086_v5  ;;  %v1364_v48 = vsel %vm567_vm4, %v1362_v42, %v1363_v38  ;;  %v2483_v5 = vld [vmem:[%s3070_s5 + $0x8] sm:$0xff]  }
 0x1ef   : > { %v979_v8 = vshrl.u32 %v2181_v1, 16  ;;  %v982_v9 = vshll.u32 %v2181_v1, 16  ;;  %v975_v12 = vor.u32 %v974_v7, %v971_v6  ;;  %v1120_v13 = vsel %vm1112_vm14, %v1087_v10, 0 }
 0x1f0   : > { %2319 = vmatpush3.bf16.xpose.msra.mxu0 %v1120_v13  ;;  %v1377_v53 = vsel %vm1112_vm14, %v1364_v48, 0  ;;  %v1365_v55 = vrot.slane %v2836_v49, 1  ;;  %v2127_v59 = vcombine.low %v1231_v56, %v2752_v4  ;;  %v1244_v62 = vrot.slane %v2766_v26, 1 }
 0x1f1   : > { %v981_v14 = vrot.slane %v979_v8, 6  ;;  %v984_v2 = vrot.slane %v982_v9, 7  ;;  %v2793_v15 = vld [vmem:[#allocation2 + $0x18] sm:$0xff]   ;;  %v976_v16 = vsel %vm2745_vm13, %v967_v11, %v975_v12  ;;  %v977_v18 = vrot.slane %v975_v12, 4  ;;  %2320 = vmatprep.subr.bf16.mxu0 %v2512_v0 }
 0x1f2   : > { %1012 = vst.msk [vmem:[#allocation2 + $0x24] sm:$0xf] %vm808_vm5, %v976_v16  ;;  %v1186_v20 = vsel %vm1112_vm14, %v2793_v15, 0  ;;  %v1092_v21 = vshll.u32 %v2793_v15, 16  ;;  %v1096_v36 = vshrl.u32 %v2793_v15, 16  ;;  %v1366_v58 = vsel %vm567_vm4, %v1363_v38, %v1365_v55 }
 0x1f3   : > { %v985_v19 = vor.u32 %v984_v2, %v981_v14  ;;  %v1380_v63 = vsel %vm1112_vm14, %v1366_v58, 0  ;;  %v1243_v1 = vrot.slane %v2127_v59, 1  ;;  %v1246_v8 = vrot.slane %v2778_v52, 1 }
 0x1f4   : > { %v1094_v27 = vrot.slane %v1092_v21, 1  ;;  %v1248_v52 = vrot.slane %v2793_v15, 1 }
 0x1f5   : > { %v986_v23 = vsel %vm2745_vm13, %v977_v18, %v985_v19  ;;  %v987_v24 = vrot.slane %v985_v19, 4  ;;  %2337 = vmatpush3.bf16.xpose.msra.mxu1 %v1186_v20  ;;  %v2849_v60 = vld [vmem:[#allocation2 + $0x1c] sm:$0xff]   ;;  %v1245_v4 = vsel %vm567_vm4, %v1243_v1, %v1244_v62  ;;  %v1247_v11 = vsel %vm567_vm4, %v1244_v62, %v1246_v8  ;;  %v1560_v20 = vld [vmem:[#allocation2 + $0x4] sm:$0xc] }
 0x1f6   : > { %1013 = vst.msk [vmem:[#allocation2 + $0x28] sm:$0xf] %vm808_vm5, %v986_v23  ;;  %2338 = vmatprep.subr.bf16.mxu1 %v2512_v0  ;;  %v1095_v29 = vsel %vm356_vm2, %v1090_v25, %v1094_v27  ;;  %v1098_v40 = vor.u32 %v1096_v36, %v1094_v27  ;;  %v1367_v3 = vrot.slane %v2849_v60, 1  ;;  %v1258_v26 = vsel %vm1112_vm14, %v1245_v4, 0  ;;  %v2487_v27 = vld [vmem:[%s3070_s5 + $0x18] sm:$0xff]  }
 0x1f7   : > { %v1017_v28 = vsel %vm1015_vm1, %v987_v24, %v1016_v22  ;;  %v1123_v30 = vsel %vm1112_vm14, %v1095_v29, 0  ;;  %v1261_v14 = vsel %vm1112_vm14, %v1247_v11, 0  ;;  %v1249_v17 = vsel %vm567_vm4, %v1246_v8, %v1248_v52 }
 0x1f8   : > { %1018 = vst [vmem:[#allocation2 + $0x2c] sm:$0x3] %v1017_v28  ;;  %2321 = vmatpush3.bf16.xpose.msra.mxu0 %v1123_v30  ;;  %v1368_v6 = vsel %vm567_vm4, %v1365_v55, %v1367_v3  ;;  %v1264_v19 = vsel %vm1112_vm14, %v1249_v17, 0  ;;  %v2147_v15 = vcombine.low %v1560_v20, %v2810_v31  ;;  %v1574_v23 = vrot.slane %v2812_v33, 2 }
 0x1f9   : > { %v2814_v46 = vld [vmem:[#allocation2 + $0x20] sm:$0xff]   ;;  %2322 = vmatprep.subr.bf16.mxu0 %v2512_v0  ;;  %v1383_v9 = vsel %vm1112_vm14, %v1368_v6, 0  ;;  %v1455_v31 = vshrl.u32 %v2812_v33, 16  ;;  %v1447_v36 = vshrl.u32 %v2817_v34, 16  ;;  %v1473_v58 = vshrl.u32 %v2849_v60, 16 }
 0x1fa   : > { %v1188_v35 = vsel %vm1112_vm14, %v2814_v46, 0  ;;  %v1100_v37 = vshll.u32 %v2814_v46, 16  ;;  %v1104_v50 = vshrl.u32 %v2814_v46, 16  ;;  %v1250_v21 = vrot.slane %v2814_v46, 1  ;;  %v1645_v6 = vld [vmem:[#allocation2 + $0x8] sm:$0xc] }
 0x1fb   : > { %v1573_v25 = vrot.slane %v2147_v15, 2  ;;  %v1457_v38 = vrot.slane %v1455_v31, 1  ;;  %v1476_v59 = vshll.u32 %v2849_v60, 16  ;;  %v1475_v1 = vrot.slane %v1473_v58, 1 }
 0x1fc   : > { %v1102_v41 = vrot.slane %v1100_v37, 1  ;;  %v1251_v24 = vsel %vm567_vm4, %v1248_v52, %v1250_v21  ;;  %v1450_v37 = vshll.u32 %v2817_v34, 16  ;;  %v1467_v34 = vshll.u32 %v2836_v49, 16 }
 0x1fd   : > { %2339 = vmatpush3.bf16.xpose.msra.mxu1 %v1188_v35  ;;  %v2825_v39 = vld [vmem:[#allocation2 + $0x28] ss:$0 sps:$4 sm:$0x11]   ;;  %v1267_v29 = vsel %vm1112_vm14, %v1251_v24, 0  ;;  %v1576_v35 = vrot.slane %v2836_v49, 2  ;;  %vm2008_vm5 = vcmask 654336  }
 0x1fe   : > { %2358 = vmatprep.subr.bf16.mxu1 %v2512_v0  ;;  %v1108_v43 = vshll.u32 %v2825_v39, 16  ;;  %v1103_v44 = vsel %vm356_vm2, %v1098_v40, %v1102_v41  ;;  %v1106_v54 = vor.u32 %v1104_v50, %v1102_v41  ;;  %v2862_v7 = vld [vmem:[#allocation2 + $0x24] sm:$0xff]   ;;  %v1252_v30 = vrot.slane %v2825_v39, 1 }
 0x1ff   : > { %v1126_v47 = vsel %vm1112_vm14, %v1103_v44, 0  ;;  %v1369_v10 = vrot.slane %v2862_v7, 1  ;;  %v2486_v13 = vld [vmem:[#allocation2 + $0x2c] ss:$0 sps:$4 sm:$0x11]   ;;  %v1460_v39 = vrot.slane %v1458_v32, 2 }
 0x200   : > { %2323 = vmatpush3.bf16.xpose.msra.mxu0 %v1126_v47  ;;  %v1110_v51 = vrot.slane %v1108_v43, 1  ;;  %v1371_v16 = vrot.slane %v2486_v13, 1  ;;  %v1253_v33 = vsel %vm567_vm4, %v1250_v21, %v1252_v30  ;;  %v1449_v41 = vrot.slane %v1447_v36, 1  ;;  %v2490_v4 = vld [vmem:[#allocation2 + $0x2c] ss:$0 sps:$4 sm:$0x33]  }
 0x201   : > { %2324 = vmatprep.subr.bf16.mxu0 %v2512_v0  ;;  %v1370_v12 = vsel %vm567_vm4, %v1367_v3, %v1369_v10  ;;  %v1452_v42 = vrot.slane %v1450_v37, 2  ;;  %v1270_v43 = vsel %vm1112_vm14, %v1253_v33, 0  ;;  %v1461_v44 = vor.u32 %v1460_v39, %v1457_v38  ;;  %v2491_v38 = vld [vmem:[%s3070_s5 + $0x28] sm:$0xff]  }
 0x202   : > { %v1111_v57 = vsel %vm356_vm2, %v1106_v54, %v1110_v51  ;;  %v1386_v2 = vsel %vm1112_vm14, %v1370_v12, 0  ;;  %v1372_v18 = vsel %vm567_vm4, %v1369_v10, %v1371_v16  ;;  %vm1572_vm2 = vcmask 1045504   ;;  %v2489_v51 = vld [vmem:[%s3070_s5 + $0x10] sm:$0xff]  }
 0x203   : > { %v1129_v61 = vsel %vm1112_vm14, %v1111_v57, 0  ;;  %v1389_v22 = vsel %vm1112_vm14, %v1372_v18, 0  ;;  %v1575_v28 = vsel %vm1572_vm2, %v1573_v25, %v1574_v23  ;;  %v1577_v40 = vsel %vm1572_vm2, %v1574_v23, %v1576_v35 }
 0x204   : > { %2341 = vmatmul.mubr.msk.bf16.vlgmr.msra.gmra.mrb[8].mxu1 %vm1112_vm14, %v2478_v45  ;;  %v1588_v46 = vsel %vm1112_vm14, %v1575_v28, 0  ;;  %v1464_v45 = vshrl.u32 %v2836_v49, 16  ;;  %v1591_v47 = vsel %vm1112_vm14, %v1577_v40, 0  ;;  %v1453_v48 = vor.u32 %v1452_v42, %v1449_v41  ;;  %v2965_v42 = vld [vmem:[#allocation2 + $0x20] sm:$0xff]  }
 0x205   : > { %2359 = vmatpush3.bf16.xpose.msra.mxu1 %v1377_v53  ;;  %2368 = vmatprep.mubr.msk.bf16.mxu1 %vm2513_vm0, %v2512_v0  ;;  %v1578_v50 = vrot.slane %v2849_v60, 2  ;;  %v1469_v55 = vrot.slane %v1467_v34, 2  ;;  %v1580_v62 = vrot.slane %v2862_v7, 2  ;;  %v1478_v3 = vrot.slane %v1476_v59, 2 }
 0x206   : > { %2360 = vmatprep.subr.bf16.mxu1 %v2512_v0  ;;  %v1462_v53 = vsel %vm652_vm3, %v1453_v48, %v1461_v44  ;;  %v1466_v54 = vrot.slane %v1464_v45, 1  ;;  %v1482_v11 = vshrl.u32 %v2862_v7, 16  ;;  %v1485_v12 = vshll.u32 %v2862_v7, 16 }
 0x207   : > { %v1579_v49 = vsel %vm1572_vm2, %v1576_v35, %v1578_v50  ;;  %v1503_v56 = vsel %vm1112_vm14, %v1462_v53, 0  ;;  %v1581_v60 = vsel %vm1572_vm2, %v1578_v50, %v1580_v62  ;;  %v1479_v10 = vor.u32 %v1478_v3, %v1475_v1 }
 0x208   : > { %2325 = vmatpush3.bf16.xpose.msra.mxu0 %v1129_v61  ;;  %v1470_v57 = vor.u32 %v1469_v55, %v1466_v54  ;;  %v1594_v61 = vsel %vm1112_vm14, %v1579_v49, 0  ;;  %v1597_v13 = vsel %vm1112_vm14, %v1581_v60, 0  ;;  %v1484_v18 = vrot.slane %v1482_v11, 1  ;;  %v2978_v55 = vld [vmem:[#allocation2 + $0x28] sm:$0xff]  }
 0x209   : > { %2344 = vmatprep.subr.bf16.mxu0 %v2512_v0  ;;  %v1491_v28 = vshrl.u32 %v2490_v4, 16  ;;  %vm1776_vm4 = vsmask.f32 5376  ;;  %v1807_v48 = vshll.u32 %v2965_v42, 16 }
 0x20a   : > { %v1480_v17 = vsel %vm652_vm3, %v1470_v57, %v1479_v10 }
 0x20b   : > { %v1509_v23 = vsel %vm1112_vm14, %v1480_v17, 0  ;;  %v1493_v37 = vrot.slane %v1491_v28, 1  ;;  %v1809_v54 = vrot.slane %v1807_v48, 3  ;;  %v2502_v28 = vld [vmem:[%s3070_s5 + $0x38] sm:$0xff]  }
 0x20d   : > { %2361 = vmatpush3.bf16.xpose.msra.mxu1 %v1380_v63  ;;  %v1471_v63 = vsel %vm652_vm3, %v1461_v44, %v1470_v57 }
 0x20e   : > { %2362 = vmatprep.subr.bf16.mxu1 %v2512_v0  ;;  %v1506_v8 = vsel %vm1112_vm14, %v1471_v63, 0  ;;  %v2495_v63 = vld [vmem:[%s3070_s5 + $0x20] sm:$0xff]  }
 0x20f   : > { %2327 = vmatmul.mubr.msk.bf16.vlgmr.msra.gmra.mrb[8].mxu0 %vm1112_vm14, %v2483_v5  ;;  %v2932_v5 = vld [vmem:[#allocation2 + $0xc] sm:$0xf] }
 0x210   : > { %2345 = vmatpush3.bf16.xpose.msra.mxu0 %v1258_v26  ;;  %2354 = vmatprep.mubr.msk.bf16.mxu0 %vm2513_vm0, %v2512_v0  ;;  %v2935_v26 = vld [vmem:[#allocation2 + $0x10] sm:$0xff]  }
 0x211   : > { %2346 = vmatprep.subr.bf16.mxu0 %v2512_v0  ;;  %v1786_v52 = vshrl.u32 %v2935_v26, 16 }
 0x213   : > { %v1788_v21 = vrot.slane %v1786_v52, 2 }
 0x215   : > { %2363 = vmatpush3.bf16.xpose.msra.mxu1 %v1383_v9  ;;  %v2939_v9 = vcombine.low %v1645_v6, %v2932_v5  ;;  %v2993_v6 = vld [vmem:[#allocation2 + $0x30] ss:$0 sps:$4 sm:$0x77]  }
 0x216   : > { %2364 = vmatprep.subr.bf16.mxu1 %v2512_v0 }
 0x217   : > { %v1778_v16 = vshrl.u32 %v2939_v9, 16  ;;  %v1781_v7 = vshll.u32 %v2939_v9, 16  ;;  %v1692_v58 = vrot.slane %v2939_v9, 2 }
 0x218   : > { %2347 = vmatpush3.bf16.xpose.msra.mxu0 %v1261_v14  ;;  %v1582_v14 = vrot.slane %v2490_v4, 2 }
 0x219   : > { %2348 = vmatprep.subr.bf16.mxu0 %v2512_v0  ;;  %v1780_v24 = vrot.slane %v1778_v16, 2 }
 0x21a   : > { %v1583_v20 = vsel %vm1572_vm2, %v1580_v62, %v1582_v14  ;;  %v1816_v62 = vshll.u32 %v2978_v55, 16 }
 0x21b   : > { %v1600_v30 = vsel %vm1112_vm14, %v1583_v20, 0 }
 0x21d   : > { %2365 = vmatpush3.bf16.xpose.msra.mxu1 %v1386_v2  ;;  %v1789_v2 = vshll.u32 %v2935_v26, 16 }
 0x21e   : > { %2366 = vmatprep.subr.bf16.mxu1 %v2512_v0 }
 0x21f   : > { %v1791_v15 = vrot.slane %v1789_v2, 3 }
 0x220   : > { %2349 = vmatpush3.bf16.xpose.msra.mxu0 %v1264_v19  ;;  %v1487_v19 = vrot.slane %v1485_v12, 2  ;;  %v1822_v12 = vshrl.u32 %v2993_v6, 16 }
 0x221   : > { %2350 = vmatprep.subr.bf16.mxu0 %v2512_v0  ;;  %v1792_v31 = vor.u32 %v1791_v15, %v1788_v21 }
 0x222   : > { %v1488_v25 = vor.u32 %v1487_v19, %v1484_v18  ;;  %v1824_v2 = vrot.slane %v1822_v12, 2  ;;  %v1697_v18 = vrot.slane %v2965_v42, 2 }
 0x224   : > { %v1489_v35 = vsel %vm652_vm3, %v1479_v10, %v1488_v25 }
 0x225   : > { %2367 = vmatpush3.bf16.xpose.msra.mxu1 %v1389_v22  ;;  %v2952_v22 = vld [vmem:[#allocation2 + $0x18] sm:$0xff]  }
 0x226   : > { %2386 = vmatprep.subr.bf16.mxu1 %v2512_v0  ;;  %v1795_v32 = vshrl.u32 %v2952_v22, 16  ;;  %v1695_v9 = vrot.slane %v2952_v22, 2 }
 0x228   : > { %2351 = vmatpush3.bf16.xpose.msra.mxu0 %v1267_v29  ;;  %v1494_v29 = vshll.u32 %v2490_v4, 16  ;;  %v1797_v40 = vrot.slane %v1795_v32, 2  ;;  %v1818_v4 = vrot.slane %v1816_v62, 3  ;;  %v1698_v20 = vsel %vm1572_vm2, %v1695_v9, %v1697_v18  ;;  %v1891_v32 = vld [vmem:[#allocation2 + $0x8] sm:$0x8] }
 0x229   : > { %2352 = vmatprep.subr.bf16.mxu0 %v2512_v0  ;;  %v1713_v15 = vsel %vm1112_vm14, %v1698_v20, 0 }
 0x22a   : > { %v1496_v33 = vrot.slane %v1494_v29, 2 }
 0x22c   : > { %2369 = vmatmul.mubr.msk.bf16.vlgmr.msra.gmra.mrb[12].mxu1 %vm1112_vm14, %v2487_v27  ;;  %v1783_v27 = vrot.slane %v1781_v7, 3  ;;  %v1497_v44 = vor.u32 %v1496_v33, %v1493_v37  ;;  %v2500_v33 = vld [vmem:[%s3070_s5 + $0x30] sm:$0xff]  }
 0x22d   : > { %2387 = vmatpush3.bf16.xpose.msra.mxu1 %v1588_v46  ;;  %2396 = vmatprep.mubr.msk.bf16.mxu1 %vm2513_vm0, %v2512_v0  ;;  %v1798_v46 = vshll.u32 %v2952_v22, 16 }
 0x22e   : > { %2388 = vmatprep.subr.bf16.mxu1 %v2512_v0  ;;  %v1784_v36 = vor.u32 %v1783_v27, %v1780_v24  ;;  %v1498_v50 = vsel %vm652_vm3, %v1488_v25, %v1497_v44  ;;  %v2499_v27 = vld [vmem:[#allocation2 + $0x30] ss:$0 sps:$4 sm:$0x33]   ;;  %vm1903_vm3 = vcmask 1044480  }
 0x22f   : > { %v1800_v41 = vrot.slane %v1798_v46, 3  ;;  %v1515_v49 = vsel %vm1112_vm14, %v1498_v50, 0  ;;  %v2167_v46 = vcombine.low %v1891_v32, %v2932_v5  ;;  %v1907_v5 = vrot.slane %v2952_v22, 3  ;;  %v2503_v50 = vld [vmem:[%s3070_s5 + $0x40] sm:$0xff]  }
 0x230   : > { %2353 = vmatpush3.bf16.xpose.msra.mxu0 %v1270_v43  ;;  %v1793_v39 = vsel %vm1776_vm4, %v1784_v36, %v1792_v31  ;;  %v1512_v43 = vsel %vm1112_vm14, %v1489_v35, 0  ;;  %v1905_v36 = vrot.slane %v2935_v26, 3  ;;  %v1911_v22 = vrot.slane %v2978_v55, 3 }
 0x231   : > { %2372 = vmatprep.subr.bf16.mxu0 %v2512_v0  ;;  %v1834_v45 = vsel %vm1112_vm14, %v1793_v39, 0  ;;  %v1801_v34 = vor.u32 %v1800_v41, %v1797_v40  ;;  %v1904_v37 = vrot.slane %v2167_v46, 3  ;;  %v1909_v41 = vrot.slane %v2965_v42, 3 }
 0x235   : > { %2389 = vmatpush3.bf16.xpose.msra.mxu1 %v1591_v47  ;;  %v1804_v47 = vshrl.u32 %v2965_v42, 16 }
 0x236   : > { %2390 = vmatprep.subr.bf16.mxu1 %v2512_v0 }
 0x237   : > { %2355 = vmatmul.mubr.msk.bf16.vlgmr.msra.gmra.mrb[12].mxu0 %vm1112_vm14, %v2489_v51  ;;  %v1802_v51 = vsel %vm1776_vm4, %v1792_v31, %v1801_v34  ;;  %v1806_v53 = vrot.slane %v1804_v47, 2  ;;  %v1913_v47 = vrot.slane %v2993_v6, 3 }
 0x238   : > { %2373 = vmatpush3.bf16.xpose.msra.mxu0 %v1503_v56  ;;  %2382 = vmatprep.mubr.msk.bf16.mxu0 %vm2513_vm0, %v2512_v0  ;;  %v1693_v56 = vrot.slane %v2935_v26, 2  ;;  %v1837_v57 = vsel %vm1112_vm14, %v1802_v51, 0  ;;  %v1908_v26 = vsel %vm1903_vm3, %v1905_v36, %v1907_v5 }
 0x239   : > { %2374 = vmatprep.subr.bf16.mxu0 %v2512_v0  ;;  %v1810_v59 = vor.u32 %v1809_v54, %v1806_v53  ;;  %v1922_v40 = vsel %vm1112_vm14, %v1908_v26, 0  ;;  %v1914_v42 = vsel %vm1903_vm3, %v1911_v22, %v1913_v47 }
 0x23a   : > { %v1694_v1 = vsel %vm1572_vm2, %v1692_v58, %v1693_v56  ;;  %v1696_v14 = vsel %vm1572_vm2, %v1693_v56, %v1695_v9  ;;  %v1931_v48 = vsel %vm1112_vm14, %v1914_v42, 0 }
 0x23b   : > { %v1811_v3 = vsel %vm1776_vm4, %v1801_v34, %v1810_v59  ;;  %v1710_v17 = vsel %vm1112_vm14, %v1696_v14, 0 }
 0x23c   : > { %v1840_v10 = vsel %vm1112_vm14, %v1811_v3, 0 }
 0x23d   : > { %2391 = vmatpush3.bf16.xpose.msra.mxu1 %v1594_v61  ;;  %v1813_v61 = vshrl.u32 %v2978_v55, 16 }
 0x23e   : > { %2392 = vmatprep.subr.bf16.mxu1 %v2512_v0 }
 0x23f   : > { %v1815_v60 = vrot.slane %v1813_v61, 2 }
 0x240   : > { %2375 = vmatpush3.bf16.xpose.msra.mxu0 %v1506_v8  ;;  %v1707_v8 = vsel %vm1112_vm14, %v1694_v1, 0 }
 0x241   : > { %2376 = vmatprep.subr.bf16.mxu0 %v2512_v0  ;;  %v1819_v11 = vor.u32 %v1818_v4, %v1815_v60 }
 0x243   : > { %v1820_v52 = vsel %vm1776_vm4, %v1810_v59, %v1819_v11 }
 0x244   : > { %v1843_v19 = vsel %vm1112_vm14, %v1820_v52, 0 }
 0x245   : > { %2393 = vmatpush3.bf16.xpose.msra.mxu1 %v1597_v13  ;;  %v1825_v13 = vshll.u32 %v2993_v6, 16 }
 0x246   : > { %2394 = vmatprep.subr.bf16.mxu1 %v2512_v0 }
 0x247   : > { %v1827_v16 = vrot.slane %v1825_v13, 3 }
 0x248   : > { %2377 = vmatpush3.bf16.xpose.msra.mxu0 %v1509_v23  ;;  %v1699_v23 = vrot.slane %v2978_v55, 2 }
 0x249   : > { %2378 = vmatprep.subr.bf16.mxu0 %v2512_v0  ;;  %v1828_v7 = vor.u32 %v1827_v16, %v1824_v2 }
 0x24a   : > { %v1700_v25 = vsel %vm1572_vm2, %v1697_v18, %v1699_v23 }
 0x24b   : > { %v1829_v21 = vsel %vm1776_vm4, %v1819_v11, %v1828_v7  ;;  %v1716_v29 = vsel %vm1112_vm14, %v1700_v25, 0 }
 0x24c   : > { %v1846_v24 = vsel %vm1112_vm14, %v1829_v21, 0 }
 0x24d   : > { %2395 = vmatpush3.bf16.xpose.msra.mxu1 %v1600_v30  ;;  %v1701_v30 = vrot.slane %v2499_v27, 2 }
 0x24e   : > { %2414 = vmatprep.subr.bf16.mxu1 %v2512_v0 }
 0x24f   : > { %v1702_v31 = vsel %vm1572_vm2, %v1699_v23, %v1701_v30 }
 0x250   : > { %2379 = vmatpush3.bf16.xpose.msra.mxu0 %v1512_v43  ;;  %v1719_v35 = vsel %vm1112_vm14, %v1702_v31, 0  ;;  %v1910_v43 = vsel %vm1903_vm3, %v1907_v5, %v1909_v41 }
 0x251   : > { %2380 = vmatprep.subr.bf16.mxu0 %v2512_v0  ;;  %v1925_v44 = vsel %vm1112_vm14, %v1910_v43, 0 }
 0x254   : > { %2397 = vmatmul.mubr.msk.bf16.vlgmr.msra.gmra.mrb[16].mxu1 %vm1112_vm14, %v2491_v38  ;;  %v1906_v38 = vsel %vm1903_vm3, %v1904_v37, %v1905_v36  ;;  %v1981_v36 = vpop.permute.xlu1 %1980 }
 0x255   : > { %2415 = vmatpush3.bf16.xpose.msra.mxu1 %v1834_v45  ;;  %2424 = vmatprep.mubr.msk.bf16.mxu1 %vm2513_vm0, %v2512_v0  ;;  %v1919_v39 = vsel %vm1112_vm14, %v1906_v38, 0  ;;  %v1912_v45 = vsel %vm1903_vm3, %v1909_v41, %v1911_v22 }
 0x256   : > { %2416 = vmatprep.subr.bf16.mxu1 %v2512_v0  ;;  %v1928_v34 = vsel %vm1112_vm14, %v1912_v45, 0 }
 0x258   : > { %2381 = vmatpush3.bf16.xpose.msra.mxu0 %v1515_v49  ;;  %v1986_v37 = vpop.permute.xlu1 %1985 }
 0x259   : > { %2400 = vmatprep.subr.bf16.mxu0 %v2512_v0 }
 0x25d   : > { %2417 = vmatpush3.bf16.xpose.msra.mxu1 %v1837_v57 }
 0x25e   : > { %2418 = vmatprep.subr.bf16.mxu1 %v2512_v0 }
 0x25f   : > { %2383 = vmatmul.mubr.msk.bf16.vlgmr.msra.gmra.mrb[16].mxu0 %vm1112_vm14, %v2495_v63 }
 0x260   : > { %2401 = vmatpush3.bf16.xpose.msra.mxu0 %v1707_v8  ;;  %2410 = vmatprep.mubr.msk.bf16.mxu0 %vm2513_vm0, %v2512_v0 }
 0x261   : > { %2402 = vmatprep.subr.bf16.mxu0 %v2512_v0 }
 0x265   : > { %2419 = vmatpush3.bf16.xpose.msra.mxu1 %v1840_v10 }
 0x266   : > { %2420 = vmatprep.subr.bf16.mxu1 %v2512_v0 }
 0x268   : > { %2403 = vmatpush3.bf16.xpose.msra.mxu0 %v1710_v17 }
 0x269   : > { %2404 = vmatprep.subr.bf16.mxu0 %v2512_v0 }
 0x26d   : > { %2421 = vmatpush3.bf16.xpose.msra.mxu1 %v1843_v19 }
 0x26e   : > { %2422 = vmatprep.subr.bf16.mxu1 %v2512_v0 }
 0x270   : > { %2405 = vmatpush3.bf16.xpose.msra.mxu0 %v1713_v15 }
 0x271   : > { %2406 = vmatprep.subr.bf16.mxu0 %v2512_v0 }
 0x275   : > { %2423 = vmatpush3.bf16.xpose.msra.mxu1 %v1846_v24 }
 0x278   : > { %2407 = vmatpush3.bf16.xpose.msra.mxu0 %v1716_v29 }
 0x279   : > { %2408 = vmatprep.subr.bf16.mxu0 %v2512_v0 }
 0x27c   : > { %2425 = vmatmul.mubr.msk.bf16.vlgmr.msra.gmra.mrb[20].mxu1 %vm1112_vm14, %v2502_v28 }
 0x280   : > { %2409 = vmatpush3.bf16.xpose.msra.mxu0 %v1719_v35 }
 0x281   : > { %2428 = vmatprep.subr.bf16.mxu0 %v2512_v0 }
 0x287   : > { %2411 = vmatmul.mubr.msk.bf16.vlgmr.msra.gmra.mrb[20].mxu0 %vm1112_vm14, %v2500_v33  ;;  %v1997_v33 = vpop.permute.xlu1 %1996 }
 0x288   : > { %2429 = vmatpush3.bf16.xpose.msra.mxu0 %v1919_v39  ;;  %2438 = vmatprep.mubr.msk.bf16.mxu0 %vm2513_vm0, %v2512_v0 }
 0x289   : > { %2430 = vmatprep.subr.bf16.mxu0 %v2512_v0 }
 0x28b   : > { %v2002_v45 = vpop.permute.xlu1 %2001 }
 0x290   : > { %2431 = vmatpush3.bf16.xpose.msra.mxu0 %v1922_v40 }
 0x291   : > { %2432 = vmatprep.subr.bf16.mxu0 %v2512_v0 }
 0x298   : > { %2433 = vmatpush3.bf16.xpose.msra.mxu0 %v1925_v44 }
 0x299   : > { %2434 = vmatprep.subr.bf16.mxu0 %v2512_v0 }
 0x2a0   : > { %2435 = vmatpush3.bf16.xpose.msra.mxu0 %v1928_v34 }
 0x2a1   : > { %2436 = vmatprep.subr.bf16.mxu0 %v2512_v0 }
 0x2a8   : > { %2437 = vmatpush3.bf16.xpose.msra.mxu0 %v1931_v48 }
 0x2af   : > { %2439 = vmatmul.mubr.msk.bf16.vlgmr.msra.gmra.mrb[24].mxu0 %vm1112_vm14, %v2503_v50 }
 0x2d7   : > { %v1224_v51 = vpop.f32.mrb[8].mxu1 }
 0x2d8   : > { %v2342_v53 = vpop.f32.mrb[9].mxu1 }
 0x2d9   : > { %v1227_v54 = vpop.f32.mrb[10].mxu1 }
 0x2da   : > { %v2343_v55 = vpop.f32.mrb[11].mxu1 }
 0x2e2   : > { %v1165_v49 = vpop.f32.mrb[8].mxu0 }
 0x2e3   : > { %v1225_v56 = vadd.f32 %v1224_v51, %v1165_v49  ;;  %v2328_v57 = vpop.f32.mrb[9].mxu0 }
 0x2e4   : > { %v1168_v58 = vpop.f32.mrb[10].mxu0 }
 0x2e5   : > { %v1228_v0 = vadd.f32 %v1227_v54, %v1168_v58  ;;  %v2329_v59 = vpop.f32.mrb[11].mxu0 }
 0x2ff   : > { %v1425_v61 = vpop.f32.mrb[12].mxu1 }
 0x300   : > { %v2370_v62 = vpop.f32.mrb[13].mxu1 }
 0x301   : > { %v1428_v63 = vpop.f32.mrb[14].mxu1 }
 0x302   : > { %v2371_v1 = vpop.f32.mrb[15].mxu1 }
 0x30a   : > { %v1306_v3 = vpop.f32.mrb[12].mxu0 }
 0x30b   : > { %v1313_v60 = vadd.f32 %v1306_v3, %v1225_v56  ;;  %v2356_v4 = vpop.f32.mrb[13].mxu0 }
 0x30c   : > { %v1309_v6 = vpop.f32.mrb[14].mxu0 }
 0x30d   : > { %v1314_v8 = vadd.f32 %v1309_v6, %v1228_v0  ;;  %v1432_v9 = vadd.f32 %v1425_v61, %v1313_v60  ;;  %v2357_v10 = vpop.f32.mrb[15].mxu0 }
 0x30f   : > { %v1433_v11 = vadd.f32 %v1428_v63, %v1314_v8 }
 0x327   : > { %v1636_v12 = vpop.f32.mrb[16].mxu1 }
 0x328   : > { %v2398_v13 = vpop.f32.mrb[17].mxu1 }
 0x329   : > { %v1639_v14 = vpop.f32.mrb[18].mxu1 }
 0x32a   : > { %v2399_v52 = vpop.f32.mrb[19].mxu1 }
 0x332   : > { %v1551_v2 = vpop.f32.mrb[16].mxu0 }
 0x333   : > { %v1558_v16 = vadd.f32 %v1551_v2, %v1432_v9  ;;  %v2384_v17 = vpop.f32.mrb[17].mxu0 }
 0x334   : > { %v1554_v18 = vpop.f32.mrb[18].mxu0 }
 0x335   : > { %v1559_v19 = vadd.f32 %v1554_v18, %v1433_v11  ;;  %v1643_v7 = vadd.f32 %v1636_v12, %v1558_v16  ;;  %v2385_v20 = vpop.f32.mrb[19].mxu0 }
 0x337   : > { %v1644_v21 = vadd.f32 %v1639_v14, %v1559_v19 }
 0x34f   : > { %v1882_v15 = vpop.f32.mrb[20].mxu1 }
 0x350   : > { %v2426_v23 = vpop.f32.mrb[21].mxu1 }
 0x351   : > { %v1885_v24 = vpop.f32.mrb[22].mxu1 }
 0x352   : > { %v2427_v25 = vpop.f32.mrb[23].mxu1 }
 0x35a   : > { %v1755_v27 = vpop.f32.mrb[20].mxu0 }
 0x35b   : > { %v1762_v28 = vadd.f32 %v1755_v27, %v1643_v7  ;;  %v2412_v29 = vpop.f32.mrb[21].mxu0 }
 0x35c   : > { %v1758_v30 = vpop.f32.mrb[22].mxu0 }
 0x35d   : > { %v1763_v31 = vadd.f32 %v1758_v30, %v1644_v21  ;;  %v1889_v32 = vadd.f32 %v1882_v15, %v1762_v28  ;;  %v2413_v46 = vpop.f32.mrb[23].mxu0 }
 0x35f   : > { %v1890_v35 = vadd.f32 %v1885_v24, %v1763_v31 }
 0x382   : > { %v1967_v38 = vpop.f32.mrb[24].mxu0 }
 0x383   : > { %v1974_v39 = vadd.f32 %v1967_v38, %v1889_v32  ;;  %v2440_v5 = vpop.f32.mrb[25].mxu0 }
 0x384   : > { %v1970_v26 = vpop.f32.mrb[26].mxu0 }
 0x385   : > { %v1988_v40 = vadd.f32 %v1981_v36, %v1974_v39  ;;  %v1975_v41 = vadd.f32 %v1970_v26, %v1890_v35  ;;  %v2441_v43 = vpop.f32.mrb[27].mxu0 }
 0x387   : > { %vm1990_vm0 = vcmp.gt.f32.partialorder %v1988_v40, 0.0  ;;  %v2004_v44 = vmul.f32 %v1997_v33, %v1988_v40  ;;  %v1989_v22 = vadd.f32 %v1986_v37, %v1975_v41 }
 0x389   : > { %v2006_v34 = vsel %vm1990_vm0, %v1988_v40, %v2004_v44  ;;  %vm1991_vm6 = vcmp.gt.f32.partialorder %v1989_v22, 0.0  ;;  %v2005_v47 = vmul.f32 %v2002_v45, %v1989_v22 }
 0x38a   : > { %2009 = vst.msk [vmem:[%s305_s18] sm:$0xff] %vm2008_vm5, %v2006_v34 }
 0x38b   : > { %v2007_v42 = vsel %vm1991_vm6, %v1989_v22, %v2005_v47 }
 0x38c   : > { %2010 = vst.msk [vmem:[%s305_s18 + $0x8] sm:$0xff] %vm2008_vm5, %v2007_v42 }
 0x38d PF: > { %s18_s27 = sadd.s32 1, %s2510_s27  }
 0x38e   : > { %p15_p4 = scmp.ge.s32.totalorder %s18_s27, 4  }
 0x390   :  { %17 = sbr.rel (!%p15_p4) target bundleno = 1 (0x1), region = 93 }

// kernel: backbone_forward.2
= control target key start
LH: loop header
LB: loop body
LE: loop exit
PB: predicated region body
PF: predicated region fallthrough
CT: control target
= control target key end

     0   :  { %s7027_s27 = smov 0   ;;  %s9318_s0 = inlined_call_operand.vmem [shape: bf16[2,342,3], index: 0, kind: input, shape index: {}]   ;;  %s9319_s1 = inlined_call_operand.vmem [shape: bf16[9,8,3], index: 1, kind: input, shape index: {}]   ;;  %s9320_s2 = inlined_call_operand.vmem [shape: f32[8,1], index: 2, kind: input, shape index: {}]   ;;  %s9321_s3 = inlined_call_operand.vmem [shape: f32[8,1], index: 3, kind: input, shape index: {}]   ;;  %s9322_s4 = inlined_call_operand.vmem [shape: f32[1,288], index: 4, kind: input, shape index: {}]   ;;  %s9323_s5 = inlined_call_operand.vmem [shape: bf16[9,8,8], index: 5, kind: input, shape index: {}]   ;;  %s9324_s6 = inlined_call_operand.vmem [shape: f32[8,1], index: 6, kind: input, shape index: {}]   ;;  %s9325_s7 = inlined_call_operand.vmem [shape: f32[8,1], index: 7, kind: input, shape index: {}]   ;;  %s9326_s8 = inlined_call_operand.vmem [shape: f32[2,8,288], index: 8, kind: output, shape index: {}]  }
   0x1 LB: > { %s5826_s28 = sadd.s32 4294967295, %s6977_s27   ;;  %p5830_p0 = scmp.ge.s32.totalorder %s6977_s27, 1  ;;  %s6977_s27 = sphi %s7027_s27, %s18_s27  }
   0x2   : > { %p262_p1 = scmp.lt.s32.totalorder %s6977_s27, 3 }
   0x4   : > { %p263_p2 = pnand %p5830_p0, %p262_p1 }
   0x6   : > { %266 = sbr.rel (%p263_p2) target bundleno = 1469 (0x5bd), region = 52 }
   0xd   : > { %p296_p3 = scmp.lt.s32.totalorder %s5826_s28, 1  ;;  %vm589_vm0 = vcmask 23552   ;;  %v9327_v0 = vmov 0.0   ;;  %vm6980_vm1 = vmmov 0   ;;  %v7041_v1 = vld [vmem:[%s9319_s1 + $0x4] sm:$0xf] }
   0xe   : > { %6461 = vmatprep.subr.bf16.mxu1 %v9327_v0  ;;  %6465 = vmatprep.mubr.msk.bf16.mxu1 %vm6980_vm1, %v9327_v0  ;;  %vm440_vm2 = vsmask.f32 7424  ;;  %vm854_vm3 = vcmask 1046528   ;;  %vm1667_vm4 = vcmask 1045504   ;;  %vm1349_vm5 = vsmask.f32 6400 }
   0xf   : > { %s9431_s28 = smov (!%p296_p3, %s5826_s28), 1  ;;  %6099 = vmatprep.mubr.msk.bf16.mxu0 %vm589_vm0, %v7041_v1  ;;  %vm2162_vm6 = vsmask.f32 5376  ;;  %vm2480_vm7 = vcmask 1044480   ;;  %vm2703_vm8 = vcmask 60416   ;;  %vm3678_vm12 = vcmask 64512  }
  0x10   : > { %s6749_s9 = smul.u32 172, %s9431_s28  ;;  %vm3351_vm13 = vcmask 60417   ;;  %vm3352_vm14 = vsmask.f32 7942  ;;  %vm2952_vm15 = vsmask.f32 1280 }
  0x11   : > { %s6750_s19 = smul.u32 24, %s9431_s28 }
  0x12   : > { %s7051_s12 = scalar_lea.vmem %s9318_s0, %s6749_s9 }
  0x13   : > { %v7054_v2 = vld [vmem:[%s7051_s12 + $0x40] sm:$0xff]   ;;  %v7057_v3 = vld [vmem:[%s7051_s12 + $0x48] sm:$0xff]   ;;  %v7085_v19 = vld [vmem:[%s7051_s12 + $0x50] sm:$0xff]   ;;  %s305_s22 = scalar_lea.vmem %s9326_s8, %s6750_s19 }
  0x14   : > { %v307_v4 = vld [vmem:[%s7051_s12] sm:$0xf]  ;;  %v7061_v5 = vld [vmem:[%s7051_s12 + $0x4] sm:$0xf]  ;;  %v505_v6 = vshll.u32 %v7054_v2, 16  ;;  %v509_v7 = vshrl.u32 %v7054_v2, 16 }
  0x15   : > { %v513_v8 = vshll.u32 %v7057_v3, 16  ;;  %v517_v9 = vshrl.u32 %v7057_v3, 16  ;;  %v7068_v10 = vcombine.low %v307_v4, %v7061_v5  ;;  %v7071_v11 = vld [vmem:[%s7051_s12 + $0x8] sm:$0xff]   ;;  %v7079_v17 = vld [vmem:[%s7051_s12 + $0x80] sm:$0xff]   ;;  %v521_v28 = vshll.u32 %v7085_v19, 16  ;;  %v7094_v29 = vld [vmem:[%s7051_s12 + $0x10] sm:$0xff]  }
  0x16   : > { %v7073_v12 = vrot.slane %v505_v6, 1  ;;  %v449_v16 = vshll.u32 %v7071_v11, 16  ;;  %v7082_v18 = vld [vmem:[%s7051_s12 + $0x88] sm:$0xff]   ;;  %v569_v24 = vshll.u32 %v7079_v17, 16  ;;  %v573_v25 = vshrl.u32 %v7079_v17, 16  ;;  %v7105_v35 = vld [vmem:[%s7051_s12 + $0x58] sm:$0xff]  }
  0x17   : > { %v515_v13 = vrot.slane %v513_v8, 1  ;;  %v442_v14 = vshrl.u32 %v7068_v10, 16  ;;  %v444_v15 = vshll.u32 %v7068_v10, 16  ;;  %v577_v27 = vshll.u32 %v7082_v18, 16  ;;  %v7109_v40 = vld [vmem:[%s7051_s12 + $0x18] sm:$0xff]   ;;  %v7125_v58 = vld [vmem:[%s7051_s12 + $0x60] sm:$0xff]  }
  0x18   : > { %v511_v20 = vor.u32 %v509_v7, %v7073_v12  ;;  %v451_v23 = vrot.slane %v449_v16, 1  ;;  %v453_v30 = vshrl.u32 %v7071_v11, 16  ;;  %v7098_v32 = vrot.slane %v569_v24, 1  ;;  %v7101_v33 = vld [vmem:[%s7051_s12 + $0x90] ss:$0 sps:$4 sm:$0x11]  }
  0x19   : > { %v519_v21 = vor.u32 %v517_v9, %v515_v13  ;;  %v446_v22 = vrot.slane %v444_v15, 1  ;;  %v581_v34 = vshrl.u32 %v7082_v18, 16  ;;  %v579_v36 = vrot.slane %v577_v27, 1  ;;  %v7129_v59 = vld [vmem:[%s7051_s12 + $0x20] sm:$0xff]  }
  0x1a   : > { %v516_v26 = vsel %vm440_vm2, %v511_v20, %v515_v13  ;;  %v523_v37 = vrot.slane %v521_v28, 1  ;;  %v455_v38 = vor.u32 %v453_v30, %v451_v23  ;;  %v457_v39 = vshll.u32 %v7094_v29, 16  ;;  %v7142_v20 = vld [vmem:[%s7051_s12 + $0x68] sm:$0xff]  }
  0x1b   : > { %6605 = vmatprep.subr.msk.bf16.mxu0 %vm589_vm0, %v516_v26  ;;  %v447_v31 = vor.u32 %v446_v22, %v442_v14  ;;  %v575_v42 = vor.u32 %v573_v25, %v7098_v32  ;;  %v585_v43 = vshll.u32 %v7101_v33, 16  ;;  %v525_v44 = vshrl.u32 %v7085_v19, 16 }
  0x1c   : > { %v524_v46 = vsel %vm440_vm2, %v519_v21, %v523_v37  ;;  %v459_v47 = vrot.slane %v457_v39, 1  ;;  %v583_v49 = vor.u32 %v581_v34, %v579_v36  ;;  %v529_v51 = vshll.u32 %v7105_v35, 16  ;;  %v7145_v21 = vld [vmem:[%s7051_s12 + $0x28] sm:$0xff]   ;;  %v7160_v34 = vld [vmem:[%s9319_s1] sm:$0xf]  ;;  %v7169_v39 = vld [vmem:[%s7051_s12 + $0x70] sm:$0xff]  }
  0x1d   : > { %v452_v41 = vsel %vm440_vm2, %v447_v31, %v451_v23  ;;  %v580_v48 = vsel %vm440_vm2, %v575_v42, %v579_v36  ;;  %v587_v50 = vrot.slane %v585_v43, 1  ;;  %v461_v53 = vshrl.u32 %v7094_v29, 16 }
  0x1e   : > { %v594_v45 = vsel %vm589_vm0, %v452_v41, 0  ;;  %v642_v52 = vsel %vm589_vm0, %v580_v48, 0  ;;  %v460_v54 = vsel %vm440_vm2, %v455_v38, %v459_v47  ;;  %v527_v55 = vor.u32 %v525_v44, %v523_v37  ;;  %v848_v38 = vld [vmem:[%s7051_s12] sm:$0xe] }
  0x1f   : > { %6084 = vmatpush3.bf16.xpose.msra.mxu0 %v594_v45  ;;  %6462 = vmatpush3.bf16.xpose.msra.mxu1 %v642_v52  ;;  %v531_v56 = vrot.slane %v529_v51, 1  ;;  %v465_v57 = vshll.u32 %v7109_v40, 16  ;;  %v588_v60 = vsel %vm440_vm2, %v583_v49, %v587_v50  ;;  %v597_v61 = vsel %vm589_vm0, %v460_v54, 0 }
  0x20   : > { %6606 = vmatprep.subr.msk.bf16.mxu0 %vm589_vm0, %v524_v46  ;;  %6463 = vmatprep.subr.bf16.mxu1 %v9327_v0  ;;  %v463_v62 = vor.u32 %v461_v53, %v459_v47  ;;  %v533_v6 = vshrl.u32 %v7105_v35, 16  ;;  %v537_v7 = vshll.u32 %v7125_v58, 16  ;;  %v645_v8 = vsel %vm589_vm0, %v588_v60, 0  ;;  %v7179_v46 = vld [vmem:[%s7051_s12 + $0x30] sm:$0xff]  }
  0x21   : > { %v532_v63 = vsel %vm440_vm2, %v527_v55, %v531_v56  ;;  %v467_v4 = vrot.slane %v465_v57, 1  ;;  %v469_v9 = vshrl.u32 %v7109_v40, 16  ;;  %v473_v13 = vshll.u32 %v7129_v59, 16 }
  0x22   : > { %v535_v15 = vor.u32 %v533_v6, %v531_v56  ;;  %v539_v16 = vrot.slane %v537_v7, 1  ;;  %v541_v25 = vshrl.u32 %v7125_v58, 16  ;;  %v545_v27 = vshll.u32 %v7142_v20, 16 }
  0x23   : > { %v468_v14 = vsel %vm440_vm2, %v463_v62, %v467_v4  ;;  %v471_v22 = vor.u32 %v469_v9, %v467_v4  ;;  %v475_v23 = vrot.slane %v473_v13, 1  ;;  %v481_v28 = vshll.u32 %v7145_v21, 16 }
  0x24   : > { %v600_v24 = vsel %vm589_vm0, %v468_v14, 0  ;;  %v540_v26 = vsel %vm440_vm2, %v535_v15, %v539_v16  ;;  %v731_v30 = vsel %vm589_vm0, %v7068_v10, 0  ;;  %v477_v36 = vshrl.u32 %v7129_v59, 16  ;;  %v7224_v15 = vld [vmem:[%s7051_s12 + $0x78] sm:$0xff]  }
  0x25   : > { %v476_v31 = vsel %vm440_vm2, %v471_v22, %v475_v23  ;;  %v870_v37 = vrot.slane %v7054_v2, 1  ;;  %v543_v10 = vor.u32 %v541_v25, %v539_v16  ;;  %v549_v41 = vshrl.u32 %v7142_v20, 16  ;;  %v7235_v25 = vld [vmem:[%s7051_s12 + $0x38] sm:$0xff]  }
  0x26   : > { %v603_v42 = vsel %vm589_vm0, %v476_v31, 0  ;;  %v547_v43 = vrot.slane %v545_v27, 1  ;;  %v483_v44 = vrot.slane %v481_v28, 1  ;;  %v872_v45 = vrot.slane %v7057_v3, 1 }
  0x27   : > { %6086 = vmatpush3.bf16.xpose.msra.mxu0 %v597_v61  ;;  %6464 = vmatpush3.bf16.xpose.msra.mxu1 %v645_v8  ;;  %v5858_v47 = vcombine.low %v848_v38, %v7061_v5  ;;  %v856_v48 = vrot.slane %v7071_v11, 1  ;;  %v886_v49 = vrot.slane %v7079_v17, 1  ;;  %v479_v50 = vor.u32 %v477_v36, %v475_v23 }
  0x28   : > { %6607 = vmatprep.subr.msk.bf16.mxu0 %vm589_vm0, %v532_v63  ;;  %6613 = vmatprep.subr.msk.bf16.mxu1 %vm589_vm0, %v7054_v2  ;;  %v7187_v51 = vsel %vm854_vm3, %v870_v37, %v872_v45  ;;  %v888_v52 = vrot.slane %v7082_v18, 1  ;;  %v874_v53 = vrot.slane %v7085_v19, 1  ;;  %v858_v55 = vrot.slane %v7094_v29, 1 }
  0x29   : > { %v855_v54 = vrot.slane %v5858_v47, 1  ;;  %v890_v5 = vrot.slane %v7101_v33, 1  ;;  %v548_v56 = vsel %vm440_vm2, %v543_v10, %v547_v43  ;;  %v876_v61 = vrot.slane %v7105_v35, 1 }
  0x2a   : > { %v7198_v57 = vsel %vm854_vm3, %v886_v49, %v888_v52  ;;  %v7201_v60 = vsel %vm854_vm3, %v872_v45, %v874_v53  ;;  %v733_v62 = vsel %vm589_vm0, %v7071_v11, 0  ;;  %v7210_v33 = vsel %vm854_vm3, %v856_v48, %v858_v55 }
  0x2b   : > { %v7207_v63 = vsel %vm854_vm3, %v855_v54, %v856_v48  ;;  %v7213_v4 = vsel %vm854_vm3, %v888_v52, %v890_v5  ;;  %v7216_v6 = vsel %vm854_vm3, %v874_v53, %v876_v61  ;;  %v484_v7 = vsel %vm440_vm2, %v479_v50, %v483_v44 }
  0x2c   : > { %v485_v11 = vshrl.u32 %v7145_v21, 16  ;;  %v489_v8 = vshll.u32 %v7179_v46, 16  ;;  %v860_v9 = vrot.slane %v7109_v40, 1  ;;  %v551_v13 = vor.u32 %v549_v41, %v547_v43 }
  0x2d   : > { %v878_v16 = vrot.slane %v7125_v58, 1  ;;  %v862_v22 = vrot.slane %v7129_v59, 1  ;;  %v606_v28 = vsel %vm589_vm0, %v484_v7, 0  ;;  %v557_v38 = vshrl.u32 %v7169_v39, 16 }
  0x2e   : > { %6466 = vmatmul.mubr.msk.bf16.vlgmr.msra.gmra.mrb[0].mxu1 %vm589_vm0, %v7041_v1  ;;  %v7231_v23 = vsel %vm854_vm3, %v858_v55, %v860_v9  ;;  %v491_v31 = vrot.slane %v489_v8, 1  ;;  %v561_v10 = vshll.u32 %v7224_v15, 16  ;;  %v864_v41 = vrot.slane %v7145_v21, 1 }
  0x2f   : > { %6088 = vmatpush3.bf16.xpose.msra.mxu0 %v600_v24  ;;  %6105 = vmatpush3.bf16.xpose.msra.mxu1 %v731_v30  ;;  %v880_v24 = vrot.slane %v7142_v20, 1  ;;  %v7241_v27 = vsel %vm854_vm3, %v860_v9, %v862_v22  ;;  %v487_v30 = vor.u32 %v485_v11, %v483_v44  ;;  %v882_v43 = vrot.slane %v7169_v39, 1 }
  0x30   : > { %6608 = vmatprep.subr.msk.bf16.mxu0 %vm589_vm0, %v540_v26  ;;  %6120 = vmatprep.mubr.msk.bf16.mxu1 %vm589_vm0, %v7160_v34  ;;  %v7238_v26 = vsel %vm854_vm3, %v876_v61, %v878_v16  ;;  %v866_v45 = vrot.slane %v7179_v46, 1  ;;  %v7256_v44 = vsel %vm854_vm3, %v862_v22, %v864_v41  ;;  %v884_v47 = vrot.slane %v7224_v15, 1 }
  0x31   : > { %6614 = vmatprep.subr.msk.bf16.mxu1 %vm589_vm0, %v7057_v3  ;;  %v553_v3 = vshll.u32 %v7169_v39, 16  ;;  %v7245_v36 = vsel %vm854_vm3, %v878_v16, %v880_v24  ;;  %v492_v48 = vsel %vm440_vm2, %v487_v30, %v491_v31  ;;  %v493_v50 = vshrl.u32 %v7179_v46, 16  ;;  %v1661_v30 = vld [vmem:[%s7051_s12 + $0x8] sm:$0xc] }
  0x32   : > { %v497_v52 = vshll.u32 %v7235_v25, 16  ;;  %v7267_v54 = vsel %vm854_vm3, %v864_v41, %v866_v45  ;;  %v7270_v55 = vsel %vm854_vm3, %v882_v43, %v884_v47  ;;  %v868_v5 = vrot.slane %v7235_v25, 1 }
  0x33   : > { %v555_v14 = vrot.slane %v553_v3, 1  ;;  %v563_v3 = vrot.slane %v561_v10, 1  ;;  %v609_v61 = vsel %vm589_vm0, %v492_v48, 0  ;;  %v565_v9 = vshrl.u32 %v7224_v15, 16  ;;  %v7336_v10 = vld [vmem:[%s7051_s12 + $0x58] sm:$0xff]  }
  0x34   : > { %v7287_v7 = vsel %vm854_vm3, %v868_v5, %v870_v37  ;;  %v499_v8 = vrot.slane %v497_v52, 1  ;;  %v501_v37 = vshrl.u32 %v7235_v25, 16  ;;  %v739_v22 = vsel %vm589_vm0, %v7129_v59, 0  ;;  %v7315_v59 = vld [vmem:[%s7051_s12 + $0x50] sm:$0xff]  }
  0x35   : > { %v559_v53 = vor.u32 %v557_v38, %v555_v14  ;;  %v567_v2 = vor.u32 %v565_v9, %v563_v3  ;;  %v7386_v9 = vld [vmem:[%s7051_s12 + $0x28] sm:$0xff]  }
  0x36   : > { %v503_v16 = vor.u32 %v501_v37, %v499_v8  ;;  %v7404_v37 = vld [vmem:[%s7051_s12 + $0x30] sm:$0xff]  }
  0x37   : > { %6090 = vmatpush3.bf16.xpose.msra.mxu0 %v603_v42  ;;  %6107 = vmatpush3.bf16.xpose.msra.mxu1 %v733_v62  ;;  %v735_v42 = vsel %vm589_vm0, %v7094_v29, 0  ;;  %v7264_v29 = vsel %vm854_vm3, %v880_v24, %v882_v43  ;;  %v7282_v62 = vsel %vm854_vm3, %v866_v45, %v868_v5  ;;  %v564_v11 = vsel %vm440_vm2, %v559_v53, %v563_v3  ;;  %v7341_v43 = vld [vmem:[%s7051_s12 + $0x18] sm:$0xff]  }
  0x38   : > { %6609 = vmatprep.subr.msk.bf16.mxu0 %vm589_vm0, %v548_v56  ;;  %6615 = vmatprep.subr.msk.bf16.mxu1 %vm589_vm0, %v7085_v19  ;;  %v556_v19 = vsel %vm440_vm2, %v551_v13, %v555_v14  ;;  %v7278_v56 = vsel %vm854_vm3, %v884_v47, %v886_v49  ;;  %v737_v49 = vsel %vm589_vm0, %v7109_v40, 0  ;;  %v572_v40 = vsel %vm440_vm2, %v567_v2, %v7098_v32  ;;  %v7310_v32 = vld [vmem:[%s7051_s12 + $0x48] sm:$0xff]  }
  0x39   : > { %v508_v24 = vsel %vm440_vm2, %v503_v16, %v7073_v12  ;;  %v7320_v12 = vld [vmem:[%s7051_s12 + $0xc] sm:$0xf]  ;;  %v743_v47 = vsel %vm589_vm0, %v7179_v46, 0  ;;  %v7366_v46 = vld [vmem:[%s7051_s12 + $0x20] sm:$0xff]   ;;  %v944_v16 = vsel %vm589_vm0, %v7198_v57, 0 }
  0x3a   : > { %v1673_v5 = vrot.slane %v7366_v46, 2  ;;  %v1033_v57 = vld [vmem:[%s7051_s12 + $0x8] sm:$0xe] }
  0x3f   : > { %6092 = vmatpush3.bf16.xpose.msra.mxu0 %v606_v28  ;;  %6109 = vmatpush3.bf16.xpose.msra.mxu1 %v735_v42  ;;  %v741_v28 = vsel %vm589_vm0, %v7145_v21, 0  ;;  %v7328_v21 = vld [vmem:[%s7051_s12 + $0x10] sm:$0xff]   ;;  %v763_v42 = vsel %vm589_vm0, %v7079_v17, 0  ;;  %v7356_v17 = vld [vmem:[%s7051_s12 + $0x60] sm:$0xff]  }
  0x40   : > { %6610 = vmatprep.subr.msk.bf16.mxu0 %vm589_vm0, %v556_v19  ;;  %6616 = vmatprep.subr.msk.bf16.mxu1 %vm589_vm0, %v7105_v35  ;;  %v495_v35 = vor.u32 %v493_v50, %v491_v31  ;;  %v1685_v31 = vrot.slane %v7315_v59, 2  ;;  %v5888_v19 = vcombine.low %v1661_v30, %v7320_v12  ;;  %v1669_v45 = vrot.slane %v7328_v21, 2 }
  0x41   : > { %v1671_v50 = vrot.slane %v7341_v43, 2  ;;  %v1689_v53 = vrot.slane %v7356_v17, 2  ;;  %v1182_v30 = vrot.slane %v7315_v59, 1 }
  0x42   : > { %v500_v13 = vsel %vm440_vm2, %v495_v35, %v499_v8  ;;  %v1668_v41 = vrot.slane %v5888_v19, 2  ;;  %v745_v8 = vsel %vm589_vm0, %v7235_v25, 0  ;;  %v899_v19 = vsel %vm589_vm0, %v7210_v33, 0 }
  0x43   : > { %v612_v14 = vsel %vm589_vm0, %v500_v13, 0  ;;  %v7381_v35 = vsel %vm1667_vm4, %v1671_v50, %v1673_v5  ;;  %v1675_v13 = vrot.slane %v7386_v9, 2 }
  0x44   : > { %v7350_v48 = vsel %vm1667_vm4, %v1668_v41, %v1669_v45 }
  0x45   : > { %v7400_v25 = vsel %vm1667_vm4, %v1673_v5, %v1675_v13  ;;  %v902_v5 = vsel %vm589_vm0, %v7231_v23, 0 }
  0x47   : > { %6094 = vmatpush3.bf16.xpose.msra.mxu0 %v609_v61  ;;  %6111 = vmatpush3.bf16.xpose.msra.mxu1 %v737_v49  ;;  %v765_v61 = vsel %vm589_vm0, %v7082_v18, 0  ;;  %v7392_v49 = vld [vmem:[%s7051_s12 + $0x70] sm:$0xff]  }
  0x48   : > { %6611 = vmatprep.subr.msk.bf16.mxu0 %vm589_vm0, %v564_v11  ;;  %6617 = vmatprep.subr.msk.bf16.mxu1 %vm589_vm0, %v7125_v58  ;;  %v615_v58 = vsel %vm589_vm0, %v508_v24, 0  ;;  %v7378_v11 = vld [vmem:[%s7051_s12 + $0x68] sm:$0xff]   ;;  %v1693_v2 = vrot.slane %v7392_v49, 2  ;;  %v7422_v24 = vld [vmem:[%s7051_s12 + $0x78] sm:$0xff]  }
  0x4f   : > { %6096 = vmatpush3.bf16.xpose.msra.mxu0 %v612_v14  ;;  %6113 = vmatpush3.bf16.xpose.msra.mxu1 %v739_v22  ;;  %v7419_v22 = vld [vmem:[%s9319_s1 + $0x8] sm:$0xf] }
  0x50   : > { %6612 = vmatprep.subr.msk.bf16.mxu0 %vm589_vm0, %v572_v40  ;;  %6618 = vmatprep.subr.msk.bf16.mxu1 %vm589_vm0, %v7142_v20  ;;  %v1683_v20 = vrot.slane %v7310_v32, 2  ;;  %v1677_v40 = vrot.slane %v7404_v37, 2 }
  0x52   : > { %v7333_v38 = vsel %vm1667_vm4, %v1683_v20, %v1685_v31 }
  0x57   : > { %6098 = vmatpush3.bf16.xpose.msra.mxu0 %v615_v58  ;;  %6115 = vmatpush3.bf16.xpose.msra.mxu1 %v741_v28  ;;  %v1695_v58 = vrot.slane %v7422_v24, 2  ;;  %v1180_v28 = vrot.slane %v7310_v32, 1 }
  0x58   : > { %6469 = vmatprep.subr.bf16.mxu0 %v9327_v0  ;;  %6619 = vmatprep.subr.msk.bf16.mxu1 %vm589_vm0, %v7169_v39  ;;  %v1687_v39 = vrot.slane %v7336_v10, 2 }
  0x5a   : > { %v7359_v52 = vsel %vm1667_vm4, %v1685_v31, %v1687_v39  ;;  %v7372_v3 = vsel %vm1667_vm4, %v1687_v39, %v1689_v53  ;;  %v7441_v31 = vcombine.low %v1033_v57, %v7320_v12  ;;  %v1183_v12 = vsel %vm854_vm3, %v1180_v28, %v1182_v30 }
  0x5b   : > { %v1166_v39 = vrot.slane %v7328_v21, 1 }
  0x5e   : > { %6100 = vmatmul.mubr.msk.bf16.vlgmr.msra.gmra.mrb[0].mxu0 %vm589_vm0, %v7041_v1  ;;  %v7363_v1 = vsel %vm1667_vm4, %v1669_v45, %v1671_v50  ;;  %v1165_v45 = vrot.slane %v7441_v31, 1  ;;  %v7468_v50 = vld [vmem:[%s7051_s12 + $0x80] sm:$0xff]  }
  0x5f   : > { %6470 = vmatpush3.bf16.xpose.msra.mxu0 %v763_v42  ;;  %6473 = vmatprep.mubr.msk.bf16.mxu0 %vm6980_vm1, %v9327_v0  ;;  %v947_v42 = vsel %vm589_vm0, %v7213_v4, 0  ;;  %v1184_v4 = vrot.slane %v7336_v10, 1 }
  0x60   : > { %6471 = vmatprep.subr.bf16.mxu0 %v9327_v0  ;;  %6117 = vmatpush3.bf16.xpose.msra.mxu1 %v743_v47  ;;  %v1167_v33 = vsel %vm854_vm3, %v1165_v45, %v1166_v39  ;;  %v7522_v45 = vld [vmem:[%s7051_s12 + $0x98] ss:$0 sps:$4 sm:$0x33]  }
  0x61   : > { %6620 = vmatprep.subr.msk.bf16.mxu1 %vm589_vm0, %v7224_v15  ;;  %v1691_v15 = vrot.slane %v7378_v11, 2  ;;  %v1185_v23 = vsel %vm854_vm3, %v1182_v30, %v1184_v4 }
  0x63   : > { %v7395_v18 = vsel %vm1667_vm4, %v1689_v53, %v1691_v15  ;;  %v7409_v14 = vsel %vm1667_vm4, %v1691_v15, %v1693_v2  ;;  %v7471_v53 = vld [vmem:[%s7051_s12 + $0x40] sm:$0xff]  }
  0x64   : > { %v1681_v15 = vrot.slane %v7471_v53, 2 }
  0x67   : > { %6472 = vmatpush3.bf16.xpose.msra.mxu0 %v765_v61  ;;  %v7476_v61 = vld [vmem:[%s7051_s12 + $0x88] sm:$0xff]  }
  0x68   : > { %6621 = vmatprep.subr.msk.bf16.mxu0 %vm589_vm0, %v7187_v51  ;;  %6119 = vmatpush3.bf16.xpose.msra.mxu1 %v745_v8  ;;  %v896_v51 = vsel %vm589_vm0, %v7207_v63, 0  ;;  %v7427_v63 = vsel %vm1667_vm4, %v1675_v13, %v1677_v40  ;;  %v7479_v8 = vld [vmem:[%s7051_s12 + $0x90] sm:$0xff]   ;;  %v1206_v13 = vsel %vm589_vm0, %v1167_v33, 0 }
  0x69   : > { %6477 = vmatprep.subr.bf16.mxu1 %v9327_v0 }
  0x6e   : > { %6474 = vmatmul.mubr.msk.bf16.vlgmr.msra.gmra.mrb[4].mxu0 %vm589_vm0, %v7160_v34 }
  0x6f   : > { %6126 = vmatpush3.bf16.xpose.msra.mxu0 %v896_v51  ;;  %6141 = vmatprep.mubr.msk.bf16.mxu0 %vm589_vm0, %v7419_v22  ;;  %v1699_v51 = vrot.slane %v7476_v61, 2 }
  0x70   : > { %6121 = vmatmul.mubr.msk.bf16.vlgmr.msra.gmra.mrb[4].mxu1 %vm589_vm0, %v7160_v34  ;;  %6622 = vmatprep.subr.msk.bf16.mxu0 %vm589_vm0, %v7201_v60  ;;  %v7444_v34 = vld [vmem:[%s7051_s12 + $0x38] sm:$0xff]   ;;  %v7447_v60 = vsel %vm1667_vm4, %v1693_v2, %v1695_v58  ;;  %v7487_v2 = vld [vmem:[%s9319_s1 + $0xc] sm:$0xf] }
  0x71   : > { %6478 = vmatpush3.bf16.xpose.msra.mxu1 %v944_v16  ;;  %6481 = vmatprep.mubr.msk.bf16.mxu1 %vm6980_vm1, %v9327_v0  ;;  %v1679_v41 = vrot.slane %v7444_v34, 2  ;;  %v1168_v16 = vrot.slane %v7341_v43, 1 }
  0x72   : > { %6479 = vmatprep.subr.bf16.mxu1 %v9327_v0 }
  0x73   : > { %v7460_v47 = vsel %vm1667_vm4, %v1677_v40, %v1679_v41  ;;  %v1701_v40 = vrot.slane %v7479_v8, 2 }
  0x77   : > { %6128 = vmatpush3.bf16.xpose.msra.mxu0 %v899_v19  ;;  %v7497_v19 = vsel %vm1667_vm4, %v1679_v41, %v1681_v15  ;;  %v1169_v41 = vsel %vm854_vm3, %v1166_v39, %v1168_v16  ;;  %v1188_v39 = vrot.slane %v7378_v11, 1 }
  0x78   : > { %6623 = vmatprep.subr.msk.bf16.mxu0 %vm589_vm0, %v7216_v6  ;;  %v1697_v6 = vrot.slane %v7468_v50, 2  ;;  %v1209_v33 = vsel %vm589_vm0, %v1169_v41, 0 }
  0x79   : > { %6480 = vmatpush3.bf16.xpose.msra.mxu1 %v947_v42  ;;  %v7504_v42 = vsel %vm1667_vm4, %v1699_v51, %v1701_v40 }
  0x7a   : > { %6629 = vmatprep.subr.msk.bf16.mxu1 %vm589_vm0, %v1183_v12  ;;  %v7494_v57 = vsel %vm1667_vm4, %v1695_v58, %v1697_v6  ;;  %v7509_v30 = vsel %vm1667_vm4, %v1697_v6, %v1699_v51  ;;  %v7515_v58 = vsel %vm1667_vm4, %v1681_v15, %v1683_v20  ;;  %v905_v12 = vsel %vm589_vm0, %v7241_v27, 0 }
  0x7b   : > { %v908_v15 = vsel %vm589_vm0, %v7256_v44, 0  ;;  %v911_v44 = vsel %vm589_vm0, %v7267_v54, 0  ;;  %v914_v54 = vsel %vm589_vm0, %v7282_v62, 0  ;;  %v917_v62 = vsel %vm589_vm0, %v7287_v7, 0 }
  0x7c   : > { %v1425_v7 = vshll.u32 %v7310_v32, 16 }
  0x7f   : > { %6130 = vmatpush3.bf16.xpose.msra.mxu0 %v902_v5  ;;  %v1703_v5 = vrot.slane %v7522_v45, 2 }
  0x80   : > { %6482 = vmatmul.mubr.msk.bf16.vlgmr.msra.gmra.mrb[8].mxu1 %vm589_vm0, %v7419_v22  ;;  %6624 = vmatprep.subr.msk.bf16.mxu0 %vm589_vm0, %v7238_v26  ;;  %v1186_v26 = vrot.slane %v7356_v17, 1 }
  0x81   : > { %6147 = vmatpush3.bf16.xpose.msra.mxu1 %v1206_v13  ;;  %6162 = vmatprep.mubr.msk.bf16.mxu1 %vm589_vm0, %v7487_v2  ;;  %v1170_v13 = vrot.slane %v7366_v46, 1  ;;  %v7531_v20 = vsel %vm1667_vm4, %v1701_v40, %v1703_v5 }
  0x82   : > { %6630 = vmatprep.subr.msk.bf16.mxu1 %vm589_vm0, %v1185_v23  ;;  %v1187_v6 = vsel %vm854_vm3, %v1184_v4, %v1186_v26  ;;  %v1189_v51 = vsel %vm854_vm3, %v1186_v26, %v1188_v39  ;;  %v1190_v23 = vrot.slane %v7392_v49, 1  ;;  %v1174_v26 = vrot.slane %v7404_v37, 1 }
  0x83   : > { %v1171_v27 = vsel %vm854_vm3, %v1168_v16, %v1170_v13 }
  0x84   : > { %v1212_v4 = vsel %vm589_vm0, %v1171_v27, 0  ;;  %v1191_v41 = vsel %vm854_vm3, %v1188_v39, %v1190_v23  ;;  %v1196_v27 = vrot.slane %v7476_v61, 1  ;;  %v1198_v39 = vrot.slane %v7479_v8, 1 }
  0x87   : > { %6132 = vmatpush3.bf16.xpose.msra.mxu0 %v905_v12  ;;  %v1192_v12 = vrot.slane %v7422_v24, 1 }
  0x88   : > { %6625 = vmatprep.subr.msk.bf16.mxu0 %vm589_vm0, %v7245_v36  ;;  %v1172_v36 = vrot.slane %v7386_v9, 1 }
  0x89   : > { %6149 = vmatpush3.bf16.xpose.msra.mxu1 %v1209_v33  ;;  %v1193_v5 = vsel %vm854_vm3, %v1190_v23, %v1192_v12  ;;  %v1431_v23 = vshrl.u32 %v7315_v59, 16 }
  0x8a   : > { %6631 = vmatprep.subr.msk.bf16.mxu1 %vm589_vm0, %v1187_v6  ;;  %v1173_v40 = vsel %vm854_vm3, %v1170_v13, %v1172_v36  ;;  %v1176_v6 = vrot.slane %v7444_v34, 1  ;;  %v1194_v13 = vrot.slane %v7468_v50, 1 }
  0x8b   : > { %v1215_v16 = vsel %vm589_vm0, %v1173_v40, 0  ;;  %v1422_v40 = vshrl.u32 %v7310_v32, 16 }
  0x8f   : > { %6134 = vmatpush3.bf16.xpose.msra.mxu0 %v908_v15 }
  0x90   : > { %6626 = vmatprep.subr.msk.bf16.mxu0 %vm589_vm0, %v7264_v29  ;;  %v1175_v29 = vsel %vm854_vm3, %v1172_v36, %v1174_v26  ;;  %v1199_v36 = vsel %vm854_vm3, %v1196_v27, %v1198_v39 }
  0x91   : > { %6151 = vmatpush3.bf16.xpose.msra.mxu1 %v1212_v4  ;;  %v1218_v33 = vsel %vm589_vm0, %v1175_v29, 0  ;;  %v6883_v4 = vld [vmem:[%s7051_s12 + $0x98] ss:$0 sps:$4 sm:$0x11]   ;;  %v1424_v29 = vrot.slane %v1422_v40, 1 }
  0x92   : > { %6632 = vmatprep.subr.msk.bf16.mxu1 %vm589_vm0, %v1189_v51  ;;  %v1178_v51 = vrot.slane %v7471_v53, 1 }
  0x97   : > { %6136 = vmatpush3.bf16.xpose.msra.mxu0 %v911_v44  ;;  %v1434_v44 = vshll.u32 %v7315_v59, 16 }
  0x98   : > { %6627 = vmatprep.subr.msk.bf16.mxu0 %vm589_vm0, %v7270_v55  ;;  %v1177_v55 = vsel %vm854_vm3, %v1174_v26, %v1176_v6  ;;  %v1254_v26 = vsel %vm589_vm0, %v1199_v36, 0  ;;  %v1503_v36 = vshrl.u32 %v7479_v8, 16 }
  0x99   : > { %6153 = vmatpush3.bf16.xpose.msra.mxu1 %v1215_v16  ;;  %v1221_v15 = vsel %vm589_vm0, %v1177_v55, 0  ;;  %v1200_v16 = vrot.slane %v6883_v4, 1  ;;  %v1436_v55 = vrot.slane %v1434_v44, 2 }
  0x9a   : > { %6633 = vmatprep.subr.msk.bf16.mxu1 %vm589_vm0, %v1191_v41  ;;  %v1179_v41 = vsel %vm854_vm3, %v1176_v6, %v1178_v51  ;;  %v1197_v6 = vsel %vm854_vm3, %v1194_v13, %v1196_v27  ;;  %v1443_v27 = vshll.u32 %v7336_v10, 16 }
  0x9b   : > { %v1224_v59 = vsel %vm589_vm0, %v1179_v41, 0  ;;  %v1201_v4 = vsel %vm854_vm3, %v1198_v39, %v1200_v16 }
  0x9f   : > { %6138 = vmatpush3.bf16.xpose.msra.mxu0 %v914_v54  ;;  %v1351_v54 = vshrl.u32 %v7441_v31, 16 }
  0xa0   : > { %6628 = vmatprep.subr.msk.bf16.mxu0 %vm589_vm0, %v7278_v56  ;;  %v1195_v56 = vsel %vm854_vm3, %v1192_v12, %v1194_v13  ;;  %v1427_v12 = vrot.slane %v1425_v7, 2  ;;  %v1440_v13 = vshrl.u32 %v7336_v10, 16  ;;  %v1445_v10 = vrot.slane %v1443_v27, 2 }
  0xa1   : > { %6155 = vmatpush3.bf16.xpose.msra.mxu1 %v1218_v33  ;;  %v1354_v33 = vshll.u32 %v7441_v31, 16  ;;  %v1494_v31 = vshrl.u32 %v7476_v61, 16  ;;  %v1353_v40 = vrot.slane %v1351_v54, 1  ;;  %v1368_v54 = vshrl.u32 %v7341_v43, 16 }
  0xa2   : > { %6634 = vmatprep.subr.msk.bf16.mxu1 %vm589_vm0, %v1193_v5  ;;  %v1433_v5 = vrot.slane %v1431_v23, 1 }
  0xa3   : > { %v1356_v7 = vrot.slane %v1354_v33, 2  ;;  %v1496_v16 = vrot.slane %v1494_v31, 1  ;;  %v1371_v33 = vshll.u32 %v7341_v43, 16 }
  0xa4   : > { %v1437_v39 = vor.u32 %v1436_v55, %v1433_v5 }
  0xa5   : > { %v1357_v55 = vor.u32 %v1356_v7, %v1353_v40  ;;  %v1373_v43 = vrot.slane %v1371_v33, 2 }
  0xa7   : > { %6140 = vmatpush3.bf16.xpose.msra.mxu0 %v917_v62  ;;  %v1359_v62 = vshrl.u32 %v7328_v21, 16 }
  0xa8   : > { %6485 = vmatprep.subr.bf16.mxu0 %v9327_v0 }
  0xa9   : > { %6157 = vmatpush3.bf16.xpose.msra.mxu1 %v1221_v15  ;;  %v1362_v15 = vshll.u32 %v7328_v21, 16  ;;  %v1506_v21 = vshll.u32 %v7479_v8, 16  ;;  %v1361_v23 = vrot.slane %v1359_v62, 1  ;;  %v1257_v8 = vsel %vm589_vm0, %v1201_v4, 0 }
  0xaa   : > { %6635 = vmatprep.subr.msk.bf16.mxu1 %vm589_vm0, %v1195_v56  ;;  %v1497_v56 = vshll.u32 %v7476_v61, 16  ;;  %v1181_v61 = vsel %vm854_vm3, %v1178_v51, %v1180_v28  ;;  %v1370_v4 = vrot.slane %v1368_v54, 1 }
  0xab   : > { %v1364_v44 = vrot.slane %v1362_v15, 2  ;;  %v1227_v28 = vsel %vm589_vm0, %v1181_v61, 0  ;;  %v1512_v15 = vshrl.u32 %v7522_v45, 16  ;;  %v1377_v61 = vshrl.u32 %v7366_v46, 16 }
  0xac   : > { %v1499_v41 = vrot.slane %v1497_v56, 2  ;;  %v1449_v56 = vshrl.u32 %v7356_v17, 16  ;;  %v1374_v7 = vor.u32 %v1373_v43, %v1370_v4 }
  0xad   : > { %v1365_v32 = vor.u32 %v1364_v44, %v1361_v23  ;;  %v1514_v40 = vrot.slane %v1512_v15, 1 }
  0xae   : > { %6142 = vmatmul.mubr.msk.bf16.vlgmr.msra.gmra.mrb[8].mxu0 %vm589_vm0, %v7419_v22  ;;  %v7599_v22 = vor.u32 %v1427_v12, %v1424_v29  ;;  %v1508_v29 = vrot.slane %v1506_v21, 2  ;;  %v1442_v12 = vrot.slane %v1440_v13, 1  ;;  %v7613_v51 = vor.u32 %v1499_v41, %v1496_v16  ;;  %v7634_v16 = vld [vmem:[%s9319_s1 + $0x10] sm:$0xf] }
  0xaf   : > { %6486 = vmatpush3.bf16.xpose.msra.mxu0 %v1254_v26  ;;  %6489 = vmatprep.mubr.msk.bf16.mxu0 %vm6980_vm1, %v9327_v0  ;;  %v1505_v26 = vrot.slane %v1503_v36, 1  ;;  %v1366_v31 = vsel %vm1349_vm5, %v1357_v55, %v1365_v32  ;;  %v1452_v36 = vshll.u32 %v7356_v17, 16  ;;  %v1451_v23 = vrot.slane %v1449_v56, 1 }
  0xb0   : > { %6487 = vmatprep.subr.bf16.mxu0 %v9327_v0  ;;  %v1438_v5 = vsel %vm1349_vm5, %v7599_v22, %v1437_v39  ;;  %v1386_v55 = vshrl.u32 %v7386_v9, 16  ;;  %v1470_v56 = vshll.u32 %v7392_v49, 16 }
  0xb1   : > { %6159 = vmatpush3.bf16.xpose.msra.mxu1 %v1224_v59  ;;  %v1509_v62 = vor.u32 %v1508_v29, %v1505_v26  ;;  %v1515_v59 = vshll.u32 %v7522_v45, 16  ;;  %v1524_v45 = vsel %vm589_vm0, %v1366_v31, 0  ;;  %v1454_v44 = vrot.slane %v1452_v36, 2 }
  0xb2   : > { %6636 = vmatprep.subr.msk.bf16.mxu1 %vm589_vm0, %v1197_v6  ;;  %v1446_v6 = vor.u32 %v1445_v10, %v1442_v12  ;;  %v1461_v26 = vshll.u32 %v7378_v11, 16  ;;  %v1379_v12 = vrot.slane %v1377_v61, 1  ;;  %v1388_v4 = vrot.slane %v1386_v55, 1 }
  0xb3   : > { %v1510_v21 = vsel %vm1349_vm5, %v7613_v51, %v1509_v62  ;;  %v1517_v13 = vrot.slane %v1515_v59, 2  ;;  %v1455_v29 = vor.u32 %v1454_v44, %v1451_v23  ;;  %v1467_v31 = vshrl.u32 %v7392_v49, 16  ;;  %v7668_v49 = vld [vmem:[%s9319_s1 + $0x14] sm:$0xf] }
  0xb4   : > { %v1447_v27 = vsel %vm1349_vm5, %v1437_v39, %v1446_v6  ;;  %v1572_v17 = vsel %vm589_vm0, %v1510_v21, 0  ;;  %v1458_v39 = vshrl.u32 %v7378_v11, 16 }
  0xb5   : > { %v1518_v41 = vor.u32 %v1517_v13, %v1514_v40  ;;  %v1456_v11 = vsel %vm1349_vm5, %v1446_v6, %v1455_v29  ;;  %v1469_v21 = vrot.slane %v1467_v31, 1  ;;  %v1472_v40 = vrot.slane %v1470_v56, 2 }
  0xb6   : > { %v1460_v33 = vrot.slane %v1458_v39, 1  ;;  %v1395_v13 = vshrl.u32 %v7404_v37, 16  ;;  %v1721_v56 = vsel %vm589_vm0, %v7427_v63, 0  ;;  %v1757_v63 = vsel %vm589_vm0, %v7504_v42, 0 }
  0xb7   : > { %6488 = vmatpush3.bf16.xpose.msra.mxu0 %v1257_v8  ;;  %v1380_v8 = vshll.u32 %v7366_v46, 16  ;;  %v1375_v46 = vsel %vm1349_vm5, %v1365_v32, %v1374_v7  ;;  %v1389_v32 = vshll.u32 %v7386_v9, 16  ;;  %v1473_v23 = vor.u32 %v1472_v40, %v1469_v21  ;;  %v7757_v21 = vld [vmem:[%s7051_s12 + $0x98] sm:$0xff]  }
  0xb8   : > { %6637 = vmatprep.subr.msk.bf16.mxu0 %vm589_vm0, %v1438_v5  ;;  %v1527_v54 = vsel %vm589_vm0, %v1375_v46, 0  ;;  %v1463_v5 = vrot.slane %v1461_v26, 2  ;;  %v1407_v46 = vshll.u32 %v7444_v34, 16  ;;  %v1712_v26 = vsel %vm589_vm0, %v7363_v1, 0 }
  0xb9   : > { %6161 = vmatpush3.bf16.xpose.msra.mxu1 %v1227_v28  ;;  %v1382_v10 = vrot.slane %v1380_v8, 2  ;;  %v1391_v43 = vrot.slane %v1389_v32, 2  ;;  %v1413_v32 = vshrl.u32 %v7471_v53, 16 }
  0xba   : > { %6493 = vmatprep.subr.bf16.mxu1 %v9327_v0  ;;  %v1464_v59 = vor.u32 %v1463_v5, %v1460_v33 }
  0xbb   : > { %v1383_v28 = vor.u32 %v1382_v10, %v1379_v12  ;;  %v1392_v36 = vor.u32 %v1391_v43, %v1388_v4 }
  0xbc   : > { %v1465_v6 = vsel %vm1349_vm5, %v1455_v29, %v1464_v59 }
  0xbe   : > { %6490 = vmatmul.mubr.msk.bf16.vlgmr.msra.gmra.mrb[12].mxu0 %vm589_vm0, %v7487_v2 }
  0xbf   : > { %6168 = vmatpush3.bf16.xpose.msra.mxu0 %v1524_v45  ;;  %6183 = vmatprep.mubr.msk.bf16.mxu0 %vm589_vm0, %v7634_v16  ;;  %v1398_v45 = vshll.u32 %v7404_v37, 16  ;;  %v1479_v37 = vshll.u32 %v7422_v24, 16 }
  0xc0   : > { %6163 = vmatmul.mubr.msk.bf16.vlgmr.msra.gmra.mrb[12].mxu1 %vm589_vm0, %v7487_v2  ;;  %6638 = vmatprep.subr.msk.bf16.mxu0 %vm589_vm0, %v1447_v27  ;;  %v1519_v2 = vsel %vm1349_vm5, %v1509_v62, %v1518_v41  ;;  %v1384_v62 = vsel %vm1349_vm5, %v1374_v7, %v1383_v28  ;;  %v1709_v27 = vsel %vm589_vm0, %v7350_v48, 0  ;;  %v1476_v7 = vshrl.u32 %v7422_v24, 16 }
  0xc1   : > { %6494 = vmatpush3.bf16.xpose.msra.mxu1 %v1572_v17  ;;  %6497 = vmatprep.mubr.msk.bf16.mxu1 %vm6980_vm1, %v9327_v0  ;;  %v1575_v15 = vsel %vm589_vm0, %v1519_v2, 0  ;;  %v1530_v9 = vsel %vm589_vm0, %v1384_v62, 0  ;;  %v1397_v48 = vrot.slane %v1395_v13, 1  ;;  %v1400_v44 = vrot.slane %v1398_v45, 2 }
  0xc2   : > { %6495 = vmatprep.subr.bf16.mxu1 %v9327_v0  ;;  %v1478_v8 = vrot.slane %v1476_v7, 1  ;;  %v1481_v17 = vrot.slane %v1479_v37, 2  ;;  %v1404_v41 = vshrl.u32 %v7444_v34, 16  ;;  %v1474_v24 = vsel %vm1349_vm5, %v1464_v59, %v1473_v23 }
  0xc3   : > { %v1401_v39 = vor.u32 %v1400_v44, %v1397_v48  ;;  %v1488_v2 = vshll.u32 %v7468_v50, 16  ;;  %v1760_v13 = vsel %vm589_vm0, %v7531_v20, 0  ;;  %v2011_v20 = vrot.slane %v7757_v21, 2 }
  0xc4   : > { %v1482_v29 = vor.u32 %v1481_v17, %v1478_v8  ;;  %v1406_v12 = vrot.slane %v1404_v41, 1  ;;  %v7778_v17 = vld [vmem:[%s7051_s12 + $0x20] sm:$0xff]  }
  0xc5   : > { %v1402_v10 = vsel %vm1349_vm5, %v1392_v36, %v1401_v39  ;;  %v1490_v55 = vrot.slane %v1488_v2, 2  ;;  %v6894_v41 = vld [vmem:[%s7051_s12 + $0xa0] ss:$0 sps:$4 sm:$0x33]   ;;  %v7794_v2 = vld [vmem:[%s7051_s12 + $0x68] sm:$0xff]  }
  0xc6   : > { %v1536_v34 = vsel %vm589_vm0, %v1402_v10, 0  ;;  %v1483_v1 = vsel %vm1349_vm5, %v1473_v23, %v1482_v29  ;;  %v1730_v23 = vsel %vm589_vm0, %v7515_v58, 0  ;;  %v1981_v10 = vrot.slane %v7778_v17, 2 }
  0xc7   : > { %6170 = vmatpush3.bf16.xpose.msra.mxu0 %v1527_v54  ;;  %v1485_v54 = vshrl.u32 %v7468_v50, 16 }
  0xc8   : > { %6639 = vmatprep.subr.msk.bf16.mxu0 %vm589_vm0, %v1456_v11  ;;  %v1416_v11 = vshll.u32 %v7471_v53, 16 }
  0xc9   : > { %6496 = vmatpush3.bf16.xpose.msra.mxu1 %v1575_v15  ;;  %v1487_v5 = vrot.slane %v1485_v54, 1  ;;  %v1415_v15 = vrot.slane %v1413_v32, 1  ;;  %v2013_v54 = vrot.slane %v6894_v41, 2  ;;  %v2262_v41 = vshrl.u32 %v7794_v2, 16 }
  0xca   : > { %6645 = vmatprep.subr.msk.bf16.mxu1 %vm589_vm0, %v7333_v38  ;;  %v1393_v38 = vsel %vm1349_vm5, %v1383_v28, %v1392_v36  ;;  %v1715_v28 = vsel %vm589_vm0, %v7381_v35, 0  ;;  %v1418_v59 = vrot.slane %v1416_v11, 2  ;;  %v1718_v35 = vsel %vm589_vm0, %v7400_v25, 0  ;;  %v7749_v36 = vld [vmem:[%s7051_s12 + $0x18] sm:$0xff]  }
  0xcb   : > { %v1533_v61 = vsel %vm589_vm0, %v1393_v38, 0  ;;  %v1491_v50 = vor.u32 %v1490_v55, %v1487_v5  ;;  %v1979_v7 = vrot.slane %v7749_v36, 2  ;;  %v2172_v55 = vshrl.u32 %v7749_v36, 16 }
  0xcc   : > { %v1419_v53 = vor.u32 %v1418_v59, %v1415_v15  ;;  %v2014_v15 = vsel %vm1667_vm4, %v2011_v20, %v2013_v54  ;;  %v1999_v59 = vrot.slane %v7794_v2, 2  ;;  %v2264_v54 = vrot.slane %v2262_v41, 2 }
  0xcd   : > { %v1492_v43 = vsel %vm1349_vm5, %v1482_v29, %v1491_v50  ;;  %v1501_v31 = vsel %vm1349_vm5, %v1491_v50, %v7613_v51  ;;  %v1724_v51 = vsel %vm589_vm0, %v7460_v47, 0  ;;  %v1727_v47 = vsel %vm589_vm0, %v7497_v19, 0  ;;  %v7754_v19 = vld [vmem:[%s7051_s12 + $0x90] sm:$0xff]  }
  0xce   : > { %v1429_v25 = vsel %vm1349_vm5, %v1419_v53, %v7599_v22  ;;  %v7729_v22 = vld [vmem:[%s7051_s12 + $0x50] sm:$0xff]   ;;  %v2009_v48 = vrot.slane %v7754_v19, 2  ;;  %v1982_v50 = vsel %vm1667_vm4, %v1979_v7, %v1981_v10 }
  0xcf   : > { %6172 = vmatpush3.bf16.xpose.msra.mxu0 %v1530_v9  ;;  %v1846_v9 = vld [vmem:[%s7051_s12 + $0x10] sm:$0xc] }
  0xd0   : > { %6498 = vmatmul.mubr.msk.bf16.vlgmr.msra.gmra.mrb[16].mxu1 %vm589_vm0, %v7634_v16  ;;  %6640 = vmatprep.subr.msk.bf16.mxu0 %vm589_vm0, %v1465_v6  ;;  %v7740_v6 = vld [vmem:[%s7051_s12 + $0x14] sm:$0xf]  ;;  %v2012_v58 = vsel %vm1667_vm4, %v2009_v48, %v2011_v20 }
  0xd1   : > { %6189 = vmatpush3.bf16.xpose.msra.mxu1 %v1709_v27  ;;  %6204 = vmatprep.mubr.msk.bf16.mxu1 %vm589_vm0, %v7668_v49 }
  0xd2   : > { %6646 = vmatprep.subr.msk.bf16.mxu1 %vm589_vm0, %v7359_v52  ;;  %v1409_v52 = vrot.slane %v1407_v46, 2  ;;  %v2235_v46 = vshrl.u32 %v7729_v22, 16 }
  0xd4   : > { %v1410_v33 = vor.u32 %v1409_v52, %v1406_v12  ;;  %v2067_v12 = vsel %vm589_vm0, %v2012_v58, 0  ;;  %v2265_v58 = vshll.u32 %v7794_v2, 16 }
  0xd6   : > { %v1420_v62 = vsel %vm1349_vm5, %v1410_v33, %v1419_v53 }
  0xd7   : > { %6174 = vmatpush3.bf16.xpose.msra.mxu0 %v1533_v61 }
  0xd8   : > { %6641 = vmatprep.subr.msk.bf16.mxu0 %vm589_vm0, %v1474_v24  ;;  %v2238_v24 = vshll.u32 %v7729_v22, 16 }
  0xd9   : > { %6191 = vmatpush3.bf16.xpose.msra.mxu1 %v1712_v26 }
  0xda   : > { %6647 = vmatprep.subr.msk.bf16.mxu1 %vm589_vm0, %v7372_v3  ;;  %v1411_v3 = vsel %vm1349_vm5, %v1401_v39, %v1410_v33  ;;  %v2240_v32 = vrot.slane %v2238_v24, 3 }
  0xdb   : > { %v1539_v4 = vsel %vm589_vm0, %v1411_v3, 0  ;;  %v2175_v3 = vshll.u32 %v7749_v36, 16 }
  0xdf   : > { %6176 = vmatpush3.bf16.xpose.msra.mxu0 %v1536_v34  ;;  %v7801_v34 = vld [vmem:[%s9319_s1 + $0x18] sm:$0xf] }
  0xe0   : > { %6642 = vmatprep.subr.msk.bf16.mxu0 %vm589_vm0, %v1483_v1  ;;  %v2237_v1 = vrot.slane %v2235_v46, 2 }
  0xe1   : > { %6193 = vmatpush3.bf16.xpose.msra.mxu1 %v1715_v28 }
  0xe2   : > { %6648 = vmatprep.subr.msk.bf16.mxu1 %vm589_vm0, %v7395_v18  ;;  %v1542_v18 = vsel %vm589_vm0, %v1420_v62, 0  ;;  %v7821_v62 = vor.u32 %v2240_v32, %v2237_v1  ;;  %v2267_v1 = vrot.slane %v2265_v58, 3 }
  0xe7   : > { %6178 = vmatpush3.bf16.xpose.msra.mxu0 %v1539_v4  ;;  %v7816_v4 = vld [vmem:[%s7051_s12 + $0x28] sm:$0xff]  }
  0xe8   : > { %6643 = vmatprep.subr.msk.bf16.mxu0 %vm589_vm0, %v1492_v43 }
  0xe9   : > { %6195 = vmatpush3.bf16.xpose.msra.mxu1 %v1718_v35 }
  0xea   : > { %6649 = vmatprep.subr.msk.bf16.mxu1 %vm589_vm0, %v7409_v14  ;;  %v1545_v14 = vsel %vm589_vm0, %v1429_v25, 0  ;;  %v2022_v25 = vsel %vm589_vm0, %v1982_v50, 0 }
  0xef   : > { %6180 = vmatpush3.bf16.xpose.msra.mxu0 %v1542_v18 }
  0xf0   : > { %6644 = vmatprep.subr.msk.bf16.mxu0 %vm589_vm0, %v1501_v31  ;;  %v2174_v31 = vrot.slane %v2172_v55, 2 }
  0xf1   : > { %6197 = vmatpush3.bf16.xpose.msra.mxu1 %v1721_v56  ;;  %v2177_v56 = vrot.slane %v2175_v3, 3 }
  0xf2   : > { %6650 = vmatprep.subr.msk.bf16.mxu1 %vm589_vm0, %v7447_v60  ;;  %v7732_v60 = vld [vmem:[%s7051_s12 + $0x58] sm:$0xff]  }
  0xf3   : > { %v1995_v42 = vrot.slane %v7732_v60, 2  ;;  %v2244_v39 = vshrl.u32 %v7732_v60, 16  ;;  %v2247_v26 = vshll.u32 %v7732_v60, 16 }
  0xf5   : > { %v2246_v11 = vrot.slane %v2244_v39, 2  ;;  %v2249_v28 = vrot.slane %v2247_v26, 3  ;;  %v7848_v26 = vld [vmem:[%s7051_s12 + $0x78] sm:$0xff]  }
  0xf6   : > { %v2003_v32 = vrot.slane %v7848_v26, 2 }
  0xf7   : > { %6182 = vmatpush3.bf16.xpose.msra.mxu0 %v1545_v14  ;;  %v2250_v18 = vor.u32 %v2249_v28, %v2246_v11  ;;  %v2070_v14 = vsel %vm589_vm0, %v2014_v15, 0  ;;  %v7865_v11 = vld [vmem:[%s7051_s12 + $0x38] sm:$0xff]   ;;  %v2268_v15 = vor.u32 %v2267_v1, %v2264_v54 }
  0xf8   : > { %6501 = vmatprep.subr.bf16.mxu0 %v9327_v0  ;;  %v2208_v1 = vshrl.u32 %v7865_v11, 16 }
  0xf9   : > { %6199 = vmatpush3.bf16.xpose.msra.mxu1 %v1724_v51 }
  0xfa   : > { %6651 = vmatprep.subr.msk.bf16.mxu1 %vm589_vm0, %v7494_v57  ;;  %v1993_v57 = vrot.slane %v7729_v22, 2 }
  0xfc   : > { %v1996_v27 = vsel %vm1667_vm4, %v1993_v57, %v1995_v42 }
  0xfe   : > { %6184 = vmatmul.mubr.msk.bf16.vlgmr.msra.gmra.mrb[16].mxu0 %vm589_vm0, %v7634_v16  ;;  %v5892_v16 = vcombine.low %v1846_v9, %v7740_v6 }
  0xff   : > { %6502 = vmatpush3.bf16.xpose.msra.mxu0 %v1757_v63  ;;  %6505 = vmatprep.mubr.msk.bf16.mxu0 %vm6980_vm1, %v9327_v0  ;;  %v1983_v63 = vrot.slane %v7816_v4, 2 }
 0x100   : > { %6503 = vmatprep.subr.bf16.mxu0 %v9327_v0  ;;  %v1978_v38 = vrot.slane %v5892_v16, 2  ;;  %v2164_v33 = vshrl.u32 %v5892_v16, 16  ;;  %v2167_v5 = vshll.u32 %v5892_v16, 16  ;;  %v2181_v16 = vshrl.u32 %v7778_v17, 16 }
 0x101   : > { %6201 = vmatpush3.bf16.xpose.msra.mxu1 %v1727_v47  ;;  %v7759_v40 = vpop.f32.mrb[0].mxu1  ;;  %v7828_v47 = vld [vmem:[%s7051_s12 + $0x70] sm:$0xff]  }
 0x102   : > { %6652 = vmatprep.subr.msk.bf16.mxu1 %vm589_vm0, %v7509_v30  ;;  %v6467_v45 = vpop.f32.mrb[1].mxu1  ;;  %v7768_v30 = vld [vmem:[%s7051_s12 + $0x60] sm:$0xff]   ;;  %v1980_v61 = vsel %vm1667_vm4, %v1978_v38, %v1979_v7  ;;  %v2166_v43 = vrot.slane %v2164_v33, 2  ;;  %v2169_v53 = vrot.slane %v2167_v5, 3  ;;  %v2178_v38 = vor.u32 %v2177_v56, %v2174_v31 }
 0x103   : > { %v725_v37 = vpop.f32.mrb[2].mxu1  ;;  %v1997_v8 = vrot.slane %v7768_v30, 2  ;;  %v2019_v29 = vsel %vm589_vm0, %v1980_v61, 0  ;;  %v2256_v35 = vshll.u32 %v7768_v30, 16  ;;  %v2251_v45 = vsel %vm2162_vm6, %v7821_v62, %v2250_v18  ;;  %v7881_v56 = vld [vmem:[%s7051_s12 + $0x80] sm:$0xff]  }
 0x104   : > { %v6468_v44 = vpop.f32.mrb[3].mxu1  ;;  %v1984_v7 = vsel %vm1667_vm4, %v1981_v10, %v1983_v63  ;;  %v2001_v37 = vrot.slane %v7828_v47, 2  ;;  %v7855_v10 = vld [vmem:[%s9319_s1 + $0x1c] sm:$0xf]  ;;  %v2190_v33 = vshrl.u32 %v7816_v4, 16  ;;  %v2193_v5 = vshll.u32 %v7816_v4, 16 }
 0x105   : > { %v1998_v52 = vsel %vm1667_vm4, %v1995_v42, %v1997_v8  ;;  %v2000_v51 = vsel %vm1667_vm4, %v1997_v8, %v1999_v59  ;;  %v2258_v42 = vrot.slane %v2256_v35, 3  ;;  %v2183_v44 = vrot.slane %v2181_v16, 2 }
 0x106   : > { %v2025_v46 = vsel %vm589_vm0, %v1984_v7, 0  ;;  %v2002_v24 = vsel %vm1667_vm4, %v1999_v59, %v2001_v37  ;;  %v2271_v3 = vshrl.u32 %v7828_v47, 16  ;;  %v2274_v50 = vshll.u32 %v7828_v47, 16 }
 0x107   : > { %6504 = vmatpush3.bf16.xpose.msra.mxu0 %v1760_v13  ;;  %v2184_v13 = vshll.u32 %v7778_v17, 16  ;;  %v2192_v59 = vrot.slane %v2190_v33, 2  ;;  %v1987_v31 = vrot.slane %v7865_v11, 2  ;;  %v2211_v33 = vshll.u32 %v7865_v11, 16 }
 0x108   : > { %6653 = vmatprep.subr.msk.bf16.mxu0 %vm589_vm0, %v1996_v27  ;;  %v2170_v27 = vor.u32 %v2169_v53, %v2166_v43  ;;  %v2195_v43 = vrot.slane %v2193_v5, 3 }
 0x109   : > { %6203 = vmatpush3.bf16.xpose.msra.mxu1 %v1730_v23  ;;  %v7838_v23 = vld [vmem:[%s7051_s12 + $0x30] sm:$0xff]   ;;  %v2186_v61 = vrot.slane %v2184_v13, 3  ;;  %v2671_v13 = vld [vmem:[%s9321_s3] sm:$0xff] }
 0x10a   : > { %6509 = vmatprep.subr.bf16.mxu1 %v9327_v0  ;;  %v2179_v8 = vsel %vm2162_vm6, %v2170_v27, %v2178_v38  ;;  %v1985_v39 = vrot.slane %v7838_v23, 2  ;;  %v2196_v16 = vor.u32 %v2195_v43, %v2192_v59  ;;  %v2005_v27 = vrot.slane %v7881_v56, 2 }
 0x10b   : > { %v2292_v59 = vshll.u32 %v7881_v56, 16 }
 0x10c   : > { %v1986_v55 = vsel %vm1667_vm4, %v1983_v63, %v1985_v39  ;;  %v2199_v63 = vshrl.u32 %v7838_v23, 16  ;;  %v2006_v58 = vsel %vm1667_vm4, %v2003_v32, %v2005_v27 }
 0x10d   : > { %v2028_v53 = vsel %vm589_vm0, %v1986_v55, 0 }
 0x10e   : > { %6506 = vmatmul.mubr.msk.bf16.vlgmr.msra.gmra.mrb[20].mxu0 %vm589_vm0, %v7668_v49 }
 0x10f   : > { %6210 = vmatpush3.bf16.xpose.msra.mxu0 %v2019_v29  ;;  %6225 = vmatprep.mubr.msk.bf16.mxu0 %vm589_vm0, %v7801_v34  ;;  %v2337_v29 = vsel %vm589_vm0, %v2179_v8, 0  ;;  %v2283_v8 = vshll.u32 %v7848_v26, 16 }
 0x110   : > { %6205 = vmatmul.mubr.msk.bf16.vlgmr.msra.gmra.mrb[20].mxu1 %vm589_vm0, %v7668_v49  ;;  %6654 = vmatprep.subr.msk.bf16.mxu0 %vm589_vm0, %v1998_v52  ;;  %v2253_v49 = vshrl.u32 %v7768_v30, 16  ;;  %v2187_v52 = vor.u32 %v2186_v61, %v2183_v44  ;;  %v2280_v61 = vshrl.u32 %v7848_v26, 16 }
 0x111   : > { %6510 = vmatpush3.bf16.xpose.msra.mxu1 %v2067_v12  ;;  %6513 = vmatprep.mubr.msk.bf16.mxu1 %vm6980_vm1, %v9327_v0  ;;  %v2285_v54 = vrot.slane %v2283_v8, 3 }
 0x112   : > { %6511 = vmatprep.subr.bf16.mxu1 %v9327_v0  ;;  %v2255_v9 = vrot.slane %v2253_v49, 2  ;;  %v2188_v28 = vsel %vm2162_vm6, %v2178_v38, %v2187_v52  ;;  %v2659_v49 = vld [vmem:[%s9320_s2] sm:$0xff]  ;;  %v2197_v44 = vsel %vm2162_vm6, %v2187_v52, %v2196_v16  ;;  %v2282_v52 = vrot.slane %v2280_v61, 2 }
 0x113   : > { %v2340_v35 = vsel %vm589_vm0, %v2188_v28, 0  ;;  %v7894_v38 = vld [vmem:[%s7051_s12 + $0x40] sm:$0xff]   ;;  %v7916_v28 = vld [vmem:[%s7051_s12 + $0x48] sm:$0xff]  }
 0x114   : > { %v2259_v20 = vor.u32 %v2258_v42, %v2255_v9  ;;  %v2202_v9 = vshll.u32 %v7838_v23, 16 }
 0x116   : > { %v2260_v12 = vsel %vm2162_vm6, %v2250_v18, %v2259_v20  ;;  %v2004_v18 = vsel %vm1667_vm4, %v2001_v37, %v2003_v32  ;;  %v2269_v42 = vsel %vm2162_vm6, %v2259_v20, %v2268_v15  ;;  %v2201_v37 = vrot.slane %v2199_v63, 2 }
 0x117   : > { %6212 = vmatpush3.bf16.xpose.msra.mxu0 %v2022_v25  ;;  %v6981_v25 = vmov 0   ;;  %v2204_v20 = vrot.slane %v2202_v9, 3  ;;  %v1991_v63 = vrot.slane %v7916_v28, 2 }
 0x118   : > { %6655 = vmatprep.subr.msk.bf16.mxu0 %vm589_vm0, %v2000_v51  ;;  %6762 = vset.pattern.permute.xlu0 %v6981_v25  ;;  %v2276_v51 = vrot.slane %v2274_v50, 3  ;;  %2706 = vst.msk [vmem:[#allocation2 + $0x8] sm:$0xf] %vm2703_vm8, %v6981_v25  ;;  %2704 = vst.msk [vmem:[#allocation2] sm:$0xf] %vm2703_vm8, %v6981_v25 }
 0x119   : > { %6512 = vmatpush3.bf16.xpose.msra.mxu1 %v2070_v14  ;;  %v2273_v14 = vrot.slane %v2271_v3, 2  ;;  %2662 = vperm.xlu0 %6762, %v2659_v49   ;;  %v2210_v49 = vrot.slane %v2208_v1, 2  ;;  %2705 = vst.msk [vmem:[#allocation2 + $0x4] sm:$0xf] %vm2703_vm8, %v6981_v25  ;;  %2707 = vst.msk [vmem:[#allocation2 + $0xc] sm:$0xf] %vm2703_vm8, %v6981_v25 }
 0x11a   : > { %6661 = vmatprep.subr.msk.bf16.mxu1 %vm589_vm0, %v2251_v45  ;;  %v1988_v45 = vsel %vm1667_vm4, %v1985_v39, %v1987_v31  ;;  %v2343_v39 = vsel %vm589_vm0, %v2197_v44, 0  ;;  %2708 = vst.msk [vmem:[#allocation2 + $0x10] sm:$0xf] %vm2703_vm8, %v6981_v25  ;;  %2709 = vst.msk [vmem:[#allocation2 + $0x14] sm:$0xf] %vm2703_vm8, %v6981_v25 }
 0x11b   : > { %v2277_v7 = vor.u32 %v2276_v51, %v2273_v14  ;;  %v2031_v41 = vsel %vm589_vm0, %v1988_v45, 0  ;;  %2710 = vst.msk [vmem:[#allocation2 + $0x18] sm:$0xf] %vm2703_vm8, %v6981_v25  ;;  %2711 = vst.msk [vmem:[#allocation2 + $0x1c] sm:$0xf] %vm2703_vm8, %v6981_v25 }
 0x11c   : > { %2712 = vst.msk [vmem:[#allocation2 + $0x20] sm:$0xf] %vm2703_vm8, %v6981_v25  ;;  %2713 = vst.msk [vmem:[#allocation2 + $0x24] sm:$0xf] %vm2703_vm8, %v6981_v25 }
 0x11d   : > { %2674 = vperm.xlu0 %6762, %v2671_v13   ;;  %v2220_v13 = vshll.u32 %v7894_v38, 16  ;;  %2714 = vst.msk [vmem:[#allocation2 + $0x28] sm:$0xf] %vm2703_vm8, %v6981_v25  ;;  %2715 = vst.msk [vmem:[#allocation2 + $0x2c] sm:$0xf] %vm2703_vm8, %v6981_v25 }
 0x11e   : > { %2716 = vst.msk [vmem:[#allocation2 + $0x30] sm:$0xf] %vm2703_vm8, %v6981_v25  ;;  %2717 = vst.msk [vmem:[#allocation2 + $0x34] sm:$0xf] %vm2703_vm8, %v6981_v25 }
 0x11f   : > { %6214 = vmatpush3.bf16.xpose.msra.mxu0 %v2025_v46  ;;  %v1989_v46 = vrot.slane %v7894_v38, 2  ;;  %v2222_v61 = vrot.slane %v2220_v13, 3  ;;  %2718 = vst.msk [vmem:[#allocation2 + $0x38] sm:$0xf] %vm2703_vm8, %v6981_v25  ;;  %2719 = vst.msk [vmem:[#allocation2 + $0x3c] sm:$0xf] %vm2703_vm8, %v6981_v25 }
 0x120   : > { %6514 = vmatmul.mubr.msk.bf16.vlgmr.msra.gmra.mrb[24].mxu1 %vm589_vm0, %v7801_v34  ;;  %6656 = vmatprep.subr.msk.bf16.mxu0 %vm589_vm0, %v2002_v24  ;;  %v7904_v24 = vld [vmem:[%s7051_s12 + $0x88] sm:$0xff]   ;;  %2720 = vst.msk [vmem:[#allocation2 + $0x40] sm:$0xf] %vm2703_vm8, %v6981_v25  ;;  %2721 = vst.msk [vmem:[#allocation2 + $0x44] sm:$0xf] %vm2703_vm8, %v6981_v25 }
 0x121   : > { %6231 = vmatpush3.bf16.xpose.msra.mxu1 %v2337_v29  ;;  %6246 = vmatprep.mubr.msk.bf16.mxu1 %vm589_vm0, %v7855_v10  ;;  %v2278_v29 = vsel %vm2162_vm6, %v2268_v15, %v2277_v7  ;;  %v1990_v55 = vsel %vm1667_vm4, %v1987_v31, %v1989_v46  ;;  %v2007_v32 = vrot.slane %v7904_v24, 2  ;;  %v2289_v15 = vshrl.u32 %v7881_v56, 16  ;;  %2722 = vst.msk [vmem:[#allocation2 + $0x48] sm:$0xf] %vm2703_vm8, %v6981_v25 }
 0x122   : > { %6662 = vmatprep.subr.msk.bf16.mxu1 %vm589_vm0, %v2260_v12  ;;  %v2205_v12 = vor.u32 %v2204_v20, %v2201_v37  ;;  %v2034_v31 = vsel %vm589_vm0, %v1990_v55, 0  ;;  %v1992_v20 = vsel %vm1667_vm4, %v1989_v46, %v1991_v63  ;;  %2723 = vst.msk [vmem:[#allocation2 + $0x4c] sm:$0xf] %vm2703_vm8, %v6981_v25  ;;  %2724 = vst.msk [vmem:[#allocation2 + $0x50] sm:$0xf] %vm2703_vm8, %v6981_v25 }
 0x123   : > { %v2008_v51 = vsel %vm1667_vm4, %v2005_v27, %v2007_v32  ;;  %v2291_v9 = vrot.slane %v2289_v15, 2  ;;  %v2010_v46 = vsel %vm1667_vm4, %v2007_v32, %v2009_v48  ;;  %v2226_v15 = vshrl.u32 %v7916_v28, 16  ;;  %2725 = vst.msk [vmem:[#allocation2 + $0x54] sm:$0xf] %vm2703_vm8, %v6981_v25  ;;  %2726 = vst.msk [vmem:[#allocation2 + $0x58] sm:$0xf] %vm2703_vm8, %v6981_v25 }
 0x124   : > { %v2206_v50 = vsel %vm2162_vm6, %v2196_v16, %v2205_v12  ;;  %v2217_v16 = vshrl.u32 %v7894_v38, 16  ;;  %2727 = vst.msk [vmem:[#allocation2 + $0x5c] sm:$0xf] %vm2703_vm8, %v6981_v25  ;;  %2728 = vst.msk [vmem:[#allocation2 + $0x60] sm:$0xf] %vm2703_vm8, %v6981_v25 }
 0x125   : > { %v2346_v14 = vsel %vm589_vm0, %v2206_v50, 0  ;;  %v2228_v13 = vrot.slane %v2226_v15, 2  ;;  %v2496_v15 = vrot.slane %v7729_v22, 3  ;;  %2729 = vst.msk [vmem:[#allocation2 + $0x64] sm:$0xf] %vm2703_vm8, %v6981_v25 }
 0x126   : > { %v2219_v44 = vrot.slane %v2217_v16, 2  ;;  %2730 = vst.msk [vmem:[#allocation2 + $0x68] sm:$0xf] %vm2703_vm8, %v6981_v25  ;;  %2731 = vst.msk [vmem:[#allocation2 + $0x6c] sm:$0xf] %vm2703_vm8, %v6981_v25 }
 0x127   : > { %6216 = vmatpush3.bf16.xpose.msra.mxu0 %v2028_v53  ;;  %v2286_v53 = vor.u32 %v2285_v54, %v2282_v52  ;;  %v2316_v52 = vshrl.u32 %v7757_v21, 16  ;;  %v2319_v54 = vshll.u32 %v7757_v21, 16  ;;  %2732 = vst.msk [vmem:[#allocation2 + $0x70] sm:$0xf] %vm2703_vm8, %v6981_v25  ;;  %2733 = vst.msk [vmem:[#allocation2 + $0x74] sm:$0xf] %vm2703_vm8, %v6981_v25 }
 0x128   : > { %6657 = vmatprep.subr.msk.bf16.mxu0 %vm589_vm0, %v2004_v18  ;;  %2734 = vst.msk [vmem:[#allocation2 + $0x78] sm:$0xf] %vm2703_vm8, %v6981_v25  ;;  %2735 = vst.msk [vmem:[#allocation2 + $0x7c] sm:$0xf] %vm2703_vm8, %v6981_v25 }
 0x129   : > { %6233 = vmatpush3.bf16.xpose.msra.mxu1 %v2340_v35  ;;  %v2213_v35 = vrot.slane %v2211_v33, 3  ;;  %v2287_v45 = vsel %vm2162_vm6, %v2277_v7, %v2286_v53  ;;  %v2307_v7 = vshrl.u32 %v7754_v19, 16  ;;  %v2223_v33 = vor.u32 %v2222_v61, %v2219_v44  ;;  %2736 = vst.msk [vmem:[#allocation2 + $0x80] sm:$0xf] %vm2703_vm8, %v6981_v25  ;;  %2737 = vst.msk [vmem:[#allocation2 + $0x84] sm:$0xf] %vm2703_vm8, %v6981_v25 }
 0x12a   : > { %6663 = vmatprep.subr.msk.bf16.mxu1 %vm589_vm0, %v2269_v42  ;;  %v2294_v42 = vrot.slane %v2292_v59, 3  ;;  %v2229_v59 = vshll.u32 %v7916_v28, 16  ;;  %2738 = vst.msk [vmem:[#allocation2 + $0x88] sm:$0xf] %vm2703_vm8, %v6981_v25  ;;  %2739 = vst.msk [vmem:[#allocation2 + $0x8c] sm:$0xf] %vm2703_vm8, %v6981_v25 }
 0x12b   : > { %v2214_v37 = vor.u32 %v2213_v35, %v2210_v49  ;;  %v2309_v48 = vrot.slane %v2307_v7, 2  ;;  %v1994_v49 = vsel %vm1667_vm4, %v1991_v63, %v1993_v57  ;;  %v2318_v35 = vrot.slane %v2316_v52, 2  ;;  %2740 = vst.msk [vmem:[#allocation2 + $0x90] sm:$0xf] %vm2703_vm8, %v6981_v25  ;;  %2741 = vst.msk [vmem:[#allocation2 + $0x94] sm:$0xf] %vm2703_vm8, %v6981_v25 }
 0x12c   : > { %v2295_v27 = vor.u32 %v2294_v42, %v2291_v9  ;;  %v2040_v44 = vsel %vm589_vm0, %v1994_v49, 0  ;;  %2742 = vst.msk [vmem:[#allocation2 + $0x98] sm:$0xf] %vm2703_vm8, %v6981_v25  ;;  %2743 = vst.msk [vmem:[#allocation2 + $0x9c] sm:$0xf] %vm2703_vm8, %v6981_v25 }
 0x12d   : > { %v2215_v8 = vsel %vm2162_vm6, %v2205_v12, %v2214_v37  ;;  %v2224_v42 = vsel %vm2162_vm6, %v2214_v37, %v2223_v33  ;;  %2744 = vst.msk [vmem:[#allocation2 + $0xa0] sm:$0xf] %vm2703_vm8, %v6981_v25 }
 0x12e   : > { %v2349_v12 = vsel %vm589_vm0, %v2215_v8, 0  ;;  %v2296_v1 = vsel %vm2162_vm6, %v2286_v53, %v2295_v27  ;;  %v2321_v53 = vrot.slane %v2319_v54, 3 }
 0x12f   : > { %6218 = vmatpush3.bf16.xpose.msra.mxu0 %v2031_v41  ;;  %v2298_v41 = vshrl.u32 %v7904_v24, 16 }
 0x130   : > { %6658 = vmatprep.subr.msk.bf16.mxu0 %vm589_vm0, %v2006_v58  ;;  %v2301_v58 = vshll.u32 %v7904_v24, 16 }
 0x131   : > { %6235 = vmatpush3.bf16.xpose.msra.mxu1 %v2343_v39  ;;  %v7911_v5 = vpop.f32.mrb[0].mxu0  ;;  %v2037_v39 = vsel %vm589_vm0, %v1992_v20, 0  ;;  %v2300_v55 = vrot.slane %v2298_v41, 2  ;;  %v2322_v41 = vor.u32 %v2321_v53, %v2318_v35 }
 0x132   : > { %v7918_v3 = vpop.f32.mrb[1].mxu0  ;;  %6664 = vmatprep.subr.msk.bf16.mxu1 %vm589_vm0, %v2278_v29  ;;  %v2310_v29 = vshll.u32 %v7754_v19, 16  ;;  %v2303_v50 = vrot.slane %v2301_v58, 3 }
 0x133   : > { %v685_v43 = vpop.f32.mrb[2].mxu0 }
 0x134   : > { %v686_v18 = vpop.f32.mrb[3].mxu0  ;;  %v2312_v32 = vrot.slane %v2310_v29, 3  ;;  %v2304_v16 = vor.u32 %v2303_v50, %v2300_v55  ;;  %v2474_v55 = vld [vmem:[%s7051_s12 + $0x10] sm:$0x8] }
 0x135   : > { %v7954_v18 = vld [vmem:[%s7051_s12 + $0xa0] ss:$0 sps:$4 sm:$0x77]  }
 0x136   : > { %v2313_v61 = vor.u32 %v2312_v32, %v2309_v48  ;;  %v2325_v58 = vshrl.u32 %v7954_v18, 16  ;;  %v2328_v37 = vshll.u32 %v7954_v18, 16 }
 0x137   : > { %6220 = vmatpush3.bf16.xpose.msra.mxu0 %v2034_v31 }
 0x138   : > { %6659 = vmatprep.subr.msk.bf16.mxu0 %vm589_vm0, %v2008_v51  ;;  %v2330_v52 = vrot.slane %v2328_v37, 3  ;;  %v2314_v50 = vsel %vm2162_vm6, %v2304_v16, %v2313_v61  ;;  %v2504_v37 = vrot.slane %v7828_v47, 3  ;;  %v5755_v47 = vld [vmem:[%s9325_s7] sm:$0xff] }
 0x139   : > { %6237 = vmatpush3.bf16.xpose.msra.mxu1 %v2346_v14 }
 0x13a   : > { %6665 = vmatprep.subr.msk.bf16.mxu1 %vm589_vm0, %v2287_v45  ;;  %v2231_v45 = vrot.slane %v2229_v59, 3  ;;  %v2498_v59 = vrot.slane %v7732_v60, 3  ;;  %v2482_v60 = vrot.slane %v7749_v36, 3 }
 0x13c   : > { %v2232_v29 = vor.u32 %v2231_v45, %v2228_v13  ;;  %v2499_v53 = vsel %vm2480_vm7, %v2496_v15, %v2498_v59 }
 0x13e   : > { %v2233_v54 = vsel %vm2162_vm6, %v2223_v33, %v2232_v29  ;;  %v2242_v32 = vsel %vm2162_vm6, %v2232_v29, %v7821_v62  ;;  %v2514_v62 = vrot.slane %v7757_v21, 3  ;;  %v2506_v29 = vrot.slane %v7848_v26, 3 }
 0x13f   : > { %6222 = vmatpush3.bf16.xpose.msra.mxu0 %v2037_v39  ;;  %v2352_v39 = vsel %vm589_vm0, %v2224_v42, 0  ;;  %v2512_v42 = vrot.slane %v7754_v19, 3 }
 0x140   : > { %6660 = vmatprep.subr.msk.bf16.mxu0 %vm589_vm0, %v2010_v46  ;;  %v2327_v46 = vrot.slane %v2325_v58, 2 }
 0x141   : > { %6239 = vmatpush3.bf16.xpose.msra.mxu1 %v2349_v12  ;;  %v842_v43 = vpop.f32.mrb[4].mxu0  ;;  %v2515_v36 = vsel %vm2480_vm7, %v2512_v42, %v2514_v62 }
 0x142   : > { %v843_v31 = vadd.f32 %v842_v43, %v7759_v40  ;;  %v6475_v14 = vpop.f32.mrb[5].mxu0  ;;  %6666 = vmatprep.subr.msk.bf16.mxu1 %vm589_vm0, %v2296_v1  ;;  %v2331_v1 = vor.u32 %v2330_v52, %v2327_v46  ;;  %v2570_v21 = vsel %vm589_vm0, %v2515_v36, 0  ;;  %v2507_v46 = vsel %vm2480_vm7, %v2504_v37, %v2506_v29 }
 0x143   : > { %v801_v51 = vpop.f32.mrb[4].mxu1  ;;  %v845_v9 = vpop.f32.mrb[6].mxu0 }
 0x144   : > { %v7960_v20 = vadd.f32 %v801_v51, %v7911_v5  ;;  %v803_v57 = vpop.f32.mrb[5].mxu1  ;;  %v6476_v63 = vpop.f32.mrb[7].mxu0  ;;  %v2305_v5 = vsel %vm2162_vm6, %v2295_v27, %v2304_v16  ;;  %v2355_v27 = vsel %vm589_vm0, %v2233_v54, 0  ;;  %v2332_v33 = vsel %vm2162_vm6, %v2322_v41, %v2331_v1 }
 0x145   : > { %v7964_v40 = vadd.f32 %v803_v57, %v7918_v3  ;;  %v805_v8 = vpop.f32.mrb[6].mxu1  ;;  %v2323_v3 = vsel %vm2162_vm6, %v2313_v61, %v2322_v41  ;;  %v2388_v49 = vsel %vm589_vm0, %v2332_v33, 0  ;;  %v2358_v51 = vsel %vm589_vm0, %v2242_v32, 0  ;;  %v5743_v41 = vld [vmem:[%s9324_s6] sm:$0xff] }
 0x146   : > { %v806_v7 = vpop.f32.mrb[7].mxu1  ;;  %v2385_v12 = vsel %vm589_vm0, %v2323_v3, 0  ;;  %v2500_v16 = vrot.slane %v7768_v30, 3  ;;  %v2484_v57 = vrot.slane %v7778_v17, 3  ;;  %v8016_v30 = vld [vmem:[%s9319_s1 + $0x20] sm:$0xf]  ;;  %5746 = vperm.xlu0 %6762, %v5743_v41  }
 0x147   : > { %6224 = vmatpush3.bf16.xpose.msra.mxu0 %v2040_v44  ;;  %v2516_v63 = vrot.slane %v7954_v18, 3  ;;  %v2502_v44 = vrot.slane %v7794_v2, 3  ;;  %v2508_v54 = vrot.slane %v7881_v56, 3  ;;  %v2492_v1 = vrot.slane %v7894_v38, 3 }
 0x148   : > { %6517 = vmatprep.subr.bf16.mxu0 %v9327_v0  ;;  %v2501_v45 = vsel %vm2480_vm7, %v2498_v59, %v2500_v16  ;;  %v2485_v17 = vsel %vm2480_vm7, %v2482_v60, %v2484_v57  ;;  %v2494_v38 = vrot.slane %v7916_v28, 3 }
 0x149   : > { %6241 = vmatpush3.bf16.xpose.msra.mxu1 %v2352_v39  ;;  %v2517_v18 = vsel %vm2480_vm7, %v2514_v62, %v2516_v63  ;;  %v2525_v61 = vsel %vm589_vm0, %v2485_v17, 0  ;;  %v2503_v8 = vsel %vm2480_vm7, %v2500_v16, %v2502_v44  ;;  %v2505_v7 = vsel %vm2480_vm7, %v2502_v44, %v2504_v37 }
 0x14a   : > { %6667 = vmatprep.subr.msk.bf16.mxu1 %vm589_vm0, %v2305_v5  ;;  %v2573_v58 = vsel %vm589_vm0, %v2517_v18, 0  ;;  %5758 = vperm.xlu0 %6762, %v5755_v47  }
 0x14e   : > { %6226 = vmatmul.mubr.msk.bf16.vlgmr.msra.gmra.mrb[24].mxu0 %vm589_vm0, %v7801_v34  ;;  %v5918_v34 = vcombine.low %v2474_v55, %v7740_v6  ;;  %v2510_v55 = vrot.slane %v7904_v24, 3 }
 0x14f   : > { %6518 = vmatpush3.bf16.xpose.msra.mxu0 %v2385_v12  ;;  %6521 = vmatprep.mubr.msk.bf16.mxu0 %vm6980_vm1, %v9327_v0  ;;  %v2509_v12 = vsel %vm2480_vm7, %v2506_v29, %v2508_v54 }
 0x150   : > { %6519 = vmatprep.subr.bf16.mxu0 %v9327_v0  ;;  %v2481_v14 = vrot.slane %v5918_v34, 3  ;;  %v2511_v32 = vsel %vm2480_vm7, %v2508_v54, %v2510_v55 }
 0x151   : > { %6243 = vmatpush3.bf16.xpose.msra.mxu1 %v2355_v27 }
 0x152   : > { %6668 = vmatprep.subr.msk.bf16.mxu1 %vm589_vm0, %v2314_v50 }
 0x153   : > { %v1024_v48 = vpop.f32.mrb[8].mxu1 }
 0x154   : > { %v7990_v43 = vadd.f32 %v1024_v48, %v843_v31  ;;  %v6483_v35 = vpop.f32.mrb[9].mxu1  ;;  %v2483_v31 = vsel %vm2480_vm7, %v2481_v14, %v2482_v60 }
 0x155   : > { %v1027_v6 = vpop.f32.mrb[10].mxu1  ;;  %v2522_v13 = vsel %vm589_vm0, %v2483_v31, 0  ;;  %v2497_v35 = vsel %vm2480_vm7, %v2494_v38, %v2496_v15 }
 0x156   : > { %v6484_v9 = vpop.f32.mrb[11].mxu1  ;;  %v2543_v19 = vsel %vm589_vm0, %v2497_v35, 0 }
 0x157   : > { %6520 = vmatpush3.bf16.xpose.msra.mxu0 %v2388_v49  ;;  %v2495_v49 = vsel %vm2480_vm7, %v2492_v1, %v2494_v38 }
 0x158   : > { %6669 = vmatprep.subr.msk.bf16.mxu0 %vm589_vm0, %v2499_v53  ;;  %v2540_v24 = vsel %vm589_vm0, %v2495_v49, 0 }
 0x159   : > { %6245 = vmatpush3.bf16.xpose.msra.mxu1 %v2358_v51 }
 0x15a   : > { %6525 = vmatprep.subr.bf16.mxu1 %v9327_v0 }
 0x15e   : > { %6522 = vmatmul.mubr.msk.bf16.vlgmr.msra.gmra.mrb[28].mxu0 %vm589_vm0, %v7855_v10 }
 0x15f   : > { %6252 = vmatpush3.bf16.xpose.msra.mxu0 %v2522_v13  ;;  %6267 = vmatprep.mubr.msk.bf16.mxu0 %vm589_vm0, %v8016_v30 }
 0x160   : > { %6247 = vmatmul.mubr.msk.bf16.vlgmr.msra.gmra.mrb[28].mxu1 %vm589_vm0, %v7855_v10  ;;  %6670 = vmatprep.subr.msk.bf16.mxu0 %vm589_vm0, %v2501_v45  ;;  %v2486_v10 = vrot.slane %v7816_v4, 3  ;;  %v2488_v4 = vrot.slane %v7838_v23, 3  ;;  %v2490_v23 = vrot.slane %v7865_v11, 3 }
 0x161   : > { %6526 = vmatpush3.bf16.xpose.msra.mxu1 %v2570_v21  ;;  %6529 = vmatprep.mubr.msk.bf16.mxu1 %vm6980_vm1, %v9327_v0 }
 0x162   : > { %6527 = vmatprep.subr.bf16.mxu1 %v9327_v0  ;;  %v2487_v2 = vsel %vm2480_vm7, %v2484_v57, %v2486_v10  ;;  %v2489_v5 = vsel %vm2480_vm7, %v2486_v10, %v2488_v4  ;;  %v2491_v52 = vsel %vm2480_vm7, %v2488_v4, %v2490_v23  ;;  %v2493_v11 = vsel %vm2480_vm7, %v2490_v23, %v2492_v1 }
 0x163   : > { %v2528_v39 = vsel %vm589_vm0, %v2487_v2, 0  ;;  %v2531_v3 = vsel %vm589_vm0, %v2489_v5, 0  ;;  %v2534_v26 = vsel %vm589_vm0, %v2491_v52, 0  ;;  %v2537_v48 = vsel %vm589_vm0, %v2493_v11, 0 }
 0x167   : > { %6254 = vmatpush3.bf16.xpose.msra.mxu0 %v2525_v61 }
 0x168   : > { %6671 = vmatprep.subr.msk.bf16.mxu0 %vm589_vm0, %v2503_v8 }
 0x169   : > { %6528 = vmatpush3.bf16.xpose.msra.mxu1 %v2573_v58 }
 0x16f   : > { %6256 = vmatpush3.bf16.xpose.msra.mxu0 %v2528_v39 }
 0x170   : > { %6530 = vmatmul.mubr.msk.bf16.vlgmr.msra.gmra.mrb[32].mxu1 %vm589_vm0, %v8016_v30  ;;  %6672 = vmatprep.subr.msk.bf16.mxu0 %vm589_vm0, %v2505_v7 }
 0x177   : > { %6258 = vmatpush3.bf16.xpose.msra.mxu0 %v2531_v3 }
 0x178   : > { %6673 = vmatprep.subr.msk.bf16.mxu0 %vm589_vm0, %v2507_v46 }
 0x17f   : > { %6260 = vmatpush3.bf16.xpose.msra.mxu0 %v2534_v26 }
 0x180   : > { %6674 = vmatprep.subr.msk.bf16.mxu0 %vm589_vm0, %v2509_v12 }
 0x181   : > { %v983_v27 = vpop.f32.mrb[8].mxu0 }
 0x182   : > { %v1030_v50 = vadd.f32 %v983_v27, %v7960_v20  ;;  %v985_v33 = vpop.f32.mrb[9].mxu0  ;;  %v2513_v20 = vsel %vm2480_vm7, %v2510_v55, %v2512_v42 }
 0x183   : > { %v1031_v59 = vadd.f32 %v985_v33, %v7964_v40  ;;  %v987_v56 = vpop.f32.mrb[10].mxu0 }
 0x184   : > { %v988_v34 = vpop.f32.mrb[11].mxu0 }
 0x187   : > { %6262 = vmatpush3.bf16.xpose.msra.mxu0 %v2537_v48 }
 0x188   : > { %6675 = vmatprep.subr.msk.bf16.mxu0 %vm589_vm0, %v2511_v32  ;;  %v2685_v32 = vlaneseq }
 0x18a   : > { %v2686_v49 = vshrl.u32 %v2685_v32, 7 }
 0x18f   : > { %6264 = vmatpush3.bf16.xpose.msra.mxu0 %v2540_v24 }
 0x190   : > { %6676 = vmatprep.subr.msk.bf16.mxu0 %vm589_vm0, %v2513_v20  ;;  %v2683_v20 = vld [vmem:[%s9322_s4] sm:$0x7] }
 0x191   : > { %v1334_v40 = vpop.f32.mrb[12].mxu0 }
 0x192   : > { %v1342_v28 = vadd.f32 %v1334_v40, %v7990_v43  ;;  %v6491_v53 = vpop.f32.mrb[13].mxu0  ;;  %v2695_v40 = vsub.s32 2, %v2686_v49 }
 0x193   : > { %v1293_v14 = vpop.f32.mrb[12].mxu1  ;;  %v1337_v60 = vpop.f32.mrb[14].mxu0 }
 0x194   : > { %v1340_v6 = vadd.f32 %v1293_v14, %v1030_v50  ;;  %v1295_v51 = vpop.f32.mrb[13].mxu1  ;;  %v6492_v9 = vpop.f32.mrb[15].mxu0 }
 0x195   : > { %v1341_v62 = vadd.f32 %v1295_v51, %v1031_v59  ;;  %v1297_v42 = vpop.f32.mrb[14].mxu1  ;;  %v2696_v51 = vrot.slane %v2683_v20, %v2695_v40 }
 0x196   : > { %v1298_v31 = vpop.f32.mrb[15].mxu1  ;;  %v2687_v42 = vsub.s32 0, %v2686_v49 }
 0x197   : > { %6266 = vmatpush3.bf16.xpose.msra.mxu0 %v2543_v19 }
 0x198   : > { %6533 = vmatprep.subr.bf16.mxu0 %v9327_v0  ;;  %v2663_v38 = vpop.permute.xlu0 %2662 }
 0x19c   : > { %v2675_v53 = vpop.permute.xlu0 %2674 }
 0x19e   : > { %6268 = vmatmul.mubr.msk.bf16.vlgmr.msra.gmra.mrb[32].mxu0 %vm589_vm0, %v8016_v30  ;;  %vm8182_vm0 = vmand %vm3351_vm13, %vm3352_vm14 }
 0x19f   : > { %6537 = vmatprep.mubr.msk.bf16.mxu0 %vm6980_vm1, %v9327_v0 }
 0x1a3   : > { %v1652_v22 = vpop.f32.mrb[16].mxu1 }
 0x1a4   : > { %v1660_v15 = vadd.f32 %v1652_v22, %v1342_v28  ;;  %v6499_v43 = vpop.f32.mrb[17].mxu1 }
 0x1a5   : > { %v1655_v16 = vpop.f32.mrb[18].mxu1 }
 0x1a6   : > { %v6500_v36 = vpop.f32.mrb[19].mxu1 }
 0x1d1   : > { %v1611_v13 = vpop.f32.mrb[16].mxu0 }
 0x1d2   : > { %v1658_v45 = vadd.f32 %v1611_v13, %v1340_v6  ;;  %v1613_v57 = vpop.f32.mrb[17].mxu0 }
 0x1d3   : > { %v1659_v21 = vadd.f32 %v1613_v57, %v1341_v62  ;;  %v1615_v63 = vpop.f32.mrb[18].mxu0  ;;  %v2688_v57 = vrot.slane %v2683_v20, %v2687_v42 }
 0x1d4   : > { %v1616_v17 = vpop.f32.mrb[19].mxu0 }
 0x1e1   : > { %v1837_v44 = vpop.f32.mrb[20].mxu0 }
 0x1e2   : > { %v1845_v18 = vadd.f32 %v1837_v44, %v1660_v15  ;;  %v6507_v61 = vpop.f32.mrb[21].mxu0  ;;  %v2691_v15 = vsub.s32 1, %v2686_v49 }
 0x1e3   : > { %v1796_v8 = vpop.f32.mrb[20].mxu1  ;;  %v1840_v10 = vpop.f32.mrb[22].mxu0 }
 0x1e4   : > { %v1843_v30 = vadd.f32 %v1796_v8, %v1658_v45  ;;  %v1798_v41 = vpop.f32.mrb[21].mxu1  ;;  %v6508_v58 = vpop.f32.mrb[23].mxu0  ;;  %v2692_v63 = vrot.slane %v2683_v20, %v2691_v15 }
 0x1e5   : > { %v1844_v2 = vadd.f32 %v1798_v41, %v1659_v21  ;;  %v1800_v37 = vpop.f32.mrb[22].mxu1 }
 0x1e6   : > { %v1801_v39 = vpop.f32.mrb[23].mxu1 }
 0x1f3   : > { %v2147_v7 = vpop.f32.mrb[24].mxu1 }
 0x1f4   : > { %v2155_v4 = vadd.f32 %v2147_v7, %v1845_v18  ;;  %v6515_v5 = vpop.f32.mrb[25].mxu1 }
 0x1f5   : > { %v2150_v29 = vpop.f32.mrb[26].mxu1 }
 0x1f6   : > { %v6516_v3 = vpop.f32.mrb[27].mxu1 }
 0x221   : > { %v2106_v47 = vpop.f32.mrb[24].mxu0 }
 0x222   : > { %v2153_v46 = vadd.f32 %v2106_v47, %v1843_v30  ;;  %v2108_v23 = vpop.f32.mrb[25].mxu0  ;;  %v5957_v30 = vld [vmem:[%s9323_s5 + $0x4] sm:$0xf] }
 0x223   : > { %v2154_v52 = vadd.f32 %v2108_v23, %v1844_v2  ;;  %v2110_v54 = vpop.f32.mrb[26].mxu0  ;;  %6288 = vmatprep.mubr.msk.bf16.mxu1 %vm3678_vm12, %v5957_v30 }
 0x224   : > { %v2111_v26 = vpop.f32.mrb[27].mxu0 }
 0x231   : > { %v2465_v12 = vpop.f32.mrb[28].mxu0 }
 0x232   : > { %v2473_v1 = vadd.f32 %v2465_v12, %v2155_v4  ;;  %v6523_v27 = vpop.f32.mrb[29].mxu0  ;;  %v3397_v4 = vld [vmem:[#allocation2] sm:$0xf] }
 0x233   : > { %v2424_v11 = vpop.f32.mrb[28].mxu1  ;;  %v2468_v55 = vpop.f32.mrb[30].mxu0 }
 0x234   : > { %v8085_v50 = vadd.f32 %v2424_v11, %v2153_v46  ;;  %v2426_v33 = vpop.f32.mrb[29].mxu1  ;;  %v6524_v59 = vpop.f32.mrb[31].mxu0  ;;  %v3398_v46 = vld [vmem:[#allocation2 + $0x4] sm:$0xf]  ;;  %v3354_v11 = vld [vmem:[#allocation2 + $0x8] sm:$0xe] }
 0x235   : > { %v8087_v56 = vadd.f32 %v2426_v33, %v2154_v52  ;;  %v2428_v34 = vpop.f32.mrb[30].mxu1  ;;  %v8186_v59 = vcombine.low %v3397_v4, %v3398_v46 }
 0x236   : > { %v2429_v48 = vpop.f32.mrb[31].mxu1 }
 0x243   : > { %v2650_v24 = vpop.f32.mrb[32].mxu1 }
 0x244   : > { %v2658_v35 = vadd.f32 %v2650_v24, %v2473_v1  ;;  %v6531_v28 = vpop.f32.mrb[33].mxu1 }
 0x245   : > { %v2653_v14 = vpop.f32.mrb[34].mxu1 }
 0x246   : > { %v2667_v60 = vadd.f32 %v2663_v38, %v2658_v35  ;;  %v6532_v6 = vpop.f32.mrb[35].mxu1 }
 0x248   : > { %v2679_v9 = vmul.f32 %v2675_v53, %v2667_v60  ;;  %vm2670_vm9 = vcmp.gt.f32.partialorder %v2667_v60, 0.0 }
 0x24a   : > { %v2682_v19 = vsel %vm2670_vm9, %v2667_v60, %v2679_v9  ;;  %vm2953_vm9 = vsmask.f32 5392 }
 0x24b   : > { %v2702_v62 = vmul.f32 %v2696_v51, %v2682_v19 }
 0x271   : > { %v2609_v25 = vpop.f32.mrb[32].mxu0 }
 0x272   : > { %v2656_v31 = vadd.f32 %v2609_v25, %v8085_v50  ;;  %v2611_v22 = vpop.f32.mrb[33].mxu0 }
 0x273   : > { %v2657_v43 = vadd.f32 %v2611_v22, %v8087_v56  ;;  %v2613_v16 = vpop.f32.mrb[34].mxu0 }
 0x274   : > { %v2665_v36 = vadd.f32 %v2663_v38, %v2656_v31  ;;  %v2614_v13 = vpop.f32.mrb[35].mxu0 }
 0x275   : > { %v2666_v45 = vadd.f32 %v2663_v38, %v2657_v43 }
 0x276   : > { %v2677_v21 = vmul.f32 %v2675_v53, %v2665_v36  ;;  %vm2668_vm10 = vcmp.gt.f32.partialorder %v2665_v36, 0.0 }
 0x277   : > { %v2678_v17 = vmul.f32 %v2675_v53, %v2666_v45  ;;  %vm2669_vm11 = vcmp.gt.f32.partialorder %v2666_v45, 0.0 }
 0x278   : > { %v2680_v44 = vsel %vm2668_vm10, %v2665_v36, %v2677_v21  ;;  %vm8195_vm10 = vmor %vm2952_vm15, %vm2953_vm9 }
 0x279   : > { %v2681_v18 = vsel %vm2669_vm11, %v2666_v45, %v2678_v17  ;;  %v2700_v61 = vmul.f32 %v2688_v57, %v2680_v44  ;;  %vm3392_vm11 = vcmask 58368  }
 0x27a   : > { %v2701_v8 = vmul.f32 %v2692_v63, %v2681_v18  ;;  %vm3393_vm13 = vmand %vm3392_vm11, %vm2952_vm15 }
 0x27c   : > { %v6763_v10 = vpack.i.bf16 %v2701_v8, %v2700_v61 }
 0x27e   : > { %6764 = vxpose.xlu1.b32.start.end [1/1] (short) %v6763_v10, 128 }
 0x2bb   : > { %2812 = vxpose.xlu1.b32.start.end [1/1] (short) (narrow) %v2702_v62, 32 }
 0x2fe   : > { %v6765_v41 = vpop.trf.xlu1 }
 0x2ff   : > { %v6769_v58 = vunpack.i.h.bf16 %v6765_v41  ;;  %v6766_v2 = vunpack.i.l.bf16 %v6765_v41 }
 0x301   : > { %v6063_v37 = vpack.c.bf16 %v6769_v58, %v6769_v58  ;;  %v6047_v39 = vpack.c.bf16 %v6766_v2, %v6766_v2 }
 0x302   : > { %v6770_v7 = vpop.trf.xlu1 }
 0x303   : > { %v3115_v5 = vshrl.u32 %v6063_v37, 16  ;;  %v3118_v29 = vshll.u32 %v6063_v37, 16  ;;  %v2956_v3 = vshrl.u32 %v6047_v39, 16  ;;  %v2959_v47 = vshll.u32 %v6047_v39, 16 }
 0x304   : > { %v6774_v23 = vunpack.i.h.bf16 %v6770_v7  ;;  %v6771_v52 = vunpack.i.l.bf16 %v6770_v7 }
 0x305   : > { %v3117_v54 = vrot.slane %v3115_v5, 6  ;;  %v3120_v26 = vrot.slane %v3118_v29, 7  ;;  %v2958_v12 = vrot.slane %v2956_v3, 6  ;;  %v2961_v1 = vrot.slane %v2959_v47, 7 }
 0x306   : > { %v6064_v55 = vpack.c.bf16 %v6774_v23, %v6774_v23  ;;  %v6048_v50 = vpack.c.bf16 %v6771_v52, %v6771_v52  ;;  %v6775_v33 = vpop.trf.xlu1 }
 0x307   : > { %v8188_v56 = vor.u32 %v3120_v26, %v3117_v54  ;;  %v2962_v34 = vor.u32 %v2961_v1, %v2958_v12  ;;  %v6779_v48 = vunpack.i.h.bf16 %v6775_v33  ;;  %v6776_v25 = vunpack.i.l.bf16 %v6775_v33 }
 0x308   : > { %v3125_v32 = vshrl.u32 %v6064_v55, 16  ;;  %v3128_v38 = vshll.u32 %v6064_v55, 16  ;;  %v2965_v49 = vshrl.u32 %v6048_v50, 16  ;;  %v2968_v24 = vshll.u32 %v6048_v50, 16 }
 0x309   : > { %v3123_v20 = vrot.slane %v8188_v56, 4  ;;  %v2963_v40 = vrot.slane %v2962_v34, 4  ;;  %v3355_v35 = vsel %vm8182_vm0, %v2962_v34, %v3354_v11  ;;  %v6065_v28 = vpack.c.bf16 %v6779_v48, %v6779_v48 }
 0x30a   : > { %3356 = vst [vmem:[#allocation2 + $0x8] sm:$0xe] %v3355_v35  ;;  %v3127_v53 = vrot.slane %v3125_v32, 6  ;;  %v3130_v14 = vrot.slane %v3128_v38, 7  ;;  %v2967_v60 = vrot.slane %v2965_v49, 6  ;;  %v2970_v6 = vrot.slane %v2968_v24, 7  ;;  %v6780_v51 = vpop.trf.xlu1 }
 0x30b   : > { %v3135_v19 = vshrl.u32 %v6065_v28, 16  ;;  %v3138_v62 = vshll.u32 %v6065_v28, 16  ;;  %v6784_v22 = vunpack.i.h.bf16 %v6780_v51  ;;  %v6049_v16 = vpack.c.bf16 %v6776_v25, %v6776_v25 }
 0x30c   : > { %v3131_v42 = vor.u32 %v3130_v14, %v3127_v53  ;;  %v2971_v31 = vor.u32 %v2970_v6, %v2967_v60  ;;  %v6781_v61 = vunpack.i.l.bf16 %v6780_v51 }
 0x30d   : > { %v3137_v15 = vrot.slane %v3135_v19, 6  ;;  %v3140_v43 = vrot.slane %v3138_v62, 7  ;;  %v2975_v17 = vshrl.u32 %v6049_v16, 16  ;;  %v2978_v44 = vshll.u32 %v6049_v16, 16 }
 0x30e   : > { %v3133_v36 = vrot.slane %v3131_v42, 4  ;;  %v2972_v13 = vsel %vm8195_vm10, %v2963_v40, %v2971_v31  ;;  %v2973_v45 = vrot.slane %v2971_v31, 4  ;;  %v3132_v57 = vsel %vm8195_vm10, %v3123_v20, %v3131_v42  ;;  %v6785_v21 = vpop.trf.xlu1 }
 0x30f   : > { %3357 = vst.msk [vmem:[#allocation2 + $0xc] sm:$0xf] %vm2703_vm8, %v2972_v13  ;;  %3373 = vst.msk [vmem:[#allocation2 + $0x4c] sm:$0xf] %vm2703_vm8, %v3132_v57  ;;  %v3141_v63 = vor.u32 %v3140_v43, %v3137_v15  ;;  %v6066_v18 = vpack.c.bf16 %v6784_v22, %v6784_v22  ;;  %v6789_v8 = vunpack.i.h.bf16 %v6785_v21  ;;  %v2977_v30 = vrot.slane %v2975_v17, 6 }
 0x310   : > { %v2980_v41 = vrot.slane %v2978_v44, 7  ;;  %v6050_v39 = vpack.c.bf16 %v6781_v61, %v6781_v61  ;;  %v6786_v29 = vunpack.i.l.bf16 %v6785_v21 }
 0x311   : > { %v3143_v10 = vrot.slane %v3141_v63, 4  ;;  %v3142_v58 = vsel %vm8195_vm10, %v3133_v36, %v3141_v63  ;;  %v3145_v2 = vshrl.u32 %v6066_v18, 16  ;;  %v3148_v37 = vshll.u32 %v6066_v18, 16 }
 0x312   : > { %3374 = vst.msk [vmem:[#allocation2 + $0x50] sm:$0xf] %vm2703_vm8, %v3142_v58  ;;  %v6067_v7 = vpack.c.bf16 %v6789_v8, %v6789_v8  ;;  %v6790_v4 = vpop.trf.xlu1  ;;  %v2981_v5 = vor.u32 %v2980_v41, %v2977_v30  ;;  %v2985_v23 = vshrl.u32 %v6050_v39, 16  ;;  %v2988_v52 = vshll.u32 %v6050_v39, 16 }
 0x313   : > { %v6794_v3 = vunpack.i.h.bf16 %v6790_v4  ;;  %v3147_v47 = vrot.slane %v3145_v2, 6  ;;  %v3150_v46 = vrot.slane %v3148_v37, 7  ;;  %v6051_v50 = vpack.c.bf16 %v6786_v29, %v6786_v29 }
 0x314   : > { %v2982_v54 = vsel %vm8195_vm10, %v2973_v45, %v2981_v5  ;;  %v2983_v26 = vrot.slane %v2981_v5, 4  ;;  %v3155_v12 = vshrl.u32 %v6067_v7, 16  ;;  %v3158_v1 = vshll.u32 %v6067_v7, 16 }
 0x315   : > { %3358 = vst.msk [vmem:[#allocation2 + $0x10] sm:$0xf] %vm2703_vm8, %v2982_v54  ;;  %v3151_v27 = vor.u32 %v3150_v46, %v3147_v47  ;;  %v2987_v11 = vrot.slane %v2985_v23, 6  ;;  %v2990_v55 = vrot.slane %v2988_v52, 7  ;;  %v6068_v32 = vpack.c.bf16 %v6794_v3, %v6794_v3 }
 0x316   : > { %v6795_v33 = vpop.trf.xlu1  ;;  %v3157_v34 = vrot.slane %v3155_v12, 6  ;;  %v3160_v48 = vrot.slane %v3158_v1, 7  ;;  %v2995_v20 = vshrl.u32 %v6051_v50, 16  ;;  %v2998_v35 = vshll.u32 %v6051_v50, 16 }
 0x317   : > { %v3153_v38 = vrot.slane %v3151_v27, 4  ;;  %v2991_v49 = vor.u32 %v2990_v55, %v2987_v11  ;;  %v3152_v24 = vsel %vm8195_vm10, %v3143_v10, %v3151_v27  ;;  %v3165_v28 = vshrl.u32 %v6068_v32, 16 }
 0x318   : > { %3375 = vst.msk [vmem:[#allocation2 + $0x54] sm:$0xf] %vm2703_vm8, %v3152_v24  ;;  %v3161_v40 = vor.u32 %v3160_v48, %v3157_v34  ;;  %v3168_v53 = vshll.u32 %v6068_v32, 16  ;;  %v2997_v6 = vrot.slane %v2995_v20, 6  ;;  %v6791_v51 = vunpack.i.l.bf16 %v6790_v4 }
 0x319   : > { %v2992_v14 = vsel %vm8195_vm10, %v2983_v26, %v2991_v49  ;;  %v2993_v60 = vrot.slane %v2991_v49, 4  ;;  %v3000_v25 = vrot.slane %v2998_v35, 7  ;;  %v3167_v31 = vrot.slane %v3165_v28, 6 }
 0x31a   : > { %v6800_v19 = vpop.trf.xlu1  ;;  %3359 = vst.msk [vmem:[#allocation2 + $0x14] sm:$0xf] %vm2703_vm8, %v2992_v14  ;;  %v3163_v62 = vrot.slane %v3161_v40, 4  ;;  %v3162_v42 = vsel %vm8195_vm10, %v3153_v38, %v3161_v40  ;;  %v3170_v22 = vrot.slane %v3168_v53, 7  ;;  %v6052_v15 = vpack.c.bf16 %v6791_v51, %v6791_v51 }
 0x31b   : > { %3376 = vst.msk [vmem:[#allocation2 + $0x58] sm:$0xf] %vm2703_vm8, %v3162_v42  ;;  %v6799_v43 = vunpack.i.h.bf16 %v6795_v33  ;;  %v3001_v16 = vor.u32 %v3000_v25, %v2997_v6  ;;  %v6796_v36 = vunpack.i.l.bf16 %v6795_v33  ;;  %v6804_v13 = vunpack.i.h.bf16 %v6800_v19 }
 0x31c   : > { %v3171_v45 = vor.u32 %v3170_v22, %v3167_v31  ;;  %v3005_v57 = vshrl.u32 %v6052_v15, 16  ;;  %v3008_v21 = vshll.u32 %v6052_v15, 16  ;;  %v6801_v55 = vunpack.i.l.bf16 %v6800_v19 }
 0x31d   : > { %v6069_v63 = vpack.c.bf16 %v6799_v43, %v6799_v43  ;;  %v3002_v44 = vsel %vm8195_vm10, %v2993_v60, %v3001_v16  ;;  %v3003_v18 = vrot.slane %v3001_v16, 4  ;;  %v6053_v61 = vpack.c.bf16 %v6796_v36, %v6796_v36 }
 0x31e   : > { %v6805_v17 = vpop.trf.xlu1  ;;  %v6070_v8 = vpack.c.bf16 %v6804_v13, %v6804_v13  ;;  %3360 = vst.msk [vmem:[#allocation2 + $0x18] sm:$0xf] %vm2703_vm8, %v3002_v44  ;;  %v3173_v10 = vrot.slane %v3171_v45, 4  ;;  %v3007_v30 = vrot.slane %v3005_v57, 6  ;;  %v3010_v41 = vrot.slane %v3008_v21, 7 }
 0x31f   : > { %v3172_v58 = vsel %vm8195_vm10, %v3163_v62, %v3171_v45  ;;  %v3175_v2 = vshrl.u32 %v6069_v63, 16  ;;  %v3178_v37 = vshll.u32 %v6069_v63, 16  ;;  %v3015_v39 = vshrl.u32 %v6053_v61, 16 }
 0x320   : > { %3377 = vst.msk [vmem:[#allocation2 + $0x5c] sm:$0xf] %vm2703_vm8, %v3172_v58  ;;  %v3018_v7 = vshll.u32 %v6053_v61, 16  ;;  %v3011_v4 = vor.u32 %v3010_v41, %v3007_v30  ;;  %v3185_v5 = vshrl.u32 %v6070_v8, 16  ;;  %v3188_v29 = vshll.u32 %v6070_v8, 16 }
 0x321   : > { %v3177_v47 = vrot.slane %v3175_v2, 6  ;;  %v3180_v46 = vrot.slane %v3178_v37, 7  ;;  %v3017_v23 = vrot.slane %v3015_v39, 6  ;;  %v6809_v33 = vunpack.i.h.bf16 %v6805_v17 }
 0x322   : > { %v6810_v3 = vpop.trf.xlu1  ;;  %v3020_v52 = vrot.slane %v3018_v7, 7  ;;  %v3012_v54 = vsel %vm8195_vm10, %v3003_v18, %v3011_v4  ;;  %v3013_v26 = vrot.slane %v3011_v4, 4  ;;  %v3187_v12 = vrot.slane %v3185_v5, 6 }
 0x323   : > { %v3190_v1 = vrot.slane %v3188_v29, 7  ;;  %3361 = vst.msk [vmem:[#allocation2 + $0x1c] sm:$0xf] %vm2703_vm8, %v3012_v54  ;;  %v3181_v27 = vor.u32 %v3180_v46, %v3177_v47  ;;  %v6054_v20 = vpack.c.bf16 %v6801_v55, %v6801_v55  ;;  %v6071_v40 = vpack.c.bf16 %v6809_v33, %v6809_v33 }
 0x324   : > { %v3021_v11 = vor.u32 %v3020_v52, %v3017_v23  ;;  %v6806_v35 = vunpack.i.l.bf16 %v6805_v17  ;;  %v6814_v53 = vunpack.i.h.bf16 %v6810_v3  ;;  %v6811_v42 = vunpack.i.l.bf16 %v6810_v3 }
 0x325   : > { %v3191_v50 = vor.u32 %v3190_v1, %v3187_v12  ;;  %v3183_v48 = vrot.slane %v3181_v27, 4  ;;  %v3182_v49 = vsel %vm8195_vm10, %v3173_v10, %v3181_v27  ;;  %v3025_v14 = vshrl.u32 %v6054_v20, 16 }
 0x326   : > { %v8229_v34 = vpop.trf.xlu1  ;;  %v3022_v32 = vsel %vm8195_vm10, %v3013_v26, %v3021_v11  ;;  %v3023_v38 = vrot.slane %v3021_v11, 4  ;;  %3378 = vst.msk [vmem:[#allocation2 + $0x60] sm:$0xf] %vm2703_vm8, %v3182_v49  ;;  %v3028_v60 = vshll.u32 %v6054_v20, 16  ;;  %v3195_v6 = vshrl.u32 %v6071_v40, 16 }
 0x327   : > { %3362 = vst.msk [vmem:[#allocation2 + $0x20] sm:$0xf] %vm2703_vm8, %v3022_v32  ;;  %v3193_v24 = vrot.slane %v3191_v50, 4  ;;  %v3192_v28 = vsel %vm8195_vm10, %v3183_v48, %v3191_v50  ;;  %v3198_v51 = vshll.u32 %v6071_v40, 16  ;;  %v6055_v62 = vpack.c.bf16 %v6806_v35, %v6806_v35 }
 0x328   : > { %3379 = vst.msk [vmem:[#allocation2 + $0x64] sm:$0xf] %vm2703_vm8, %v3192_v28  ;;  %v6072_v25 = vpack.c.bf16 %v6814_v53, %v6814_v53  ;;  %v6819_v31 = vunpack.i.h.bf16 %v8229_v34  ;;  %v3027_v22 = vrot.slane %v3025_v14, 6  ;;  %v3030_v15 = vrot.slane %v3028_v60, 7 }
 0x329   : > { %v3197_v43 = vrot.slane %v3195_v6, 6  ;;  %v3200_v16 = vrot.slane %v3198_v51, 7  ;;  %v3035_v36 = vshrl.u32 %v6055_v62, 16  ;;  %v3038_v13 = vshll.u32 %v6055_v62, 16 }
 0x32a   : > { %v8240_v19 = vpop.trf.xlu1  ;;  %v3205_v45 = vshrl.u32 %v6072_v25, 16  ;;  %v3208_v57 = vshll.u32 %v6072_v25, 16  ;;  %v3031_v21 = vor.u32 %v3030_v15, %v3027_v22  ;;  %v6056_v17 = vpack.c.bf16 %v6811_v42, %v6811_v42 }
 0x32b   : > { %v3201_v63 = vor.u32 %v3200_v16, %v3197_v43  ;;  %v6073_v44 = vpack.c.bf16 %v6819_v31, %v6819_v31  ;;  %v3037_v61 = vrot.slane %v3035_v36, 6  ;;  %v3040_v8 = vrot.slane %v3038_v13, 7 }
 0x32c   : > { %v3207_v10 = vrot.slane %v3205_v45, 6  ;;  %v3210_v30 = vrot.slane %v3208_v57, 7  ;;  %v3032_v41 = vsel %vm8195_vm10, %v3023_v38, %v3031_v21  ;;  %v3033_v58 = vrot.slane %v3031_v21, 4 }
 0x32d   : > { %v3203_v2 = vrot.slane %v3201_v63, 4  ;;  %v3202_v37 = vsel %vm8195_vm10, %v3193_v24, %v3201_v63  ;;  %3363 = vst.msk [vmem:[#allocation2 + $0x24] sm:$0xf] %vm2703_vm8, %v3032_v41  ;;  %v3041_v39 = vor.u32 %v3040_v8, %v3037_v61  ;;  %v3045_v4 = vshrl.u32 %v6056_v17, 16 }
 0x32e   : > { %v8243_v18 = vpop.trf.xlu1  ;;  %3380 = vst.msk [vmem:[#allocation2 + $0x68] sm:$0xf] %vm2703_vm8, %v3202_v37  ;;  %v3211_v7 = vor.u32 %v3210_v30, %v3207_v10  ;;  %v3048_v5 = vshll.u32 %v6056_v17, 16  ;;  %v3215_v29 = vshrl.u32 %v6073_v44, 16  ;;  %v3218_v3 = vshll.u32 %v6073_v44, 16 }
 0x32f   : > { %v3042_v46 = vsel %vm8195_vm10, %v3033_v58, %v3041_v39  ;;  %v3043_v23 = vrot.slane %v3041_v39, 4  ;;  %v3047_v54 = vrot.slane %v3045_v4, 6  ;;  %v6816_v11 = vunpack.i.l.bf16 %v8229_v34 }
 0x330   : > { %v3213_v52 = vrot.slane %v3211_v7, 4  ;;  %3364 = vst.msk [vmem:[#allocation2 + $0x28] sm:$0xf] %vm2703_vm8, %v3042_v46  ;;  %v3050_v26 = vrot.slane %v3048_v5, 7  ;;  %v3212_v12 = vsel %vm8195_vm10, %v3203_v2, %v3211_v7  ;;  %v3217_v1 = vrot.slane %v3215_v29, 6 }
 0x331   : > { %v3220_v27 = vrot.slane %v3218_v3, 7  ;;  %3381 = vst.msk [vmem:[#allocation2 + $0x6c] sm:$0xf] %vm2703_vm8, %v3212_v12  ;;  %v6824_v55 = vunpack.i.h.bf16 %v8240_v19  ;;  %v6821_v48 = vunpack.i.l.bf16 %v8240_v19  ;;  %v6829_v32 = vunpack.i.h.bf16 %v8243_v18 }
 0x332   : > { %v8251_v47 = vpop.trf.xlu1  ;;  %v3051_v50 = vor.u32 %v3050_v26, %v3047_v54  ;;  %v6057_v49 = vpack.c.bf16 %v6816_v11, %v6816_v11  ;;  %v6826_v19 = vunpack.i.l.bf16 %v8243_v18 }
 0x333   : > { %v3221_v33 = vor.u32 %v3220_v27, %v3217_v1  ;;  %v6074_v24 = vpack.c.bf16 %v6824_v55, %v6824_v55  ;;  %v6058_v6 = vpack.c.bf16 %v6821_v48, %v6821_v48  ;;  %v6075_v51 = vpack.c.bf16 %v6829_v32, %v6829_v32 }
 0x334   : > { %v3052_v20 = vsel %vm8195_vm10, %v3043_v23, %v3051_v50  ;;  %v3053_v40 = vrot.slane %v3051_v50, 4  ;;  %v3055_v28 = vshrl.u32 %v6057_v49, 16  ;;  %v3058_v53 = vshll.u32 %v6057_v49, 16 }
 0x335   : > { %v3223_v35 = vrot.slane %v3221_v33, 4  ;;  %v3222_v34 = vsel %vm8195_vm10, %v3213_v52, %v3221_v33  ;;  %3365 = vst.msk [vmem:[#allocation2 + $0x2c] sm:$0xf] %vm2703_vm8, %v3052_v20  ;;  %v3225_v14 = vshrl.u32 %v6074_v24, 16  ;;  %v3228_v60 = vshll.u32 %v6074_v24, 16 }
 0x336   : > { %v8263_v38 = vpop.trf.xlu1  ;;  %3382 = vst.msk [vmem:[#allocation2 + $0x70] sm:$0xf] %vm2703_vm8, %v3222_v34  ;;  %v6834_v62 = vunpack.i.h.bf16 %v8251_v47  ;;  %v3057_v42 = vrot.slane %v3055_v28, 6  ;;  %v3060_v31 = vrot.slane %v3058_v53, 7  ;;  %v3065_v43 = vshrl.u32 %v6058_v6, 16 }
 0x337   : > { %v3227_v22 = vrot.slane %v3225_v14, 6  ;;  %v3230_v15 = vrot.slane %v3228_v60, 7  ;;  %v3068_v16 = vshll.u32 %v6058_v6, 16  ;;  %v3235_v36 = vshrl.u32 %v6075_v51, 16 }
 0x338   : > { %v3238_v13 = vshll.u32 %v6075_v51, 16  ;;  %v3061_v45 = vor.u32 %v3060_v31, %v3057_v42  ;;  %v6059_v21 = vpack.c.bf16 %v6826_v19, %v6826_v19  ;;  %v6076_v63 = vpack.c.bf16 %v6834_v62, %v6834_v62 }
 0x339   : > { %v3231_v57 = vor.u32 %v3230_v15, %v3227_v22  ;;  %v3067_v17 = vrot.slane %v3065_v43, 6  ;;  %v3070_v44 = vrot.slane %v3068_v16, 7  ;;  %v3237_v61 = vrot.slane %v3235_v36, 6 }
 0x33a   : > { %v8273_v25 = vpop.trf.xlu1  ;;  %v3240_v18 = vrot.slane %v3238_v13, 7  ;;  %v3062_v10 = vsel %vm8195_vm10, %v3053_v40, %v3061_v45  ;;  %v3063_v30 = vrot.slane %v3061_v45, 4  ;;  %v3075_v39 = vshrl.u32 %v6059_v21, 16 }
 0x33b   : > { %v3233_v41 = vrot.slane %v3231_v57, 4  ;;  %v3232_v58 = vsel %vm8195_vm10, %v3223_v35, %v3231_v57  ;;  %3366 = vst.msk [vmem:[#allocation2 + $0x30] sm:$0xf] %vm2703_vm8, %v3062_v10  ;;  %v3071_v2 = vor.u32 %v3070_v44, %v3067_v17  ;;  %v3078_v7 = vshll.u32 %v6059_v21, 16 }
 0x33c   : > { %3383 = vst.msk [vmem:[#allocation2 + $0x74] sm:$0xf] %vm2703_vm8, %v3232_v58  ;;  %v3241_v37 = vor.u32 %v3240_v18, %v3237_v61  ;;  %v3245_v4 = vshrl.u32 %v6076_v63, 16  ;;  %v3248_v5 = vshll.u32 %v6076_v63, 16  ;;  %v3077_v23 = vrot.slane %v3075_v39, 6 }
 0x33d   : > { %v3072_v29 = vsel %vm8195_vm10, %v3063_v30, %v3071_v2  ;;  %v3073_v3 = vrot.slane %v3071_v2, 4  ;;  %v3080_v52 = vrot.slane %v3078_v7, 7  ;;  %v6831_v1 = vunpack.i.l.bf16 %v8251_v47 }
 0x33e   : > { %v2828_v8 = vpop.trf.xlu1  ;;  %v3243_v46 = vrot.slane %v3241_v37, 4  ;;  %3367 = vst.msk [vmem:[#allocation2 + $0x34] sm:$0xf] %vm2703_vm8, %v3072_v29  ;;  %v3242_v54 = vsel %vm8195_vm10, %v3233_v41, %v3241_v37  ;;  %v3247_v26 = vrot.slane %v3245_v4, 6  ;;  %v3250_v12 = vrot.slane %v3248_v5, 7 }
 0x33f   : > { %3384 = vst.msk [vmem:[#allocation2 + $0x78] sm:$0xf] %vm2703_vm8, %v3242_v54  ;;  %v6839_v27 = vunpack.i.h.bf16 %v8263_v38  ;;  %v3081_v55 = vor.u32 %v3080_v52, %v3077_v23  ;;  %v6836_v33 = vunpack.i.l.bf16 %v8263_v38  ;;  %v6844_v48 = vunpack.i.h.bf16 %v8273_v25 }
 0x340   : > { %v3251_v50 = vor.u32 %v3250_v12, %v3247_v26  ;;  %v6060_v32 = vpack.c.bf16 %v6831_v1, %v6831_v1  ;;  %v6841_v60 = vunpack.i.l.bf16 %v8273_v25  ;;  %v6079_v6 = vpack.c.bf16 %v2828_v8, %v2828_v8 }
 0x341   : > { %v6077_v49 = vpack.c.bf16 %v6839_v27, %v6839_v27  ;;  %v3082_v24 = vsel %vm8195_vm10, %v3073_v3, %v3081_v55  ;;  %v3083_v20 = vrot.slane %v3081_v55, 4  ;;  %v6061_v53 = vpack.c.bf16 %v6836_v33, %v6836_v33 }
 0x342   : > { %v2829_v11 = vpop.trf.xlu1  ;;  %v3253_v40 = vrot.slane %v3251_v50, 4  ;;  %v3252_v35 = vsel %vm8195_vm10, %v3243_v46, %v3251_v50  ;;  %3368 = vst.msk [vmem:[#allocation2 + $0x38] sm:$0xf] %vm2703_vm8, %v3082_v24  ;;  %v3085_v47 = vshrl.u32 %v6060_v32, 16  ;;  %v3088_v34 = vshll.u32 %v6060_v32, 16 }
 0x343   : > { %3385 = vst.msk [vmem:[#allocation2 + $0x7c] sm:$0xf] %vm2703_vm8, %v3252_v35  ;;  %v3255_v28 = vshrl.u32 %v6077_v49, 16  ;;  %v3258_v38 = vshll.u32 %v6077_v49, 16  ;;  %v6078_v14 = vpack.c.bf16 %v6844_v48, %v6844_v48  ;;  %v3095_v22 = vshrl.u32 %v6061_v53, 16 }
 0x344   : > { %v3087_v51 = vrot.slane %v3085_v47, 6  ;;  %v3090_v19 = vrot.slane %v3088_v34, 7  ;;  %v3098_v15 = vshll.u32 %v6061_v53, 16  ;;  %v6062_v45 = vpack.c.bf16 %v6841_v60, %v6841_v60  ;;  %v8317_v60 = vld [vmem:[#allocation2 + $0x8] sm:$0xff]  }
 0x345   : > { %v3257_v62 = vrot.slane %v3255_v28, 6  ;;  %v3260_v42 = vrot.slane %v3258_v38, 7  ;;  %v3265_v43 = vshrl.u32 %v6078_v14, 16  ;;  %v3268_v16 = vshll.u32 %v6078_v14, 16 }
 0x346   : > { %v2830_v31 = vpop.trf.xlu1  ;;  %v3091_v36 = vor.u32 %v3090_v19, %v3087_v51  ;;  %v3275_v57 = vshrl.u32 %v6079_v6, 16  ;;  %v3097_v21 = vrot.slane %v3095_v22, 6  ;;  %v3100_v63 = vrot.slane %v3098_v15, 7 }
 0x347   : > { %v3261_v13 = vor.u32 %v3260_v42, %v3257_v62  ;;  %v3267_v17 = vrot.slane %v3265_v43, 6  ;;  %v3270_v44 = vrot.slane %v3268_v16, 7  ;;  %v3105_v41 = vshrl.u32 %v6062_v45, 16 }
 0x348   : > { %v3092_v25 = vsel %vm8195_vm10, %v3083_v20, %v3091_v36  ;;  %v3093_v61 = vrot.slane %v3091_v36, 4  ;;  %v3101_v10 = vor.u32 %v3100_v63, %v3097_v21  ;;  %v3108_v58 = vshll.u32 %v6062_v45, 16  ;;  %v3394_v36 = vld [vmem:[#allocation2 + $0x98] sm:$0x3] }
 0x349   : > { %v3263_v18 = vrot.slane %v3261_v13, 4  ;;  %v3262_v8 = vsel %vm8195_vm10, %v3253_v40, %v3261_v13  ;;  %3369 = vst.msk [vmem:[#allocation2 + $0x3c] sm:$0xf] %vm2703_vm8, %v3092_v25  ;;  %v3271_v30 = vor.u32 %v3270_v44, %v3267_v17  ;;  %v3277_v2 = vrot.slane %v3275_v57, 6  ;;  %v8334_v13 = vld [vmem:[#allocation2 + $0x50] sm:$0xff]  }
 0x34a   : > { %3386 = vst.msk [vmem:[#allocation2 + $0x80] sm:$0xf] %vm2703_vm8, %v3262_v8  ;;  %v3278_v37 = vshll.u32 %v6079_v6, 16  ;;  %v6080_v39 = vpack.c.bf16 %v2829_v11, %v2829_v11  ;;  %v6081_v7 = vpack.c.bf16 %v2830_v31, %v2830_v31  ;;  %v2831_v4 = vpop.trf.xlu1  ;;  %v3102_v5 = vsel %vm8195_vm10, %v3093_v61, %v3101_v10  ;;  %v8345_v8 = vld [vmem:[#allocation2 + $0x10] sm:$0xff]  }
 0x34b   : > { %v3273_v29 = vrot.slane %v3271_v30, 4  ;;  %v3107_v3 = vrot.slane %v3105_v41, 6  ;;  %v3533_v46 = vshll.u32 %v8186_v59, 16  ;;  %3370 = vst.msk [vmem:[#allocation2 + $0x40] sm:$0xf] %vm2703_vm8, %v3102_v5  ;;  %v3110_v23 = vrot.slane %v3108_v58, 7 }
 0x34c   : > { %v3272_v52 = vsel %vm8195_vm10, %v3263_v18, %v3271_v30  ;;  %v3280_v54 = vrot.slane %v3278_v37, 7  ;;  %v3285_v26 = vshrl.u32 %v6080_v39, 16  ;;  %v3288_v12 = vshll.u32 %v6080_v39, 16 }
 0x34d   : > { %3387 = vst.msk [vmem:[#allocation2 + $0x84] sm:$0xf] %vm2703_vm8, %v3272_v52  ;;  %v3295_v1 = vshrl.u32 %v6081_v7, 16  ;;  %v3298_v27 = vshll.u32 %v6081_v7, 16  ;;  %v6082_v11 = vpack.c.bf16 %v2831_v4, %v2831_v4  ;;  %v3103_v55 = vrot.slane %v3101_v10, 4 }
 0x34e   : > { %v3111_v50 = vor.u32 %v3110_v23, %v3107_v3  ;;  %v3281_v33 = vor.u32 %v3280_v54, %v3277_v2  ;;  %v3287_v48 = vrot.slane %v3285_v26, 6  ;;  %v3290_v32 = vrot.slane %v3288_v12, 7  ;;  %v8364_v23 = vld [vmem:[#allocation2 + $0x58] sm:$0xff]  }
 0x34f   : > { %v3297_v49 = vrot.slane %v3295_v1, 6  ;;  %v3300_v24 = vrot.slane %v3298_v27, 7  ;;  %v3305_v20 = vshrl.u32 %v6082_v11, 16  ;;  %v3308_v14 = vshll.u32 %v6082_v11, 16  ;;  %v8369_v11 = vld [vmem:[#allocation2 + $0x18] sm:$0xff]  }
 0x350   : > { %v3112_v40 = vsel %vm8195_vm10, %v3103_v55, %v3111_v50  ;;  %v3113_v35 = vrot.slane %v3111_v50, 4  ;;  %v3282_v47 = vsel %vm8195_vm10, %v3273_v29, %v3281_v33  ;;  %v3283_v34 = vrot.slane %v3281_v33, 4 }
 0x351   : > { %3371 = vst.msk [vmem:[#allocation2 + $0x44] sm:$0xf] %vm2703_vm8, %v3112_v40  ;;  %3388 = vst.msk [vmem:[#allocation2 + $0x88] sm:$0xf] %vm2703_vm8, %v3282_v47  ;;  %v3291_v28 = vor.u32 %v3290_v32, %v3287_v48  ;;  %v3301_v38 = vor.u32 %v3300_v24, %v3297_v49  ;;  %v3307_v53 = vrot.slane %v3305_v20, 6  ;;  %v3310_v42 = vrot.slane %v3308_v14, 7 }
 0x352   : > { %v3122_v6 = vsel %vm8195_vm10, %v3113_v35, %v8188_v56  ;;  %v3531_v31 = vshrl.u32 %v8186_v59, 16  ;;  %v3535_v56 = vrot.slane %v3533_v46, 1  ;;  %v3538_v16 = vshll.u32 %v8317_v60, 16 }
 0x353   : > { %3372 = vst.msk [vmem:[#allocation2 + $0x48] sm:$0xf] %vm2703_vm8, %v3122_v6  ;;  %v3292_v51 = vsel %vm8195_vm10, %v3283_v34, %v3291_v28  ;;  %v3293_v19 = vrot.slane %v3291_v28, 4  ;;  %v3303_v62 = vrot.slane %v3301_v38, 4  ;;  %v3311_v43 = vor.u32 %v3310_v42, %v3307_v53  ;;  %v8382_v34 = vld [vmem:[#allocation2 + $0x60] sm:$0xff]  }
 0x354   : > { %3389 = vst.msk [vmem:[#allocation2 + $0x8c] sm:$0xf] %vm2703_vm8, %v3292_v51  ;;  %v8327_v22 = vld [vmem:[#allocation2 + $0x80] sm:$0xff]   ;;  %v3536_v44 = vor.u32 %v3535_v56, %v3531_v31  ;;  %v3540_v25 = vrot.slane %v3538_v16, 1  ;;  %v3610_v9 = vshll.u32 %v8334_v13, 16  ;;  %v3546_v46 = vshll.u32 %v8345_v8, 16 }
 0x355   : > { %v3302_v15 = vsel %vm8195_vm10, %v3293_v19, %v3301_v38  ;;  %v3312_v45 = vsel %vm8195_vm10, %v3303_v62, %v3311_v43  ;;  %v3313_v57 = vrot.slane %v3311_v43, 4  ;;  %v3658_v21 = vshll.u32 %v8327_v22, 16  ;;  %v8388_v19 = vld [vmem:[#allocation2 + $0x20] sm:$0xff]  }
 0x356   : > { %3390 = vst.msk [vmem:[#allocation2 + $0x90] sm:$0xf] %vm2703_vm8, %v3302_v15  ;;  %3391 = vst.msk [vmem:[#allocation2 + $0x94] sm:$0xf] %vm2703_vm8, %v3312_v45  ;;  %v3662_v37 = vshrl.u32 %v8327_v22, 16  ;;  %v3541_v39 = vsel %vm440_vm2, %v3536_v44, %v3540_v25  ;;  %v3612_v27 = vrot.slane %v3610_v9, 1 }
 0x357   : > { %v3395_v17 = vsel %vm3393_vm13, %v3313_v57, %v3394_v36  ;;  %v8350_v30 = vrot.slane %v3658_v21, 1  ;;  %v3683_v55 = vsel %vm3678_vm12, %v3541_v39, 0  ;;  %v3542_v33 = vshrl.u32 %v8317_v60, 16 }
 0x358   : > { %v8340_v63 = vld [vmem:[#allocation2 + $0x40] sm:$0xff]   ;;  %3396 = vst [vmem:[#allocation2 + $0x98] sm:$0x3] %v3395_v17  ;;  %v3548_v49 = vrot.slane %v3546_v46, 1  ;;  %v3618_v24 = vshll.u32 %v8364_v23, 16  ;;  %v3554_v47 = vshll.u32 %v8369_v11, 16 }
 0x359   : > { %v3594_v18 = vshll.u32 %v8340_v63, 16  ;;  %v3598_v58 = vshrl.u32 %v8340_v63, 16  ;;  %v3664_v52 = vor.u32 %v3662_v37, %v8350_v30  ;;  %v3544_v35 = vor.u32 %v3542_v33, %v3540_v25  ;;  %v8402_v25 = vld [vmem:[#allocation2 + $0x68] sm:$0xff]  }
 0x35a   : > { %v8342_v61 = vld [vmem:[#allocation2 + $0x48] sm:$0xff]   ;;  %v3614_v53 = vshrl.u32 %v8334_v13, 16  ;;  %v3620_v14 = vrot.slane %v3618_v24, 1  ;;  %v3550_v51 = vshrl.u32 %v8345_v8, 16  ;;  %v3556_v42 = vrot.slane %v3554_v47, 1  ;;  %v8463_v47 = vld [vmem:[#allocation2 + $0x70] sm:$0xff]  }
 0x35b   : > { %v8348_v10 = vld [vmem:[#allocation2 + $0x88] sm:$0xff]   ;;  %v8352_v41 = vrot.slane %v3594_v18, 1  ;;  %v3602_v2 = vshll.u32 %v8342_v61, 16  ;;  %v3606_v3 = vshrl.u32 %v8342_v61, 16  ;;  %v3549_v38 = vsel %vm440_vm2, %v3544_v35, %v3548_v49 }
 0x35c   : > { %v3666_v7 = vshll.u32 %v8348_v10, 16  ;;  %v3670_v20 = vshrl.u32 %v8348_v10, 16  ;;  %v3616_v62 = vor.u32 %v3614_v53, %v3612_v27  ;;  %v3626_v31 = vshll.u32 %v8382_v34, 16  ;;  %v8468_v53 = vld [vmem:[#allocation2 + $0x78] sm:$0xff]  }
 0x35d   : > { %v8359_v4 = vld [vmem:[#allocation2 + $0x90] ss:$0 sps:$4 sm:$0x11]   ;;  %v3600_v5 = vor.u32 %v3598_v58, %v8352_v41  ;;  %v3604_v29 = vrot.slane %v3602_v2, 1  ;;  %v3686_v15 = vsel %vm3678_vm12, %v3549_v38, 0  ;;  %v3552_v16 = vor.u32 %v3550_v51, %v3548_v49 }
 0x35e   : > { %v3668_v54 = vrot.slane %v3666_v7, 1  ;;  %v3674_v26 = vshll.u32 %v8359_v4, 16  ;;  %v3621_v43 = vsel %vm440_vm2, %v3616_v62, %v3620_v14  ;;  %v3622_v45 = vshrl.u32 %v8364_v23, 16  ;;  %v8466_v38 = vld [vmem:[#allocation2 + $0x30] sm:$0xff]  }
 0x35f   : > { %v3605_v12 = vsel %vm440_vm2, %v3600_v5, %v3604_v29  ;;  %v3608_v1 = vor.u32 %v3606_v3, %v3604_v29  ;;  %v3557_v36 = vsel %vm440_vm2, %v3552_v16, %v3556_v42  ;;  %v3628_v57 = vrot.slane %v3626_v31, 1  ;;  %v8411_v29 = vld [vmem:[#allocation2 + $0x28] sm:$0xff]  }
 0x360   : > { %6677 = vmatprep.subr.msk.bf16.mxu1 %vm3678_vm12, %v3605_v12  ;;  %v3669_v50 = vsel %vm440_vm2, %v3664_v52, %v3668_v54  ;;  %v3676_v40 = vrot.slane %v3674_v26, 1  ;;  %v3672_v28 = vor.u32 %v3670_v20, %v3668_v54  ;;  %v3562_v21 = vshll.u32 %v8388_v19, 16  ;;  %v8424_v54 = vld [vmem:[%s9323_s5 + $0x4] sm:$0xf] }
 0x361   : > { %6273 = vmatpush3.bf16.xpose.msra.mxu1 %v3683_v55  ;;  %v3613_v48 = vsel %vm440_vm2, %v3608_v1, %v3612_v27  ;;  %v3731_v32 = vsel %vm3678_vm12, %v3669_v50, 0  ;;  %v3624_v17 = vor.u32 %v3622_v45, %v3620_v14  ;;  %v3820_v44 = vsel %vm3678_vm12, %v8186_v59, 0  ;;  %v8438_v55 = vld [vmem:[%s9323_s5] sm:$0xf] }
 0x362   : > { %6678 = vmatprep.subr.msk.bf16.mxu1 %vm3678_vm12, %v3613_v48  ;;  %6534 = vmatpush3.bf16.xpose.msra.mxu0 %v3731_v32  ;;  %v3677_v6 = vsel %vm440_vm2, %v3672_v28, %v3676_v40  ;;  %v3689_v18 = vsel %vm3678_vm12, %v3557_v36, 0  ;;  %v3558_v9 = vshrl.u32 %v8369_v11, 16  ;;  %v3958_v58 = vrot.slane %v8340_v63, 1 }
 0x363   : > { %6535 = vmatprep.subr.bf16.mxu0 %v9327_v0  ;;  %v3734_v56 = vsel %vm3678_vm12, %v3677_v6, 0  ;;  %v3960_v2 = vrot.slane %v8342_v61, 1  ;;  %v3629_v37 = vsel %vm440_vm2, %v3624_v17, %v3628_v57  ;;  %v3564_v39 = vrot.slane %v3562_v21, 1  ;;  %v8492_v17 = vld [vmem:[#allocation2 + $0x38] sm:$0xff]  }
 0x364   : > { %v3944_v7 = vrot.slane %v8317_v60, 1  ;;  %v3962_v5 = vrot.slane %v8334_v13, 1  ;;  %v3974_v3 = vrot.slane %v8327_v22, 1  ;;  %v3976_v46 = vrot.slane %v8348_v10, 1 }
 0x365   : > { %v8416_v59 = vsel %vm854_vm3, %v3958_v58, %v3960_v2  ;;  %v3946_v52 = vrot.slane %v8345_v8, 1  ;;  %v3634_v26 = vshll.u32 %v8402_v25, 16  ;;  %v3964_v1 = vrot.slane %v8364_v23, 1 }
 0x366   : > { %v8430_v12 = vsel %vm854_vm3, %v3960_v2, %v3962_v5  ;;  %v3978_v27 = vrot.slane %v8359_v4, 1  ;;  %v8441_v50 = vsel %vm854_vm3, %v3974_v3, %v3976_v46  ;;  %v3560_v4 = vor.u32 %v3558_v9, %v3556_v42 }
 0x367   : > { %v8446_v33 = vsel %vm854_vm3, %v3944_v7, %v3946_v52  ;;  %v8453_v48 = vsel %vm854_vm3, %v3962_v5, %v3964_v1  ;;  %v3570_v49 = vshll.u32 %v8411_v29, 16  ;;  %v3948_v24 = vrot.slane %v8369_v11, 1 }
 0x368   : > { %v8456_v32 = vsel %vm854_vm3, %v3976_v46, %v3978_v27  ;;  %v3966_v20 = vrot.slane %v8382_v34, 1  ;;  %v3565_v40 = vsel %vm440_vm2, %v3560_v4, %v3564_v39  ;;  %v3636_v35 = vrot.slane %v3634_v26, 1 }
 0x369   : > { %6275 = vmatpush3.bf16.xpose.msra.mxu1 %v3686_v15  ;;  %v3950_v28 = vrot.slane %v8388_v19, 1  ;;  %v8471_v14 = vsel %vm854_vm3, %v3946_v52, %v3948_v24  ;;  %v3968_v51 = vrot.slane %v8402_v25, 1  ;;  %v3822_v42 = vsel %vm3678_vm12, %v8317_v60, 0 }
 0x36a   : > { %6679 = vmatprep.subr.msk.bf16.mxu1 %vm3678_vm12, %v3621_v43  ;;  %6536 = vmatpush3.bf16.xpose.msra.mxu0 %v3734_v56  ;;  %v8474_v6 = vsel %vm854_vm3, %v3964_v1, %v3966_v20  ;;  %v3692_v15 = vsel %vm3678_vm12, %v3565_v40, 0  ;;  %v3566_v43 = vshrl.u32 %v8388_v19, 16  ;;  %v3572_v56 = vrot.slane %v3570_v49, 1 }
 0x36b   : > { %6685 = vmatprep.subr.msk.bf16.mxu0 %vm3678_vm12, %v8340_v63  ;;  %v8480_v31 = vsel %vm854_vm3, %v3948_v24, %v3950_v28  ;;  %v8485_v16 = vsel %vm854_vm3, %v3966_v20, %v3968_v51  ;;  %v3642_v45 = vshll.u32 %v8463_v47, 16  ;;  %v3970_v21 = vrot.slane %v8463_v47, 1 }
 0x36c   : > { %v3568_v9 = vor.u32 %v3566_v43, %v3564_v39  ;;  %v3638_v5 = vshrl.u32 %v8402_v25, 16  ;;  %v3578_v1 = vshll.u32 %v8466_v38, 16  ;;  %v3824_v24 = vsel %vm3678_vm12, %v8345_v8, 0 }
 0x36d   : > { %v3644_v26 = vrot.slane %v3642_v45, 1  ;;  %v3574_v20 = vshrl.u32 %v8411_v29, 16  ;;  %v3582_v45 = vshrl.u32 %v8466_v38, 16 }
 0x36e   : > { %v3573_v52 = vsel %vm440_vm2, %v3568_v9, %v3572_v56  ;;  %v3640_v4 = vor.u32 %v3638_v5, %v3636_v35  ;;  %v8552_v5 = vld [vmem:[#allocation2 + $0xc] sm:$0xf] }
 0x36f   : > { %v3695_v49 = vsel %vm3678_vm12, %v3573_v52, 0  ;;  %v3576_v8 = vor.u32 %v3574_v20, %v3572_v56 }
 0x371   : > { %6277 = vmatpush3.bf16.xpose.msra.mxu1 %v3689_v18  ;;  %6538 = vmatmul.mubr.msk.bf16.vlgmr.msra.gmra.mrb[36].mxu0 %vm3678_vm12, %v8424_v54  ;;  %v3972_v18 = vrot.slane %v8468_v53, 1 }
 0x372   : > { %6680 = vmatprep.subr.msk.bf16.mxu1 %vm3678_vm12, %v3629_v37  ;;  %6294 = vmatpush3.bf16.xpose.msra.mxu0 %v3820_v44  ;;  %v3954_v44 = vrot.slane %v8466_v38, 1  ;;  %v8502_v37 = vsel %vm854_vm3, %v3968_v51, %v3970_v21  ;;  %v3650_v51 = vshll.u32 %v8468_v53, 16 }
 0x373   : > { %6686 = vmatprep.subr.msk.bf16.mxu0 %vm3678_vm12, %v8342_v61  ;;  %6309 = vmatprep.mubr.msk.bf16.mxu0 %vm3678_vm12, %v8438_v55  ;;  %v3630_v61 = vshrl.u32 %v8382_v34, 16  ;;  %v8511_v27 = vsel %vm854_vm3, %v3970_v21, %v3972_v18  ;;  %v8515_v39 = vsel %vm854_vm3, %v3972_v18, %v3974_v3  ;;  %v3654_v21 = vshrl.u32 %v8468_v53, 16  ;;  %v8549_v18 = vld [vmem:[#allocation2 + $0x50] sm:$0xff]  }
 0x375   : > { %v3632_v62 = vor.u32 %v3630_v61, %v3628_v57  ;;  %v3952_v57 = vrot.slane %v8411_v29, 1  ;;  %v3645_v61 = vsel %vm440_vm2, %v3640_v4, %v3644_v26  ;;  %v4748_v4 = vld [vmem:[#allocation2 + $0x8] sm:$0xc] }
 0x377   : > { %v3637_v36 = vsel %vm440_vm2, %v3632_v62, %v3636_v35  ;;  %v8499_v2 = vsel %vm854_vm3, %v3950_v28, %v3952_v57  ;;  %v8506_v46 = vsel %vm854_vm3, %v3952_v57, %v3954_v44  ;;  %v3580_v28 = vrot.slane %v3578_v1, 1 }
 0x378   : > { %v3646_v62 = vshrl.u32 %v8463_v47, 16 }
 0x379   : > { %6279 = vmatpush3.bf16.xpose.msra.mxu1 %v3692_v15  ;;  %v3581_v35 = vsel %vm440_vm2, %v3576_v8, %v3580_v28  ;;  %v3586_v15 = vshll.u32 %v8492_v17, 16  ;;  %v3584_v56 = vor.u32 %v3582_v45, %v3580_v28  ;;  %v8576_v28 = vld [vmem:[#allocation2 + $0x18] sm:$0xff]  }
 0x37a   : > { %6681 = vmatprep.subr.msk.bf16.mxu1 %vm3678_vm12, %v3637_v36  ;;  %6296 = vmatpush3.bf16.xpose.msra.mxu0 %v3822_v42  ;;  %v3652_v42 = vrot.slane %v3650_v51, 1  ;;  %v3648_v43 = vor.u32 %v3646_v62, %v3644_v26  ;;  %v3698_v63 = vsel %vm3678_vm12, %v3581_v35, 0  ;;  %v3826_v36 = vsel %vm3678_vm12, %v8369_v11, 0  ;;  %v8581_v62 = vld [vmem:[#allocation2 + $0x60] sm:$0xff]  }
 0x37b   : > { %6687 = vmatprep.subr.msk.bf16.mxu0 %vm3678_vm12, %v8334_v13  ;;  %v3956_v13 = vrot.slane %v8492_v17, 1  ;;  %v3590_v26 = vshrl.u32 %v8492_v17, 16 }
 0x37c   : > { %v3656_v9 = vor.u32 %v3654_v21, %v3652_v42  ;;  %v3832_v21 = vsel %vm3678_vm12, %v8466_v38, 0  ;;  %v8631_v38 = vld [vmem:[#allocation2 + $0x78] sm:$0xff]  }
 0x37d   : > { %v8522_v40 = vsel %vm854_vm3, %v3954_v44, %v3956_v13  ;;  %v8529_v3 = vsel %vm854_vm3, %v3956_v13, %v3958_v58  ;;  %v3653_v58 = vsel %vm440_vm2, %v3648_v43, %v3652_v42  ;;  %v8547_v44 = vld [vmem:[#allocation2 + $0x48] sm:$0xff]   ;;  %v4771_v13 = vrot.slane %v8549_v18, 2 }
 0x37e   : > { %v3661_v52 = vsel %vm440_vm2, %v3656_v9, %v8350_v30  ;;  %v9329_v1 = vrot.slane %v8547_v44, 2  ;;  %v8566_v30 = vld [vmem:[#allocation2 + $0x58] sm:$0xff]   ;;  %v3830_v42 = vsel %vm3678_vm12, %v8411_v29, 0  ;;  %v4757_v43 = vrot.slane %v8576_v28, 2  ;;  %v8619_v9 = vld [vmem:[#allocation2 + $0x70] sm:$0xff]  }
 0x37f   : > { %v4773_v8 = vrot.slane %v8566_v30, 2  ;;  %v4775_v29 = vrot.slane %v8581_v62, 2 }
 0x380   : > { %v8572_v20 = vsel %vm1667_vm4, %v9329_v1, %v4771_v13 }
 0x381   : > { %6281 = vmatpush3.bf16.xpose.msra.mxu1 %v3695_v49  ;;  %v8604_v45 = vsel %vm1667_vm4, %v4773_v8, %v4775_v29 }
 0x382   : > { %6682 = vmatprep.subr.msk.bf16.mxu1 %vm3678_vm12, %v3645_v61  ;;  %6298 = vmatpush3.bf16.xpose.msra.mxu0 %v3824_v24  ;;  %v8564_v24 = vld [vmem:[#allocation2 + $0x10] sm:$0xff]  }
 0x383   : > { %6688 = vmatprep.subr.msk.bf16.mxu0 %vm3678_vm12, %v8364_v23  ;;  %v3588_v23 = vrot.slane %v3586_v15, 1 }
 0x385   : > { %v3589_v57 = vsel %vm440_vm2, %v3584_v56, %v3588_v23  ;;  %v3592_v49 = vor.u32 %v3590_v26, %v3588_v23  ;;  %v8610_v23 = vld [vmem:[#allocation2 + $0x28] sm:$0xff]   ;;  %v6970_v26 = vld [vmem:[#allocation2 + $0x4] sm:$0xf] }
 0x386   : > { %v3701_v11 = vsel %vm3678_vm12, %v3589_v57, 0 }
 0x387   : > { %v3597_v61 = vsel %vm440_vm2, %v3592_v49, %v8352_v41  ;;  %v8589_v41 = vsel %vm1667_vm4, %v4771_v13, %v4773_v8  ;;  %v8647_v8 = vld [vmem:[#allocation2 + $0x90] sm:$0xff]   ;;  %vm5769_vm2 = vcmask 261120  }
 0x388   : > { %v3704_v35 = vsel %vm3678_vm12, %v3597_v61, 0  ;;  %v8640_v61 = vld [vmem:[#allocation2 + $0x80] sm:$0xff]  }
 0x389   : > { %6283 = vmatpush3.bf16.xpose.msra.mxu1 %v3698_v63  ;;  %v8595_v63 = vld [vmem:[#allocation2 + $0x20] sm:$0xff]  }
 0x38a   : > { %6683 = vmatprep.subr.msk.bf16.mxu1 %vm3678_vm12, %v3653_v58  ;;  %6300 = vmatpush3.bf16.xpose.msra.mxu0 %v3826_v36  ;;  %v8597_v58 = vld [vmem:[#allocation2 + $0x68] sm:$0xff]   ;;  %v4759_v56 = vrot.slane %v8595_v63, 2 }
 0x38b   : > { %6689 = vmatprep.subr.msk.bf16.mxu0 %vm3678_vm12, %v8382_v34  ;;  %v3828_v34 = vsel %vm3678_vm12, %v8388_v19, 0  ;;  %v6012_v19 = vcombine.low %v4748_v4, %v8552_v5  ;;  %v4777_v57 = vrot.slane %v8597_v58, 2  ;;  %v8634_v4 = vld [vmem:[#allocation2 + $0x38] sm:$0xff]  }
 0x38d   : > { %v4754_v51 = vrot.slane %v6012_v19, 2  ;;  %v4779_v19 = vrot.slane %v8619_v9, 2 }
 0x391   : > { %6285 = vmatpush3.bf16.xpose.msra.mxu1 %v3701_v11  ;;  %v8625_v11 = vsel %vm1667_vm4, %v4775_v29, %v4777_v57  ;;  %v3834_v29 = vsel %vm3678_vm12, %v8492_v17, 0  ;;  %v4783_v17 = vrot.slane %v8640_v61, 2 }
 0x392   : > { %6684 = vmatprep.subr.msk.bf16.mxu1 %vm3678_vm12, %v3661_v52  ;;  %6302 = vmatpush3.bf16.xpose.msra.mxu0 %v3828_v34  ;;  %v8629_v52 = vld [vmem:[#allocation2 + $0x30] sm:$0xff]   ;;  %v4761_v34 = vrot.slane %v8610_v23, 2 }
 0x393   : > { %6690 = vmatprep.subr.msk.bf16.mxu0 %vm3678_vm12, %v8402_v25  ;;  %v4755_v25 = vrot.slane %v8564_v24, 2 }
 0x394   : > { %v8637_v49 = vsel %vm1667_vm4, %v4759_v56, %v4761_v34 }
 0x395   : > { %v8586_v15 = vsel %vm1667_vm4, %v4754_v51, %v4755_v25  ;;  %v8601_v36 = vsel %vm1667_vm4, %v4755_v25, %v4757_v43  ;;  %v4763_v51 = vrot.slane %v8629_v52, 2  ;;  %v8645_v25 = vld [vmem:[#allocation2 + $0x88] sm:$0xff]  }
 0x399   : > { %6287 = vmatpush3.bf16.xpose.msra.mxu1 %v3704_v35  ;;  %v8649_v35 = vld [vmem:[#allocation2 + $0x40] sm:$0xff]  }
 0x39a   : > { %6304 = vmatpush3.bf16.xpose.msra.mxu0 %v3830_v42  ;;  %6541 = vmatprep.subr.bf16.mxu1 %v9327_v0  ;;  %v8652_v42 = vsel %vm1667_vm4, %v4777_v57, %v4779_v19 }
 0x39b   : > { %6691 = vmatprep.subr.msk.bf16.mxu0 %vm3678_vm12, %v8463_v47  ;;  %v3852_v47 = vsel %vm3678_vm12, %v8327_v22, 0  ;;  %v8622_v22 = vsel %vm1667_vm4, %v4757_v43, %v4759_v56  ;;  %v4781_v43 = vrot.slane %v8631_v38, 2  ;;  %v8657_v56 = vld [vmem:[#allocation2 + $0x98] ss:$0 sps:$4 sm:$0x33]  }
 0x39d   : > { %v8667_v57 = vsel %vm1667_vm4, %v4779_v19, %v4781_v43  ;;  %v4789_v19 = vrot.slane %v8657_v56, 2 }
 0x3a0   : > { %6289 = vmatmul.mubr.msk.bf16.vlgmr.msra.gmra.mrb[36].mxu1 %vm3678_vm12, %v8424_v54  ;;  %v3937_v54 = vld [vmem:[#allocation2] sm:$0xe] }
 0x3a1   : > { %6542 = vmatpush3.bf16.xpose.msra.mxu1 %v3852_v47  ;;  %6545 = vmatprep.mubr.msk.bf16.mxu1 %vm6980_vm1, %v9327_v0  ;;  %v5982_v13 = vcombine.low %v3937_v54, %v6970_v26  ;;  %v4785_v26 = vrot.slane %v8645_v25, 2 }
 0x3a2   : > { %6306 = vmatpush3.bf16.xpose.msra.mxu0 %v3832_v21  ;;  %6543 = vmatprep.subr.bf16.mxu1 %v9327_v0  ;;  %v4765_v21 = vrot.slane %v8634_v4, 2 }
 0x3a3   : > { %6692 = vmatprep.subr.msk.bf16.mxu0 %vm3678_vm12, %v8468_v53  ;;  %v3854_v53 = vsel %vm3678_vm12, %v8348_v10, 0  ;;  %v3943_v47 = vrot.slane %v5982_v13, 1  ;;  %v8660_v10 = vsel %vm1667_vm4, %v4761_v34, %v4763_v51  ;;  %v4787_v34 = vrot.slane %v8647_v8, 2 }
 0x3a4   : > { %v8670_v54 = vsel %vm1667_vm4, %v4763_v51, %v4765_v21  ;;  %v4767_v13 = vrot.slane %v8649_v35, 2 }
 0x3a5   : > { %v8684_v51 = vsel %vm1667_vm4, %v4785_v26, %v4787_v34  ;;  %v8693_v1 = vsel %vm1667_vm4, %v4787_v34, %v4789_v19  ;;  %v4254_v19 = vrot.slane %v8564_v24, 1 }
 0x3a6   : > { %9360 = vst [vmem:[#allocation3_spill] sm:$0xff] %v8684_v51  ;;  %9363 = vst [vmem:[#allocation6_spill] sm:$0xff] %v8693_v1 }
 0x3a9   : > { %6544 = vmatpush3.bf16.xpose.msra.mxu1 %v3854_v53  ;;  %v8680_v53 = vsel %vm1667_vm4, %v4781_v43, %v4783_v17 }
 0x3aa   : > { %6693 = vmatprep.subr.msk.bf16.mxu1 %vm3678_vm12, %v8416_v59  ;;  %6308 = vmatpush3.bf16.xpose.msra.mxu0 %v3834_v29  ;;  %v3945_v59 = vsel %vm854_vm3, %v3943_v47, %v3944_v7  ;;  %v8687_v29 = vsel %vm1667_vm4, %v4765_v21, %v4767_v13  ;;  %v9364_v7 = vrot.slane %v8547_v44, 2  ;;  %v4032_v47 = vsel %vm3678_vm12, %v8441_v50, 0  ;;  %v4121_v50 = vld [vmem:[#allocation2 + $0x8] sm:$0xe] }
 0x3ab   : > { %6549 = vmatprep.subr.bf16.mxu0 %v9327_v0  ;;  %9361 = vst [vmem:[#allocation4_spill] sm:$0xff] %v8687_v29  ;;  %v8690_v0 = vsel %vm1667_vm4, %v4783_v17, %v4785_v26  ;;  %v3984_v60 = vsel %vm3678_vm12, %v3945_v59, 0  ;;  %v9366_v21 = vmov 0.0   ;;  %v8715_v17 = vld [vmem:[%s9323_s5 + $0x8] sm:$0xf]  ;;  %v4270_v26 = vrot.slane %v8549_v18, 1 }
 0x3ac   : > { %9362 = vst [vmem:[#allocation5_spill] sm:$0xff] %v8690_v0  ;;  %v8701_v43 = vsel %vm1667_vm4, %v4767_v13, %v9364_v7  ;;  %v8724_v34 = vcombine.low %v4121_v50, %v8552_v5  ;;  %v4035_v13 = vsel %vm3678_vm12, %v8456_v32, 0  ;;  %v3990_v32 = vsel %vm3678_vm12, %v8471_v14, 0  ;;  %v8750_v50 = vld [vmem:[%s9323_s5 + $0xc] sm:$0xf]  ;;  %v8835_v0 = vld [vmem:[#allocation2 + $0x80] sm:$0xff]  }
 0x3ad   : > { %9365 = vst [vmem:[#allocation7_spill] sm:$0xff] %v8701_v43  ;;  %v8804_v43 = vld [vmem:[#allocation2 + $0x70] sm:$0xff]   ;;  %v8837_v29 = vld [vmem:[#allocation2 + $0x40] sm:$0xff]  }
 0x3ae   : > { %9377 = vst [vmem:[#allocation18_spill] sm:$0xff] %v8804_v43 }
 0x3b0   : > { %6546 = vmatmul.mubr.msk.bf16.vlgmr.msra.gmra.mrb[40].mxu1 %vm3678_vm12, %v8438_v55 }
 0x3b1   : > { %6315 = vmatpush3.bf16.xpose.msra.mxu1 %v3984_v60  ;;  %6310 = vmatmul.mubr.msk.bf16.vlgmr.msra.gmra.mrb[40].mxu0 %vm3678_vm12, %v8438_v55  ;;  %v9330_v55 = vrot.slane %v8547_v44, 1  ;;  %v4272_v60 = vrot.slane %v8566_v30, 1 }
 0x3b2   : > { %6694 = vmatprep.subr.msk.bf16.mxu1 %vm3678_vm12, %v8430_v12  ;;  %6550 = vmatpush3.bf16.xpose.msra.mxu0 %v4032_v47  ;;  %v3987_v12 = vsel %vm3678_vm12, %v8446_v33, 0  ;;  %v4253_v33 = vrot.slane %v8724_v34, 1  ;;  %v4256_v47 = vrot.slane %v8576_v28, 1 }
 0x3b3   : > { %6551 = vmatprep.subr.bf16.mxu0 %v9366_v21  ;;  %6553 = vmatprep.mubr.msk.bf16.mxu0 %vm6980_vm1, %v9366_v21  ;;  %v4271_v59 = vsel %vm854_vm3, %v9330_v55, %v4270_v26  ;;  %v4273_v7 = vsel %vm854_vm3, %v4270_v26, %v4272_v60  ;;  %v8802_v55 = vld [vmem:[#allocation2 + $0x28] sm:$0xff]  }
 0x3b4   : > { %6330 = vmatprep.mubr.msk.bf16.mxu1 %vm3678_vm12, %v8715_v17  ;;  %v4255_v5 = vsel %vm854_vm3, %v4253_v33, %v4254_v19  ;;  %v4257_v14 = vsel %vm854_vm3, %v4254_v19, %v4256_v47  ;;  %v4276_v33 = vrot.slane %v8597_v58, 1  ;;  %9376 = vst [vmem:[#allocation17_spill] sm:$0xff] %v8802_v55 }
 0x3b5   : > { %v4297_v26 = vsel %vm3678_vm12, %v4257_v14, 0  ;;  %v8785_v14 = vld [vmem:[#allocation2 + $0x20] sm:$0xff]  }
 0x3b6   : > { %9372 = vst [vmem:[#allocation13_spill] sm:$0xff] %v8785_v14 }
 0x3b9   : > { %6317 = vmatpush3.bf16.xpose.msra.mxu1 %v3987_v12  ;;  %v4274_v12 = vrot.slane %v8581_v62, 1 }
 0x3ba   : > { %6695 = vmatprep.subr.msk.bf16.mxu1 %vm3678_vm12, %v8453_v48  ;;  %6552 = vmatpush3.bf16.xpose.msra.mxu0 %v4035_v13  ;;  %v4294_v48 = vsel %vm3678_vm12, %v4255_v5, 0 }
 0x3bb   : > { %6701 = vmatprep.subr.msk.bf16.mxu0 %vm3678_vm12, %v4271_v59  ;;  %v4275_v13 = vsel %vm854_vm3, %v4272_v60, %v4274_v12  ;;  %v4258_v59 = vrot.slane %v8595_v63, 1  ;;  %v4260_v60 = vrot.slane %v8610_v23, 1 }
 0x3bd   : > { %v4259_v19 = vsel %vm854_vm3, %v4256_v47, %v4258_v59  ;;  %v8783_v47 = vld [vmem:[#allocation2 + $0x98] sm:$0xff]  }
 0x3be   : > { %v4300_v5 = vsel %vm3678_vm12, %v4259_v19, 0  ;;  %9371 = vst [vmem:[#allocation12_spill] sm:$0xff] %v8783_v47  ;;  %v3999_v19 = vsel %vm3678_vm12, %v8506_v46, 0  ;;  %v5568_v46 = vrot.slane %v8785_v14, 3  ;;  %v4280_v14 = vrot.slane %v8631_v38, 1 }
 0x3c1   : > { %6319 = vmatpush3.bf16.xpose.msra.mxu1 %v3990_v32  ;;  %6554 = vmatmul.mubr.msk.bf16.vlgmr.msra.gmra.mrb[44].mxu0 %vm3678_vm12, %v8715_v17  ;;  %v8774_v32 = vld [vmem:[#allocation2 + $0x50] sm:$0xff]  }
 0x3c2   : > { %6696 = vmatprep.subr.msk.bf16.mxu1 %vm3678_vm12, %v8474_v6  ;;  %6336 = vmatpush3.bf16.xpose.msra.mxu0 %v4294_v48  ;;  %v3993_v6 = vsel %vm3678_vm12, %v8480_v31, 0  ;;  %v3996_v31 = vsel %vm3678_vm12, %v8499_v2, 0  ;;  %9367 = vst [vmem:[#allocation8_spill] sm:$0xff] %v8774_v32  ;;  %v8776_v48 = vld [vmem:[#allocation2 + $0x58] sm:$0xff]   ;;  %v8781_v2 = vld [vmem:[#allocation2 + $0x90] sm:$0xff]  }
 0x3c3   : > { %6702 = vmatprep.subr.msk.bf16.mxu0 %vm3678_vm12, %v4273_v7  ;;  %6351 = vmatprep.mubr.msk.bf16.mxu0 %vm3678_vm12, %v8750_v50  ;;  %9368 = vst [vmem:[#allocation9_spill] sm:$0xff] %v8776_v48  ;;  %v8779_v7 = vld [vmem:[#allocation2 + $0x60] sm:$0xff]   ;;  %9370 = vst [vmem:[#allocation11_spill] sm:$0xff] %v8781_v2  ;;  %v5596_v1 = vrot.slane %v8781_v2, 3 }
 0x3c4   : > { %9369 = vst [vmem:[#allocation10_spill] sm:$0xff] %v8779_v7 }
 0x3c9   : > { %6321 = vmatpush3.bf16.xpose.msra.mxu1 %v3993_v6  ;;  %v8789_v6 = vld [vmem:[#allocation2 + $0x18] sm:$0xff]  }
 0x3ca   : > { %6697 = vmatprep.subr.msk.bf16.mxu1 %vm3678_vm12, %v8485_v16  ;;  %6338 = vmatpush3.bf16.xpose.msra.mxu0 %v4297_v26  ;;  %v4277_v16 = vsel %vm854_vm3, %v4274_v12, %v4276_v33  ;;  %v4278_v12 = vrot.slane %v8619_v9, 1  ;;  %9373 = vst [vmem:[#allocation14_spill] sm:$0xff] %v8789_v6  ;;  %v5580_v26 = vrot.slane %v8774_v32, 3  ;;  %v9343_v2 = vrot.slane %v8789_v6, 3 }
 0x3cb   : > { %6703 = vmatprep.subr.msk.bf16.mxu0 %vm3678_vm12, %v4275_v13  ;;  %v5582_v13 = vrot.slane %v8776_v48, 3  ;;  %v8817_v48 = vld [vmem:[#allocation2 + $0x38] sm:$0xff]  }
 0x3cc   : > { %9379 = vst [vmem:[#allocation20_spill] sm:$0xff] %v8817_v48  ;;  %v5574_v6 = vrot.slane %v8817_v48, 3 }
 0x3d1   : > { %6323 = vmatpush3.bf16.xpose.msra.mxu1 %v3996_v31  ;;  %v8795_v31 = vld [vmem:[#allocation2 + $0x68] sm:$0xff]  }
 0x3d2   : > { %6698 = vmatprep.subr.msk.bf16.mxu1 %vm3678_vm12, %v8502_v37  ;;  %6340 = vmatpush3.bf16.xpose.msra.mxu0 %v4300_v5  ;;  %v4261_v37 = vsel %vm854_vm3, %v4258_v59, %v4260_v60  ;;  %9374 = vst [vmem:[#allocation15_spill] sm:$0xff] %v8795_v31  ;;  %v8798_v5 = vsel %vm2480_vm7, %v5580_v26, %v5582_v13 }
 0x3d3   : > { %6704 = vmatprep.subr.msk.bf16.mxu0 %vm3678_vm12, %v4277_v16  ;;  %9375 = vst [vmem:[#allocation16_spill] sm:$0xff] %v8798_v5  ;;  %v5584_v16 = vrot.slane %v8779_v7, 3  ;;  %v4303_v59 = vsel %vm3678_vm12, %v4261_v37, 0  ;;  %v4279_v5 = vsel %vm854_vm3, %v4276_v33, %v4278_v12  ;;  %v8813_v7 = vld [vmem:[#allocation2 + $0x30] sm:$0xff]   ;;  %v8815_v37 = vld [vmem:[#allocation2 + $0x78] sm:$0xff]   ;;  %v8832_v33 = vsel %vm2480_vm7, %v9343_v2, %v5568_v46 }
 0x3d4   : > { %9378 = vst [vmem:[#allocation19_spill] sm:$0xff] %v8813_v7  ;;  %9383 = vst [vmem:[#allocation23_spill] sm:$0xff] %v8832_v33  ;;  %v5572_v2 = vrot.slane %v8813_v7, 3  ;;  %v5590_v33 = vrot.slane %v8815_v37, 3 }
 0x3d5   : > { %v8821_v32 = vsel %vm2480_vm7, %v5582_v13, %v5584_v16  ;;  %v5586_v13 = vrot.slane %v8795_v31, 3 }
 0x3d6   : > { %9380 = vst [vmem:[#allocation21_spill] sm:$0xff] %v8821_v32  ;;  %v5588_v32 = vrot.slane %v8804_v43, 3  ;;  %v8868_v48 = vsel %vm2480_vm7, %v5572_v2, %v5574_v6 }
 0x3d7   : > { %v8851_v51 = vsel %vm2480_vm7, %v5584_v16, %v5586_v13  ;;  %9388 = vst [vmem:[#allocation28_spill] sm:$0xff] %v8868_v48 }
 0x3d8   : > { %v8857_v43 = vsel %vm2480_vm7, %v5586_v13, %v5588_v32  ;;  %v8865_v7 = vsel %vm2480_vm7, %v5588_v32, %v5590_v33  ;;  %v5576_v13 = vrot.slane %v8837_v29, 3 }
 0x3d9   : > { %6325 = vmatpush3.bf16.xpose.msra.mxu1 %v3999_v19  ;;  %v4262_v19 = vrot.slane %v8629_v52, 1  ;;  %9385 = vst [vmem:[#allocation25_spill] sm:$0xff] %v8857_v43  ;;  %9387 = vst [vmem:[#allocation27_spill] sm:$0xff] %v8865_v7 }
 0x3da   : > { %6699 = vmatprep.subr.msk.bf16.mxu1 %vm3678_vm12, %v8511_v27  ;;  %6342 = vmatpush3.bf16.xpose.msra.mxu0 %v4303_v59  ;;  %v9381_v27 = vrot.slane %v8783_v47, 3  ;;  %v8845_v47 = vld [vmem:[#allocation2 + $0x48] sm:$0xff]  }
 0x3db   : > { %6705 = vmatprep.subr.msk.bf16.mxu0 %vm3678_vm12, %v4279_v5  ;;  %v5570_v5 = vrot.slane %v8802_v55, 3 }
 0x3dc   : > { %v8827_v59 = vsel %vm2480_vm7, %v5596_v1, %v9381_v27  ;;  %v4263_v27 = vsel %vm854_vm3, %v4260_v60, %v4262_v19  ;;  %v4002_v60 = vsel %vm3678_vm12, %v8522_v40, 0  ;;  %v4281_v40 = vsel %vm854_vm3, %v4278_v12, %v4280_v14 }
 0x3dd   : > { %9382 = vst [vmem:[#allocation22_spill] sm:$0xff] %v8827_v59  ;;  %v8843_v59 = vld [vmem:[#allocation2 + $0x88] sm:$0xff]   ;;  %v8854_v31 = vsel %vm2480_vm7, %v5568_v46, %v5570_v5  ;;  %v8862_v55 = vsel %vm2480_vm7, %v5570_v5, %v5572_v2  ;;  %v4306_v16 = vsel %vm3678_vm12, %v4263_v27, 0  ;;  %v5592_v46 = vrot.slane %v8835_v0, 3 }
 0x3de   : > { %9384 = vst [vmem:[#allocation24_spill] sm:$0xff] %v8854_v31  ;;  %9386 = vst [vmem:[#allocation26_spill] sm:$0xff] %v8862_v55  ;;  %v4264_v5 = vrot.slane %v8634_v4, 1  ;;  %v5594_v32 = vrot.slane %v8843_v59, 3  ;;  %v5578_v2 = vrot.slane %v8845_v47, 3 }
 0x3df   : > { %v8881_v27 = vsel %vm2480_vm7, %v5590_v33, %v5592_v46  ;;  %v4282_v33 = vrot.slane %v8640_v61, 1 }
 0x3e0   : > { %9389 = vst [vmem:[#allocation29_spill] sm:$0xff] %v8881_v27  ;;  %v8887_v48 = vsel %vm2480_vm7, %v5592_v46, %v5594_v32  ;;  %v8893_v12 = vsel %vm2480_vm7, %v5594_v32, %v5596_v1 }
 0x3e1   : > { %6327 = vmatpush3.bf16.xpose.msra.mxu1 %v4002_v60  ;;  %v8884_v60 = vsel %vm2480_vm7, %v5574_v6, %v5576_v13  ;;  %9391 = vst [vmem:[#allocation31_spill] sm:$0xff] %v8887_v48  ;;  %9393 = vst [vmem:[#allocation33_spill] sm:$0xff] %v8893_v12  ;;  %v4005_v6 = vsel %vm3678_vm12, %v8529_v3, 0  ;;  %v4286_v48 = vrot.slane %v8647_v8, 1  ;;  %v4283_v1 = vsel %vm854_vm3, %v4280_v14, %v4282_v33 }
 0x3e2   : > { %6700 = vmatprep.subr.msk.bf16.mxu1 %vm3678_vm12, %v8515_v39  ;;  %6344 = vmatpush3.bf16.xpose.msra.mxu0 %v4306_v16  ;;  %9390 = vst [vmem:[#allocation30_spill] sm:$0xff] %v8884_v60  ;;  %v8890_v39 = vsel %vm2480_vm7, %v5576_v13, %v5578_v2  ;;  %v8896_v16 = vsel %vm2480_vm7, %v5578_v2, %v5580_v26  ;;  %v4266_v13 = vrot.slane %v8649_v35, 1  ;;  %v6945_v26 = vld [vmem:[#allocation2 + $0x98] ss:$0 sps:$4 sm:$0x11]   ;;  %v4509_v2 = vshrl.u32 %v8547_v44, 16 }
 0x3e3   : > { %6706 = vmatprep.subr.msk.bf16.mxu0 %vm3678_vm12, %v4281_v40  ;;  %9392 = vst [vmem:[#allocation32_spill] sm:$0xff] %v8890_v39  ;;  %9394 = vst [vmem:[#allocation34_spill] sm:$0xff] %v8896_v16  ;;  %v4265_v40 = vsel %vm854_vm3, %v4262_v19, %v4264_v5  ;;  %v4284_v19 = vrot.slane %v8645_v25, 1  ;;  %v4521_v14 = vshll.u32 %v8549_v18, 16  ;;  %v4449_v60 = vshll.u32 %v8564_v24, 16 }
 0x3e4   : > { %v4309_v46 = vsel %vm3678_vm12, %v4265_v40, 0  ;;  %v4267_v3 = vsel %vm854_vm3, %v4264_v5, %v4266_v13  ;;  %v4512_v40 = vshll.u32 %v8547_v44, 16  ;;  %v4511_v5 = vrot.slane %v4509_v2, 1 }
 0x3e5   : > { %v4287_v32 = vsel %vm854_vm3, %v4284_v19, %v4286_v48  ;;  %v4312_v16 = vsel %vm3678_vm12, %v4267_v3, 0  ;;  %v4285_v12 = vsel %vm854_vm3, %v4282_v33, %v4284_v19  ;;  %v4593_v33 = vshll.u32 %v8647_v8, 16 }
 0x3e6   : > { %v4514_v39 = vrot.slane %v4512_v40, 2  ;;  %v4523_v19 = vrot.slane %v4521_v14, 2  ;;  %v9395_v3 = vrot.slane %v8547_v44, 1  ;;  %v4438_v40 = vshrl.u32 %v8724_v34, 16 }
 0x3e7   : > { %v4451_v14 = vrot.slane %v4449_v60, 2  ;;  %v4455_v60 = vshrl.u32 %v8576_v28, 16 }
 0x3e8   : > { %v4269_v2 = vsel %vm854_vm3, %v4266_v13, %v9395_v3  ;;  %v4595_v13 = vrot.slane %v4593_v33, 2 }
 0x3e9   : > { %6329 = vmatpush3.bf16.xpose.msra.mxu1 %v4005_v6  ;;  %v4288_v6 = vrot.slane %v6945_v26, 1  ;;  %v4446_v26 = vshrl.u32 %v8564_v24, 16  ;;  %v4441_v24 = vshll.u32 %v8724_v34, 16  ;;  %v4315_v27 = vsel %vm3678_vm12, %v4269_v2, 0 }
 0x3ea   : > { %6346 = vmatpush3.bf16.xpose.msra.mxu0 %v4309_v46  ;;  %6557 = vmatprep.subr.bf16.mxu1 %v9366_v21  ;;  %v4518_v46 = vshrl.u32 %v8549_v18, 16  ;;  %v4440_v34 = vrot.slane %v4438_v40, 1  ;;  %v4536_v2 = vshrl.u32 %v8581_v62, 16  ;;  %v4539_v40 = vshll.u32 %v8581_v62, 16 }
 0x3eb   : > { %6707 = vmatprep.subr.msk.bf16.mxu0 %vm3678_vm12, %v4283_v1  ;;  %v4342_v1 = vsel %vm3678_vm12, %v4287_v32, 0  ;;  %v4289_v18 = vsel %vm854_vm3, %v4286_v48, %v4288_v6  ;;  %v4590_v32 = vshrl.u32 %v8647_v8, 16  ;;  %v4530_v48 = vshll.u32 %v8566_v30, 16 }
 0x3ec   : > { %v4581_v6 = vshrl.u32 %v8645_v25, 16  ;;  %v8938_v8 = vor.u32 %v4514_v39, %v4511_v5  ;;  %v4345_v44 = vsel %vm3678_vm12, %v4289_v18, 0  ;;  %v4443_v7 = vrot.slane %v4441_v24, 2 }
 0x3ed   : > { %v4532_v43 = vrot.slane %v4530_v48, 2  ;;  %v4458_v5 = vshll.u32 %v8576_v28, 16  ;;  %v4599_v18 = vshrl.u32 %v8657_v56, 16  ;;  %v4457_v24 = vrot.slane %v4455_v60, 1 }
 0x3ef   : > { %v4601_v48 = vrot.slane %v4599_v18, 1 }
 0x3f0   : > { %6331 = vmatmul.mubr.msk.bf16.vlgmr.msra.gmra.mrb[44].mxu1 %vm3678_vm12, %v8715_v17  ;;  %v4520_v17 = vrot.slane %v4518_v46, 1  ;;  %v4584_v46 = vshll.u32 %v8645_v25, 16 }
 0x3f1   : > { %6558 = vmatpush3.bf16.xpose.msra.mxu1 %v4342_v1  ;;  %6561 = vmatprep.mubr.msk.bf16.mxu1 %vm6980_vm1, %v9366_v21  ;;  %v4592_v1 = vrot.slane %v4590_v32, 1  ;;  %v4444_v32 = vor.u32 %v4443_v7, %v4440_v34  ;;  %v4541_v7 = vrot.slane %v4539_v40, 2 }
 0x3f2   : > { %6348 = vmatpush3.bf16.xpose.msra.mxu0 %v4312_v16  ;;  %6559 = vmatprep.subr.bf16.mxu1 %v9366_v21  ;;  %v4527_v16 = vshrl.u32 %v8566_v30, 16  ;;  %v4524_v3 = vor.u32 %v4523_v19, %v4520_v17  ;;  %v4583_v30 = vrot.slane %v4581_v6, 1  ;;  %v4586_v31 = vrot.slane %v4584_v46, 2 }
 0x3f3   : > { %6708 = vmatprep.subr.msk.bf16.mxu0 %vm3678_vm12, %v4285_v12  ;;  %v4448_v12 = vrot.slane %v4446_v26, 1  ;;  %v4596_v26 = vor.u32 %v4595_v13, %v4592_v1  ;;  %v4602_v17 = vshll.u32 %v8657_v56, 16  ;;  %v4464_v46 = vshrl.u32 %v8595_v63, 16 }
 0x3f4   : > { %v4529_v55 = vrot.slane %v4527_v16, 1  ;;  %v4525_v25 = vsel %vm1349_vm5, %v8938_v8, %v4524_v3  ;;  %v8950_v19 = vor.u32 %v4586_v31, %v4583_v30  ;;  %v4460_v16 = vrot.slane %v4458_v5, 2 }
 0x3f5   : > { %v4452_v39 = vor.u32 %v4451_v14, %v4448_v12  ;;  %v4604_v6 = vrot.slane %v4602_v17, 2  ;;  %v4467_v12 = vshll.u32 %v8595_v63, 16  ;;  %v4545_v1 = vshrl.u32 %v8597_v58, 16 }
 0x3f6   : > { %v4533_v33 = vor.u32 %v4532_v43, %v4529_v55  ;;  %v4538_v55 = vrot.slane %v4536_v2, 1  ;;  %v4461_v31 = vor.u32 %v4460_v16, %v4457_v24  ;;  %v4548_v13 = vshll.u32 %v8597_v58, 16 }
 0x3f7   : > { %v4453_v28 = vsel %vm1349_vm5, %v4444_v32, %v4452_v39  ;;  %v4605_v14 = vor.u32 %v4604_v6, %v4601_v48  ;;  %v4469_v34 = vrot.slane %v4467_v12, 2  ;;  %v4547_v5 = vrot.slane %v4545_v1, 1 }
 0x3f8   : > { %v4611_v56 = vsel %vm3678_vm12, %v4453_v28, 0  ;;  %v4534_v43 = vsel %vm1349_vm5, %v4524_v3, %v4533_v33  ;;  %v4462_v63 = vsel %vm1349_vm5, %v4452_v39, %v4461_v31  ;;  %v4466_v3 = vrot.slane %v4464_v46, 1 }
 0x3f9   : > { %6560 = vmatpush3.bf16.xpose.msra.mxu1 %v4345_v44  ;;  %v4542_v44 = vor.u32 %v4541_v7, %v4538_v55  ;;  %v4606_v30 = vsel %vm1349_vm5, %v4596_v26, %v4605_v14  ;;  %v4550_v18 = vrot.slane %v4548_v13, 2  ;;  %v4473_v58 = vshrl.u32 %v8610_v23, 16 }
 0x3fa   : > { %6709 = vmatprep.subr.msk.bf16.mxu1 %vm3678_vm12, %v4525_v25  ;;  %6350 = vmatpush3.bf16.xpose.msra.mxu0 %v4315_v27  ;;  %v4597_v27 = vsel %vm1349_vm5, %v8950_v19, %v4596_v26  ;;  %v4614_v25 = vsel %vm3678_vm12, %v4462_v63, 0  ;;  %v4662_v17 = vsel %vm3678_vm12, %v4606_v30, 0  ;;  %v4470_v32 = vor.u32 %v4469_v34, %v4466_v3 }
 0x3fb   : > { %6565 = vmatprep.subr.bf16.mxu0 %v9366_v21  ;;  %v4659_v62 = vsel %vm3678_vm12, %v4597_v27, 0  ;;  %v4543_v60 = vsel %vm1349_vm5, %v4533_v33, %v4542_v44  ;;  %v4476_v2 = vshll.u32 %v8610_v23, 16  ;;  %v4551_v39 = vor.u32 %v4550_v18, %v4547_v5 }
 0x3fc   : > { %v4554_v26 = vshrl.u32 %v8619_v9, 16  ;;  %v4471_v33 = vsel %vm1349_vm5, %v4461_v31, %v4470_v32  ;;  %v4475_v40 = vrot.slane %v4473_v58, 1  ;;  %v4557_v24 = vshll.u32 %v8619_v9, 16  ;;  %v9004_v9 = vld [vmem:[%s9323_s5 + $0x14] sm:$0xf] }
 0x3fd   : > { %v4478_v28 = vrot.slane %v4476_v2, 2  ;;  %v4617_v16 = vsel %vm3678_vm12, %v4471_v33, 0  ;;  %v4552_v27 = vsel %vm1349_vm5, %v4542_v44, %v4551_v39  ;;  %v4795_v23 = vsel %vm3678_vm12, %v8586_v15, 0 }
 0x3fe   : > { %v4556_v48 = vrot.slane %v4554_v26, 1  ;;  %v4559_v6 = vrot.slane %v4557_v24, 2  ;;  %v4563_v15 = vshrl.u32 %v8631_v38, 16  ;;  %v4566_v55 = vshll.u32 %v8631_v38, 16 }
 0x3ff   : > { %v4798_v12 = vsel %vm3678_vm12, %v8601_v36, 0  ;;  %v4491_v13 = vshrl.u32 %v8634_v4, 16  ;;  %v4494_v38 = vshll.u32 %v8634_v4, 16  ;;  %v4572_v3 = vshrl.u32 %v8640_v61, 16 }
 0x400   : > { %6562 = vmatmul.mubr.msk.bf16.vlgmr.msra.gmra.mrb[48].mxu1 %vm3678_vm12, %v8750_v50  ;;  %v4560_v7 = vor.u32 %v4559_v6, %v4556_v48  ;;  %v4565_v14 = vrot.slane %v4563_v15, 1  ;;  %v4568_v44 = vrot.slane %v4566_v55, 2  ;;  %v4801_v4 = vsel %vm3678_vm12, %v8622_v22, 0  ;;  %v4932_v6 = vld [vmem:[#allocation2 + $0x10] sm:$0xc] }
 0x401   : > { %6357 = vmatpush3.bf16.xpose.msra.mxu1 %v4611_v56  ;;  %6352 = vmatmul.mubr.msk.bf16.vlgmr.msra.gmra.mrb[48].mxu0 %vm3678_vm12, %v8750_v50  ;;  %v8973_v50 = vld [vmem:[%s9323_s5 + $0x10] sm:$0xf]  ;;  %v4482_v56 = vshrl.u32 %v8629_v52, 16  ;;  %v4493_v34 = vrot.slane %v4491_v13, 1  ;;  %v4496_v30 = vrot.slane %v4494_v38, 2  ;;  %v4574_v18 = vrot.slane %v4572_v3, 1 }
 0x402   : > { %6710 = vmatprep.subr.msk.bf16.mxu1 %vm3678_vm12, %v4534_v43  ;;  %6566 = vmatpush3.bf16.xpose.msra.mxu0 %v4659_v62  ;;  %v4485_v43 = vshll.u32 %v8629_v52, 16  ;;  %v4569_v63 = vor.u32 %v4568_v44, %v4565_v14  ;;  %v4503_v58 = vshll.u32 %v8649_v35, 16  ;;  %v9403_v14 = vld [vmem:[#allocation14_spill] sm:$0xff]  ;;  %v9406_v3 = vld [vmem:[#allocation11_spill] sm:$0xff] }
 0x403   : > { %6567 = vmatprep.subr.bf16.mxu0 %v9366_v21  ;;  %6569 = vmatprep.mubr.msk.bf16.mxu0 %vm6980_vm1, %v9366_v21  ;;  %v4484_v62 = vrot.slane %v4482_v56, 1  ;;  %v5065_v44 = vrot.slane %v9403_v14, 2  ;;  %v9405_v38 = vld [vmem:[#allocation10_spill] sm:$0xff] }
 0x404   : > { %6372 = vmatprep.mubr.msk.bf16.mxu1 %vm3678_vm12, %v8973_v50  ;;  %v4487_v31 = vrot.slane %v4485_v43, 2  ;;  %v4570_v5 = vsel %vm1349_vm5, %v4560_v7, %v4569_v63  ;;  %v4505_v26 = vrot.slane %v4503_v58, 2  ;;  %v9400_v43 = vld [vmem:[#allocation8_spill] sm:$0xff] }
 0x405   : > { %v5079_v15 = vrot.slane %v9400_v43, 2  ;;  %v5323_v58 = vshll.u32 %v9400_v43, 16 }
 0x406   : > { %v4488_v1 = vor.u32 %v4487_v31, %v4484_v62 }
 0x409   : > { %6359 = vmatpush3.bf16.xpose.msra.mxu1 %v4614_v25  ;;  %v4575_v25 = vshll.u32 %v8640_v61, 16 }
 0x40a   : > { %6711 = vmatprep.subr.msk.bf16.mxu1 %vm3678_vm12, %v4543_v60  ;;  %6568 = vmatpush3.bf16.xpose.msra.mxu0 %v4662_v17  ;;  %v4497_v17 = vor.u32 %v4496_v30, %v4493_v34 }
 0x40b   : > { %6717 = vmatprep.subr.msk.bf16.mxu0 %vm3678_vm12, %v8572_v20  ;;  %v4479_v20 = vor.u32 %v4478_v28, %v4475_v40  ;;  %v4804_v40 = vsel %vm3678_vm12, %v8637_v49, 0 }
 0x40c   : > { %v4498_v61 = vsel %vm1349_vm5, %v4488_v1, %v4497_v17 }
 0x40d   : > { %v4480_v52 = vsel %vm1349_vm5, %v4470_v32, %v4479_v20  ;;  %v4489_v36 = vsel %vm1349_vm5, %v4479_v20, %v4488_v1  ;;  %v4500_v32 = vshrl.u32 %v8649_v35, 16  ;;  %v4626_v22 = vsel %vm3678_vm12, %v4498_v61, 0 }
 0x40e   : > { %v4620_v46 = vsel %vm3678_vm12, %v4480_v52, 0  ;;  %v4623_v60 = vsel %vm3678_vm12, %v4489_v36, 0  ;;  %v5095_v36 = vrot.slane %v9406_v3, 2 }
 0x411   : > { %6361 = vmatpush3.bf16.xpose.msra.mxu1 %v4617_v16  ;;  %6570 = vmatmul.mubr.msk.bf16.vlgmr.msra.gmra.mrb[52].mxu0 %vm3678_vm12, %v8973_v50  ;;  %v4807_v16 = vsel %vm3678_vm12, %v8660_v10, 0  ;;  %v9396_v10 = vld [vmem:[#allocation3_spill] sm:$0xff] }
 0x412   : > { %6712 = vmatprep.subr.msk.bf16.mxu1 %vm3678_vm12, %v4552_v27  ;;  %6378 = vmatpush3.bf16.xpose.msra.mxu0 %v4795_v23  ;;  %v4810_v27 = vsel %vm3678_vm12, %v8670_v54, 0  ;;  %v9398_v54 = vld [vmem:[#allocation5_spill] sm:$0xff] }
 0x413   : > { %6718 = vmatprep.subr.msk.bf16.mxu0 %vm3678_vm12, %v8589_v41  ;;  %6393 = vmatprep.mubr.msk.bf16.mxu0 %vm3678_vm12, %v9004_v9  ;;  %v4561_v41 = vsel %vm1349_vm5, %v4551_v39, %v4560_v7  ;;  %v4502_v39 = vrot.slane %v4500_v32, 1  ;;  %v9401_v7 = vld [vmem:[#allocation6_spill] sm:$0xff]  ;;  %v5320_v32 = vshrl.u32 %v9400_v43, 16 }
 0x414   : > { %v4846_v62 = vsel %vm3678_vm12, %v9401_v7, 0 }
 0x415   : > { %v4506_v35 = vor.u32 %v4505_v26, %v4502_v39  ;;  %v5257_v26 = vshrl.u32 %v9403_v14, 16 }
 0x417   : > { %v4516_v49 = vsel %vm1349_vm5, %v4506_v35, %v8938_v8  ;;  %v9397_v8 = vld [vmem:[#allocation4_spill] sm:$0xff] }
 0x419   : > { %6363 = vmatpush3.bf16.xpose.msra.mxu1 %v4620_v46  ;;  %v9402_v46 = vld [vmem:[#allocation7_spill] sm:$0xff] }
 0x41a   : > { %6713 = vmatprep.subr.msk.bf16.mxu1 %vm3678_vm12, %v4561_v41  ;;  %6380 = vmatpush3.bf16.xpose.msra.mxu0 %v4798_v12  ;;  %v4816_v12 = vsel %vm3678_vm12, %v9402_v46, 0  ;;  %v9404_v41 = vld [vmem:[#allocation12_spill] sm:$0xff] }
 0x41b   : > { %6719 = vmatprep.subr.msk.bf16.mxu0 %vm3678_vm12, %v8604_v45  ;;  %v4577_v45 = vrot.slane %v4575_v25, 2  ;;  %v5097_v1 = vrot.slane %v9404_v41, 2 }
 0x41d   : > { %v4578_v2 = vor.u32 %v4577_v45, %v4574_v18 }
 0x41f   : > { %v4579_v33 = vsel %vm1349_vm5, %v4569_v63, %v4578_v2  ;;  %v4588_v24 = vsel %vm1349_vm5, %v4578_v2, %v8950_v19  ;;  %v4813_v19 = vsel %vm3678_vm12, %v9397_v8, 0  ;;  %v5083_v63 = vrot.slane %v9405_v38, 2 }
 0x420   : > { %v5338_v8 = vshrl.u32 %v9405_v38, 16 }
 0x421   : > { %6365 = vmatpush3.bf16.xpose.msra.mxu1 %v4623_v60  ;;  %v5098_v60 = vsel %vm1667_vm4, %v5095_v36, %v5097_v1 }
 0x422   : > { %6714 = vmatprep.subr.msk.bf16.mxu1 %vm3678_vm12, %v4570_v5  ;;  %6382 = vmatpush3.bf16.xpose.msra.mxu0 %v4801_v4  ;;  %v6957_v5 = vld [vmem:[#allocation2 + $0xa0] ss:$0 sps:$4 sm:$0x33]   ;;  %v5153_v61 = vsel %vm3678_vm12, %v5098_v60, 0 }
 0x423   : > { %6720 = vmatprep.subr.msk.bf16.mxu0 %vm3678_vm12, %v8625_v11  ;;  %v4507_v11 = vsel %vm1349_vm5, %v4497_v17, %v4506_v35  ;;  %v9407_v4 = vld [vmem:[#allocation13_spill] sm:$0xff]  ;;  %v9408_v35 = vld [vmem:[#allocation15_spill] sm:$0xff] }
 0x424   : > { %v4629_v28 = vsel %vm3678_vm12, %v4507_v11, 0  ;;  %v5067_v18 = vrot.slane %v9407_v4, 2  ;;  %v5085_v11 = vrot.slane %v9408_v35, 2  ;;  %v5266_v7 = vshrl.u32 %v9407_v4, 16 }
 0x429   : > { %6367 = vmatpush3.bf16.xpose.msra.mxu1 %v4626_v22  ;;  %v5099_v22 = vrot.slane %v6957_v5, 2  ;;  %v5347_v5 = vshrl.u32 %v9408_v35, 16 }
 0x42a   : > { %6715 = vmatprep.subr.msk.bf16.mxu1 %vm3678_vm12, %v4579_v33  ;;  %6384 = vmatpush3.bf16.xpose.msra.mxu0 %v4804_v40  ;;  %v5260_v33 = vshll.u32 %v9403_v14, 16  ;;  %v5068_v40 = vsel %vm1667_vm4, %v5065_v44, %v5067_v18 }
 0x42b   : > { %6721 = vmatprep.subr.msk.bf16.mxu0 %vm3678_vm12, %v8652_v42  ;;  %v4632_v42 = vsel %vm3678_vm12, %v4516_v49, 0 }
 0x431   : > { %6369 = vmatpush3.bf16.xpose.msra.mxu1 %v4629_v28  ;;  %v5322_v28 = vrot.slane %v5320_v32, 2 }
 0x432   : > { %6716 = vmatprep.subr.msk.bf16.mxu1 %vm3678_vm12, %v4588_v24  ;;  %6386 = vmatpush3.bf16.xpose.msra.mxu0 %v4807_v16  ;;  %v5325_v24 = vrot.slane %v5323_v58, 3 }
 0x433   : > { %6722 = vmatprep.subr.msk.bf16.mxu0 %vm3678_vm12, %v8667_v57  ;;  %v4843_v57 = vsel %vm3678_vm12, %v9396_v10, 0  ;;  %v5100_v10 = vsel %vm1667_vm4, %v5097_v1, %v5099_v22  ;;  %v9410_v1 = vld [vmem:[#allocation18_spill] sm:$0xff] }
 0x439   : > { %6371 = vmatpush3.bf16.xpose.msra.mxu1 %v4632_v42 }
 0x43a   : > { %6388 = vmatpush3.bf16.xpose.msra.mxu0 %v4810_v27  ;;  %6573 = vmatprep.subr.bf16.mxu1 %v9366_v21  ;;  %v5259_v27 = vrot.slane %v5257_v26, 2  ;;  %v5349_v26 = vrot.slane %v5347_v5, 2 }
 0x43b   : > { %6723 = vmatprep.subr.msk.bf16.mxu0 %vm3678_vm12, %v8680_v53  ;;  %v9070_v53 = vld [vmem:[#allocation2 + $0x14] sm:$0xf] }
 0x43c   : > { %v6016_v55 = vcombine.low %v4932_v6, %v9070_v53 }
 0x43e   : > { %v5064_v13 = vrot.slane %v6016_v55, 2  ;;  %v5249_v16 = vshrl.u32 %v6016_v55, 16  ;;  %v5252_v49 = vshll.u32 %v6016_v55, 16  ;;  %v9409_v55 = vld [vmem:[#allocation17_spill] sm:$0xff] }
 0x440   : > { %6373 = vmatmul.mubr.msk.bf16.vlgmr.msra.gmra.mrb[52].mxu1 %vm3678_vm12, %v8973_v50  ;;  %v9399_v50 = vld [vmem:[#allocation9_spill] sm:$0xff]  ;;  %v5066_v34 = vsel %vm1667_vm4, %v5064_v13, %v5065_v44  ;;  %v5254_v6 = vrot.slane %v5252_v49, 3  ;;  %v5087_v13 = vrot.slane %v9410_v1, 2 }
 0x441   : > { %6574 = vmatpush3.bf16.xpose.msra.mxu1 %v4843_v57  ;;  %6577 = vmatprep.mubr.msk.bf16.mxu1 %vm6980_vm1, %v9366_v21  ;;  %v5081_v48 = vrot.slane %v9399_v50, 2  ;;  %v5329_v30 = vshrl.u32 %v9399_v50, 16  ;;  %v5332_v25 = vshll.u32 %v9399_v50, 16  ;;  %v5105_v17 = vsel %vm3678_vm12, %v5066_v34, 0 }
 0x442   : > { %6390 = vmatpush3.bf16.xpose.msra.mxu0 %v4813_v19  ;;  %6575 = vmatprep.subr.bf16.mxu1 %v9366_v21  ;;  %v5262_v57 = vrot.slane %v5260_v33, 3  ;;  %v5341_v19 = vshll.u32 %v9405_v38, 16  ;;  %v5086_v50 = vsel %vm1667_vm4, %v5083_v63, %v5085_v11  ;;  %v5268_v34 = vrot.slane %v5266_v7, 2 }
 0x443   : > { %6724 = vmatprep.subr.msk.bf16.mxu0 %vm3678_vm12, %v9398_v54  ;;  %v5082_v31 = vsel %vm1667_vm4, %v5079_v15, %v5081_v48  ;;  %v5084_v45 = vsel %vm1667_vm4, %v5081_v48, %v5083_v63  ;;  %v5331_v2 = vrot.slane %v5329_v30, 2  ;;  %v5334_v39 = vrot.slane %v5332_v25, 3 }
 0x444   : > { %v9072_v23 = vpop.f32.mrb[36].mxu0  ;;  %v5108_v54 = vsel %vm3678_vm12, %v5068_v40, 0  ;;  %v9126_v48 = vor.u32 %v5325_v24, %v5322_v28  ;;  %v5263_v46 = vor.u32 %v5262_v57, %v5259_v27  ;;  %v5343_v44 = vrot.slane %v5341_v19, 3  ;;  %v9154_v40 = vld [vmem:[%s9323_s5 + $0x1c] sm:$0xf]  ;;  %v9412_v19 = vld [vmem:[#allocation20_spill] sm:$0xff] }
 0x445   : > { %v6539_v20 = vpop.f32.mrb[37].mxu0  ;;  %v5335_v42 = vor.u32 %v5334_v39, %v5331_v2  ;;  %v5275_v2 = vshrl.u32 %v9409_v55, 16  ;;  %v5278_v33 = vshll.u32 %v9409_v55, 16  ;;  %v5359_v27 = vshll.u32 %v9410_v1, 16 }
 0x446   : > { %v3814_v56 = vpop.f32.mrb[38].mxu0  ;;  %v5251_v20 = vrot.slane %v5249_v16, 2  ;;  %v5091_v7 = vrot.slane %v8835_v0, 2 }
 0x447   : > { %v6540_v52 = vpop.f32.mrb[39].mxu0  ;;  %v5156_v56 = vsel %vm3678_vm12, %v5100_v10, 0  ;;  %v5277_v24 = vrot.slane %v5275_v2, 2  ;;  %v5280_v49 = vrot.slane %v5278_v33, 3 }
 0x448   : > { %v5069_v52 = vrot.slane %v9409_v55, 2  ;;  %v5255_v38 = vor.u32 %v5254_v6, %v5251_v20 }
 0x449   : > { %6576 = vmatpush3.bf16.xpose.msra.mxu1 %v4846_v62  ;;  %v5269_v62 = vshll.u32 %v9407_v4, 16  ;;  %v5350_v4 = vshll.u32 %v9408_v35, 16  ;;  %v5089_v35 = vrot.slane %v8815_v37, 2 }
 0x44a   : > { %6725 = vmatprep.subr.msk.bf16.mxu1 %vm3678_vm12, %v5082_v31  ;;  %6392 = vmatpush3.bf16.xpose.msra.mxu0 %v4816_v12  ;;  %v5336_v31 = vsel %vm2162_vm6, %v9126_v48, %v5335_v42  ;;  %v5340_v12 = vrot.slane %v5338_v8, 2  ;;  %v5070_v63 = vsel %vm1667_vm4, %v5067_v18, %v5069_v52  ;;  %v5264_v25 = vsel %vm2162_vm6, %v5255_v38, %v5263_v46  ;;  %v9411_v18 = vld [vmem:[#allocation19_spill] sm:$0xff] }
 0x44b   : > { %6581 = vmatprep.subr.bf16.mxu0 %v9366_v21  ;;  %v5271_v30 = vrot.slane %v5269_v62, 3  ;;  %v5422_v32 = vsel %vm3678_vm12, %v5264_v25, 0  ;;  %v5071_v58 = vrot.slane %v9411_v18, 2  ;;  %v5352_v22 = vrot.slane %v5350_v4, 3 }
 0x44c   : > { %v5344_v60 = vor.u32 %v5343_v44, %v5340_v12  ;;  %v5090_v57 = vsel %vm1667_vm4, %v5087_v13, %v5089_v35  ;;  %v5287_v20 = vshll.u32 %v9411_v18, 16  ;;  %v5365_v12 = vshrl.u32 %v8815_v37, 16 }
 0x44d   : > { %v5353_v16 = vor.u32 %v5352_v22, %v5349_v26  ;;  %v5377_v26 = vshll.u32 %v8835_v0, 16 }
 0x44e   : > { %v5345_v39 = vsel %vm2162_vm6, %v5335_v42, %v5344_v60  ;;  %v5356_v42 = vshrl.u32 %v9410_v1, 16 }
 0x44f   : > { %v5354_v6 = vsel %vm2162_vm6, %v5344_v60, %v5353_v16  ;;  %v5367_v60 = vrot.slane %v5365_v12, 2  ;;  %v5404_v12 = vshll.u32 %v9404_v41, 16 }
 0x450   : > { %6578 = vmatmul.mubr.msk.bf16.vlgmr.msra.gmra.mrb[56].mxu1 %vm3678_vm12, %v9004_v9  ;;  %v5358_v55 = vrot.slane %v5356_v42, 2 }
 0x451   : > { %6399 = vmatpush3.bf16.xpose.msra.mxu1 %v5105_v17  ;;  %6394 = vmatmul.mubr.msk.bf16.vlgmr.msra.gmra.mrb[56].mxu0 %vm3678_vm12, %v9004_v9  ;;  %v9117_v9 = vld [vmem:[%s9323_s5 + $0x18] sm:$0xf]  ;;  %v5111_v17 = vsel %vm3678_vm12, %v5070_v63, 0  ;;  %v5092_v63 = vsel %vm1667_vm4, %v5089_v35, %v5091_v7 }
 0x452   : > { %6726 = vmatprep.subr.msk.bf16.mxu1 %vm3678_vm12, %v5084_v45  ;;  %6582 = vmatpush3.bf16.xpose.msra.mxu0 %v5153_v61  ;;  %v5088_v45 = vsel %vm1667_vm4, %v5085_v11, %v5087_v13  ;;  %v5272_v61 = vor.u32 %v5271_v30, %v5268_v34  ;;  %v5072_v11 = vsel %vm1667_vm4, %v5069_v52, %v5071_v58  ;;  %v5361_v52 = vrot.slane %v5359_v27, 3 }
 0x453   : > { %6583 = vmatprep.subr.bf16.mxu0 %v9366_v21  ;;  %6585 = vmatprep.mubr.msk.bf16.mxu0 %vm6980_vm1, %v9366_v21  ;;  %v5114_v10 = vsel %vm3678_vm12, %v5072_v11, 0  ;;  %v5368_v13 = vshll.u32 %v8815_v37, 16  ;;  %v5075_v30 = vrot.slane %v8837_v29, 2  ;;  %v5296_v37 = vshll.u32 %v9412_v19, 16 }
 0x454   : > { %6414 = vmatprep.mubr.msk.bf16.mxu1 %vm3678_vm12, %v9117_v9  ;;  %v5273_v28 = vsel %vm2162_vm6, %v5263_v46, %v5272_v61  ;;  %v5289_v46 = vrot.slane %v5287_v20, 3  ;;  %v5362_v1 = vor.u32 %v5361_v52, %v5358_v55  ;;  %v5379_v27 = vrot.slane %v5377_v26, 3 }
 0x455   : > { %v5425_v8 = vsel %vm3678_vm12, %v5273_v28, 0  ;;  %v5370_v4 = vrot.slane %v5368_v13, 3  ;;  %v5298_v11 = vrot.slane %v5296_v37, 3  ;;  %v5386_v55 = vshll.u32 %v8843_v59, 16 }
 0x456   : > { %v5363_v5 = vsel %vm2162_vm6, %v5353_v16, %v5362_v1  ;;  %v5314_v13 = vshll.u32 %v8845_v47, 16 }
 0x457   : > { %v5371_v33 = vor.u32 %v5370_v4, %v5367_v60 }
 0x458   : > { %v5316_v26 = vrot.slane %v5314_v13, 3  ;;  %v6041_v13 = vld [vmem:[%s9323_s5 + $0x20] sm:$0xf] }
 0x459   : > { %6401 = vmatpush3.bf16.xpose.msra.mxu1 %v5108_v54  ;;  %v5073_v54 = vrot.slane %v9412_v19, 2 }
 0x45a   : > { %6727 = vmatprep.subr.msk.bf16.mxu1 %vm3678_vm12, %v5086_v50  ;;  %6584 = vmatpush3.bf16.xpose.msra.mxu0 %v5156_v56  ;;  %v5284_v50 = vshrl.u32 %v9411_v18, 16  ;;  %v5281_v56 = vor.u32 %v5280_v49, %v5277_v24  ;;  %v5093_v18 = vrot.slane %v8843_v59, 2  ;;  %v5077_v49 = vrot.slane %v8845_v47, 2 }
 0x45b   : > { %6733 = vmatprep.subr.msk.bf16.mxu0 %vm3678_vm12, %v5336_v31  ;;  %v5074_v62 = vsel %vm1667_vm4, %v5071_v58, %v5073_v54 }
 0x45c   : > { %v5286_v31 = vrot.slane %v5284_v50, 2  ;;  %v5282_v44 = vsel %vm2162_vm6, %v5272_v61, %v5281_v56  ;;  %v5117_v38 = vsel %vm3678_vm12, %v5074_v62, 0  ;;  %v5076_v61 = vsel %vm1667_vm4, %v5073_v54, %v5075_v30 }
 0x45d   : > { %v5428_v34 = vsel %vm3678_vm12, %v5282_v44, 0  ;;  %v5120_v28 = vsel %vm3678_vm12, %v5076_v61, 0  ;;  %v5094_v24 = vsel %vm1667_vm4, %v5091_v7, %v5093_v18  ;;  %v5096_v52 = vsel %vm1667_vm4, %v5093_v18, %v5095_v36 }
 0x45e   : > { %v5290_v25 = vor.u32 %v5289_v46, %v5286_v31  ;;  %v5401_v7 = vshrl.u32 %v9404_v41, 16  ;;  %v5388_v44 = vrot.slane %v5386_v55, 3  ;;  %v5406_v18 = vrot.slane %v5404_v12, 3 }
 0x45f   : > { %v9414_v12 = vrot.slane %v9403_v14, 3 }
 0x460   : > { %v5291_v2 = vsel %vm2162_vm6, %v5281_v56, %v5290_v25  ;;  %v5383_v56 = vshrl.u32 %v8843_v59, 16  ;;  %v5403_v60 = vrot.slane %v5401_v7, 2 }
 0x461   : > { %6403 = vmatpush3.bf16.xpose.msra.mxu1 %v5111_v17  ;;  %6586 = vmatmul.mubr.msk.bf16.vlgmr.msra.gmra.mrb[60].mxu0 %vm3678_vm12, %v9117_v9  ;;  %v5293_v17 = vshrl.u32 %v9412_v19, 16  ;;  %v5431_v16 = vsel %vm3678_vm12, %v5291_v2, 0  ;;  %v5078_v19 = vsel %vm1667_vm4, %v5075_v30, %v5077_v49 }
 0x462   : > { %6728 = vmatprep.subr.msk.bf16.mxu1 %vm3678_vm12, %v5088_v45  ;;  %6420 = vmatpush3.bf16.xpose.msra.mxu0 %v5422_v32  ;;  %v5385_v59 = vrot.slane %v5383_v56, 2  ;;  %v5559_v56 = vld [vmem:[#allocation2 + $0x10] sm:$0x8] }
 0x463   : > { %6734 = vmatprep.subr.msk.bf16.mxu0 %vm3678_vm12, %v5345_v39  ;;  %6435 = vmatprep.mubr.msk.bf16.mxu0 %vm3678_vm12, %v9154_v40  ;;  %v5374_v39 = vshrl.u32 %v8835_v0, 16  ;;  %v5295_v35 = vrot.slane %v5293_v17, 2  ;;  %v5372_v0 = vsel %vm2162_vm6, %v5362_v1, %v5371_v33  ;;  %v5311_v1 = vshrl.u32 %v8845_v47, 16 }
 0x464   : > { %v5080_v47 = vsel %vm1667_vm4, %v5077_v49, %v5079_v15  ;;  %v5407_v15 = vor.u32 %v5406_v18, %v5403_v60 }
 0x465   : > { %v5376_v42 = vrot.slane %v5374_v39, 2  ;;  %v5313_v39 = vrot.slane %v5311_v1, 2  ;;  %v9416_v1 = vld [vmem:[#allocation21_spill] sm:$0xff] }
 0x467   : > { %v5380_v54 = vor.u32 %v5379_v27, %v5376_v42 }
 0x469   : > { %6405 = vmatpush3.bf16.xpose.msra.mxu1 %v5114_v10  ;;  %v5302_v10 = vshrl.u32 %v8837_v29, 16  ;;  %v5381_v31 = vsel %vm2162_vm6, %v5371_v33, %v5380_v54 }
 0x46a   : > { %6729 = vmatprep.subr.msk.bf16.mxu1 %vm3678_vm12, %v5090_v57  ;;  %6422 = vmatpush3.bf16.xpose.msra.mxu0 %v5425_v8  ;;  %v5305_v57 = vshll.u32 %v8837_v29, 16  ;;  %v5299_v8 = vor.u32 %v5298_v11, %v5295_v35  ;;  %v5123_v29 = vsel %vm3678_vm12, %v5078_v19, 0  ;;  %v5126_v35 = vsel %vm3678_vm12, %v5080_v47, 0  ;;  %v9424_v47 = vld [vmem:[#allocation29_spill] sm:$0xff] }
 0x46b   : > { %6735 = vmatprep.subr.msk.bf16.mxu0 %vm3678_vm12, %v5354_v6  ;;  %v5304_v50 = vrot.slane %v5302_v10, 2 }
 0x46c   : > { %v5307_v20 = vrot.slane %v5305_v57, 3  ;;  %v5300_v6 = vsel %vm2162_vm6, %v5290_v25, %v5299_v8 }
 0x46d   : > { %v5434_v62 = vsel %vm3678_vm12, %v5300_v6, 0 }
 0x46e   : > { %v5308_v46 = vor.u32 %v5307_v20, %v5304_v50 }
 0x470   : > { %v5309_v37 = vsel %vm2162_vm6, %v5299_v8, %v5308_v46 }
 0x471   : > { %6407 = vmatpush3.bf16.xpose.msra.mxu1 %v5117_v38  ;;  %v5392_v38 = vshrl.u32 %v9406_v3, 16  ;;  %v5437_v43 = vsel %vm3678_vm12, %v5309_v37, 0 }
 0x472   : > { %6730 = vmatprep.subr.msk.bf16.mxu1 %vm3678_vm12, %v5092_v63  ;;  %6424 = vmatpush3.bf16.xpose.msra.mxu0 %v5428_v34  ;;  %v5395_v63 = vshll.u32 %v9406_v3, 16 }
 0x473   : > { %v3770_v45 = vpop.f32.mrb[36].mxu1  ;;  %6736 = vmatprep.subr.msk.bf16.mxu0 %vm3678_vm12, %v5363_v5 }
 0x474   : > { %v3772_v32 = vpop.f32.mrb[37].mxu1 }
 0x475   : > { %v3774_v58 = vpop.f32.mrb[38].mxu1 }
 0x476   : > { %v3775_v22 = vpop.f32.mrb[39].mxu1  ;;  %v9226_v58 = vld [vmem:[#allocation2 + $0xa0] ss:$0 sps:$4 sm:$0x77]  }
 0x477   : > { %v5394_v22 = vrot.slane %v5392_v38, 2  ;;  %v5410_v11 = vshrl.u32 %v9226_v58, 16  ;;  %v5600_v14 = vrot.slane %v9226_v58, 3  ;;  %v9418_v38 = vld [vmem:[#allocation23_spill] sm:$0xff] }
 0x479   : > { %6409 = vmatpush3.bf16.xpose.msra.mxu1 %v5120_v28  ;;  %v5413_v28 = vshll.u32 %v9226_v58, 16  ;;  %v5412_v42 = vrot.slane %v5410_v11, 2 }
 0x47a   : > { %6731 = vmatprep.subr.msk.bf16.mxu1 %vm3678_vm12, %v5094_v24  ;;  %6426 = vmatpush3.bf16.xpose.msra.mxu0 %v5431_v16  ;;  %v5317_v24 = vor.u32 %v5316_v26, %v5313_v39  ;;  %v9425_v39 = vld [vmem:[#allocation30_spill] sm:$0xff] }
 0x47b   : > { %6737 = vmatprep.subr.msk.bf16.mxu0 %vm3678_vm12, %v5372_v0  ;;  %v5415_v27 = vrot.slane %v5413_v28, 3  ;;  %v5621_v26 = vsel %vm3678_vm12, %v9425_v39, 0 }
 0x47c   : > { %v5318_v10 = vsel %vm2162_vm6, %v5308_v46, %v5317_v24  ;;  %v5327_v6 = vsel %vm2162_vm6, %v5317_v24, %v9126_v48 }
 0x47d   : > { %v5440_v0 = vsel %vm3678_vm12, %v5318_v10, 0  ;;  %v5416_v8 = vor.u32 %v5415_v27, %v5412_v42  ;;  %v9429_v27 = vld [vmem:[#allocation34_spill] sm:$0xff] }
 0x47e   : > { %v5627_v10 = vsel %vm3678_vm12, %v9429_v27, 0 }
 0x481   : > { %6411 = vmatpush3.bf16.xpose.msra.mxu1 %v5123_v29  ;;  %v6042_v29 = vcombine.low %v5559_v56, %v9070_v53 }
 0x482   : > { %6732 = vmatprep.subr.msk.bf16.mxu1 %vm3678_vm12, %v5096_v52  ;;  %6428 = vmatpush3.bf16.xpose.msra.mxu0 %v5434_v62  ;;  %v5443_v62 = vsel %vm3678_vm12, %v5327_v6, 0 }
 0x483   : > { %v3931_v36 = vpop.f32.mrb[40].mxu1  ;;  %6738 = vmatprep.subr.msk.bf16.mxu0 %vm3678_vm12, %v5381_v31  ;;  %v9413_v31 = vld [vmem:[#allocation16_spill] sm:$0xff]  ;;  %v5565_v46 = vrot.slane %v6042_v29, 3 }
 0x484   : > { %v3932_v34 = vadd.f32 %v3931_v36, %v9072_v23  ;;  %v6547_v30 = vpop.f32.mrb[41].mxu1  ;;  %v3890_v25 = vpop.f32.mrb[40].mxu0  ;;  %v5389_v23 = vor.u32 %v5388_v44, %v5385_v59  ;;  %v9415_v59 = vld [vmem:[#allocation22_spill] sm:$0xff] }
 0x485   : > { %v3934_v5 = vpop.f32.mrb[42].mxu1  ;;  %v9220_v4 = vadd.f32 %v3890_v25, %v3770_v45  ;;  %v3892_v17 = vpop.f32.mrb[41].mxu0  ;;  %v5397_v45 = vrot.slane %v5395_v63, 3  ;;  %v5567_v48 = vsel %vm2480_vm7, %v5565_v46, %v9414_v12  ;;  %v5654_v44 = vsel %vm3678_vm12, %v9415_v59, 0  ;;  %v9420_v25 = vld [vmem:[#allocation25_spill] sm:$0xff] }
 0x486   : > { %v6548_v61 = vpop.f32.mrb[43].mxu1  ;;  %v9228_v3 = vadd.f32 %v3892_v17, %v3772_v32  ;;  %v3894_v2 = vpop.f32.mrb[42].mxu0  ;;  %v5390_v32 = vsel %vm2162_vm6, %v5380_v54, %v5389_v23  ;;  %v5606_v53 = vsel %vm3678_vm12, %v5567_v48, 0  ;;  %v5609_v63 = vsel %vm3678_vm12, %v9418_v38, 0  ;;  %v9422_v5 = vld [vmem:[#allocation27_spill] sm:$0xff]  ;;  %v9423_v17 = vld [vmem:[#allocation28_spill] sm:$0xff] }
 0x487   : > { %v3895_v33 = vpop.f32.mrb[43].mxu0  ;;  %v5398_v16 = vor.u32 %v5397_v45, %v5394_v22  ;;  %v9426_v22 = vld [vmem:[#allocation31_spill] sm:$0xff]  ;;  %v9427_v45 = vld [vmem:[#allocation32_spill] sm:$0xff] }
 0x488   : > { %v5624_v33 = vsel %vm3678_vm12, %v9427_v45, 0 }
 0x489   : > { %6413 = vmatpush3.bf16.xpose.msra.mxu1 %v5126_v35  ;;  %v5408_v49 = vsel %vm2162_vm6, %v5398_v16, %v5407_v15  ;;  %v5399_v19 = vsel %vm2162_vm6, %v5389_v23, %v5398_v16  ;;  %v9428_v35 = vld [vmem:[#allocation33_spill] sm:$0xff] }
 0x48a   : > { %6430 = vmatpush3.bf16.xpose.msra.mxu0 %v5437_v43  ;;  %6589 = vmatprep.subr.bf16.mxu1 %v9366_v21  ;;  %v5470_v57 = vsel %vm3678_vm12, %v5408_v49, 0 }
 0x48b   : > { %6739 = vmatprep.subr.msk.bf16.mxu0 %vm3678_vm12, %v5390_v32 }
 0x490   : > { %6415 = vmatmul.mubr.msk.bf16.vlgmr.msra.gmra.mrb[60].mxu1 %vm3678_vm12, %v9117_v9  ;;  %v5417_v9 = vsel %vm2162_vm6, %v5407_v15, %v5416_v8 }
 0x491   : > { %6590 = vmatpush3.bf16.xpose.msra.mxu1 %v5470_v57  ;;  %6593 = vmatprep.mubr.msk.bf16.mxu1 %vm6980_vm1, %v9366_v21  ;;  %v5473_v7 = vsel %vm3678_vm12, %v5417_v9, 0 }
 0x492   : > { %6432 = vmatpush3.bf16.xpose.msra.mxu0 %v5440_v0  ;;  %6591 = vmatprep.subr.bf16.mxu1 %v9366_v21 }
 0x493   : > { %6740 = vmatprep.subr.msk.bf16.mxu0 %vm3678_vm12, %v5399_v19 }
 0x494   : > { %v4112_v54 = vpop.f32.mrb[44].mxu0 }
 0x495   : > { %v4120_v50 = vadd.f32 %v4112_v54, %v3932_v34  ;;  %v6555_v20 = vpop.f32.mrb[45].mxu0 }
 0x496   : > { %v4115_v55 = vpop.f32.mrb[46].mxu0 }
 0x497   : > { %v6556_v52 = vpop.f32.mrb[47].mxu0 }
 0x499   : > { %6592 = vmatpush3.bf16.xpose.msra.mxu1 %v5473_v7 }
 0x49a   : > { %6741 = vmatprep.subr.msk.bf16.mxu1 %vm3678_vm12, %v9413_v31  ;;  %6434 = vmatpush3.bf16.xpose.msra.mxu0 %v5443_v62 }
 0x49b   : > { %6597 = vmatprep.subr.bf16.mxu0 %v9366_v21 }
 0x4a0   : > { %6594 = vmatmul.mubr.msk.bf16.vlgmr.msra.gmra.mrb[64].mxu1 %vm3678_vm12, %v9154_v40 }
 0x4a1   : > { %6441 = vmatpush3.bf16.xpose.msra.mxu1 %v5606_v53  ;;  %6436 = vmatmul.mubr.msk.bf16.vlgmr.msra.gmra.mrb[64].mxu0 %vm3678_vm12, %v9154_v40  ;;  %v9417_v40 = vrot.slane %v9404_v41, 3  ;;  %v9421_v41 = vld [vmem:[#allocation26_spill] sm:$0xff] }
 0x4a2   : > { %6742 = vmatprep.subr.msk.bf16.mxu1 %vm3678_vm12, %v9416_v1  ;;  %6598 = vmatpush3.bf16.xpose.msra.mxu0 %v5654_v44  ;;  %v5615_v60 = vsel %vm3678_vm12, %v9421_v41, 0 }
 0x4a3   : > { %6599 = vmatprep.subr.bf16.mxu0 %v9366_v21  ;;  %6601 = vmatprep.mubr.msk.bf16.mxu0 %vm6980_vm1, %v9366_v21  ;;  %v5601_v36 = vsel %vm2480_vm7, %v9417_v40, %v5600_v14  ;;  %v9419_v21 = vld [vmem:[#allocation24_spill] sm:$0xff] }
 0x4a4   : > { %6456 = vmatprep.mubr.msk.bf16.mxu1 %vm3678_vm12, %v6041_v13  ;;  %v5657_v34 = vsel %vm3678_vm12, %v5601_v36, 0  ;;  %v5612_v30 = vsel %vm3678_vm12, %v9419_v21, 0 }
 0x4a9   : > { %6443 = vmatpush3.bf16.xpose.msra.mxu1 %v5609_v63 }
 0x4aa   : > { %6743 = vmatprep.subr.msk.bf16.mxu1 %vm3678_vm12, %v8851_v51  ;;  %6600 = vmatpush3.bf16.xpose.msra.mxu0 %v5657_v34  ;;  %v5618_v51 = vsel %vm3678_vm12, %v9423_v17, 0 }
 0x4b1   : > { %6445 = vmatpush3.bf16.xpose.msra.mxu1 %v5612_v30  ;;  %6602 = vmatmul.mubr.msk.bf16.vlgmr.msra.gmra.mrb[68].mxu0 %vm3678_vm12, %v6041_v13 }
 0x4b2   : > { %6744 = vmatprep.subr.msk.bf16.mxu1 %vm3678_vm12, %v9420_v25 }
 0x4b9   : > { %6447 = vmatpush3.bf16.xpose.msra.mxu1 %v5615_v60 }
 0x4ba   : > { %6745 = vmatprep.subr.msk.bf16.mxu1 %vm3678_vm12, %v9422_v5 }
 0x4c1   : > { %6449 = vmatpush3.bf16.xpose.msra.mxu1 %v5618_v51 }
 0x4c2   : > { %6746 = vmatprep.subr.msk.bf16.mxu1 %vm3678_vm12, %v9424_v47 }
 0x4c3   : > { %v4071_v37 = vpop.f32.mrb[44].mxu1 }
 0x4c4   : > { %v4118_v18 = vadd.f32 %v4071_v37, %v9220_v4  ;;  %v4073_v58 = vpop.f32.mrb[45].mxu1 }
 0x4c5   : > { %v4119_v61 = vadd.f32 %v4073_v58, %v9228_v3  ;;  %v4075_v23 = vpop.f32.mrb[46].mxu1 }
 0x4c6   : > { %v4076_v2 = vpop.f32.mrb[47].mxu1 }
 0x4c7   : > { %v5747_v2 = vpop.permute.xlu0 %5746 }
 0x4c9   : > { %6451 = vmatpush3.bf16.xpose.msra.mxu1 %v5621_v26 }
 0x4ca   : > { %6747 = vmatprep.subr.msk.bf16.mxu1 %vm3678_vm12, %v9426_v22 }
 0x4d1   : > { %6453 = vmatpush3.bf16.xpose.msra.mxu1 %v5624_v33 }
 0x4d2   : > { %6748 = vmatprep.subr.msk.bf16.mxu1 %vm3678_vm12, %v9428_v35 }
 0x4d3   : > { %v4422_v4 = vpop.f32.mrb[48].mxu1 }
 0x4d4   : > { %v4430_v43 = vadd.f32 %v4422_v4, %v4120_v50  ;;  %v6563_v15 = vpop.f32.mrb[49].mxu1  ;;  %v4381_v3 = vpop.f32.mrb[48].mxu0 }
 0x4d5   : > { %v4425_v11 = vpop.f32.mrb[50].mxu1  ;;  %v4428_v28 = vadd.f32 %v4381_v3, %v4118_v18  ;;  %v4383_v32 = vpop.f32.mrb[49].mxu0 }
 0x4d6   : > { %v6564_v24 = vpop.f32.mrb[51].mxu1  ;;  %v4429_v16 = vadd.f32 %v4383_v32, %v4119_v61  ;;  %v4385_v49 = vpop.f32.mrb[50].mxu0 }
 0x4d7   : > { %v4386_v42 = vpop.f32.mrb[51].mxu0  ;;  %v5759_v4 = vpop.permute.xlu0 %5758 }
 0x4d9   : > { %6455 = vmatpush3.bf16.xpose.msra.mxu1 %v5627_v10 }
 0x4e0   : > { %6457 = vmatmul.mubr.msk.bf16.vlgmr.msra.gmra.mrb[68].mxu1 %vm3678_vm12, %v6041_v13 }
 0x4e4   : > { %v4739_v57 = vpop.f32.mrb[52].mxu0 }
 0x4e5   : > { %v4747_v0 = vadd.f32 %v4739_v57, %v4430_v43  ;;  %v6571_v8 = vpop.f32.mrb[53].mxu0 }
 0x4e6   : > { %v4742_v19 = vpop.f32.mrb[54].mxu0 }
 0x4e7   : > { %v6572_v54 = vpop.f32.mrb[55].mxu0 }
 0x513   : > { %v4698_v50 = vpop.f32.mrb[52].mxu1 }
 0x514   : > { %v4745_v9 = vadd.f32 %v4698_v50, %v4428_v28  ;;  %v4700_v20 = vpop.f32.mrb[53].mxu1 }
 0x515   : > { %v4746_v6 = vadd.f32 %v4700_v20, %v4429_v16  ;;  %v4702_v56 = vpop.f32.mrb[54].mxu1 }
 0x516   : > { %v4703_v55 = vpop.f32.mrb[55].mxu1 }
 0x523   : > { %v4923_v29 = vpop.f32.mrb[56].mxu1 }
 0x524   : > { %v4931_v52 = vadd.f32 %v4923_v29, %v4747_v0  ;;  %v6579_v7 = vpop.f32.mrb[57].mxu1  ;;  %v4882_v62 = vpop.f32.mrb[56].mxu0 }
 0x525   : > { %v4926_v31 = vpop.f32.mrb[58].mxu1  ;;  %v4929_v46 = vadd.f32 %v4882_v62, %v4745_v9  ;;  %v4884_v12 = vpop.f32.mrb[57].mxu0 }
 0x526   : > { %v6580_v48 = vpop.f32.mrb[59].mxu1  ;;  %v4930_v53 = vadd.f32 %v4884_v12, %v4746_v6  ;;  %v4886_v59 = vpop.f32.mrb[58].mxu0 }
 0x527   : > { %v4887_v44 = vpop.f32.mrb[59].mxu0 }
 0x534   : > { %v5233_v1 = vpop.f32.mrb[60].mxu0 }
 0x535   : > { %v5241_v14 = vadd.f32 %v5233_v1, %v4931_v52  ;;  %v6587_v13 = vpop.f32.mrb[61].mxu0 }
 0x536   : > { %v5236_v40 = vpop.f32.mrb[62].mxu0 }
 0x537   : > { %v6588_v36 = vpop.f32.mrb[63].mxu0 }
 0x563   : > { %v5192_v38 = vpop.f32.mrb[60].mxu1 }
 0x564   : > { %v5239_v63 = vadd.f32 %v5192_v38, %v4929_v46  ;;  %v5194_v34 = vpop.f32.mrb[61].mxu1 }
 0x565   : > { %v5240_v21 = vadd.f32 %v5194_v34, %v4930_v53  ;;  %v5196_v30 = vpop.f32.mrb[62].mxu1 }
 0x566   : > { %v5197_v25 = vpop.f32.mrb[63].mxu1 }
 0x573   : > { %v5550_v41 = vpop.f32.mrb[64].mxu1 }
 0x574   : > { %v5558_v60 = vadd.f32 %v5550_v41, %v5241_v14  ;;  %v6595_v5 = vpop.f32.mrb[65].mxu1  ;;  %v5509_v17 = vpop.f32.mrb[64].mxu0 }
 0x575   : > { %v5553_v51 = vpop.f32.mrb[66].mxu1  ;;  %v5556_v47 = vadd.f32 %v5509_v17, %v5239_v63  ;;  %v5511_v37 = vpop.f32.mrb[65].mxu0 }
 0x576   : > { %v6596_v18 = vpop.f32.mrb[67].mxu1  ;;  %v5557_v58 = vadd.f32 %v5511_v37, %v5240_v21  ;;  %v5513_v61 = vpop.f32.mrb[66].mxu0 }
 0x577   : > { %v5514_v23 = vpop.f32.mrb[67].mxu0 }
 0x584   : > { %v5734_v39 = vpop.f32.mrb[68].mxu0 }
 0x585   : > { %v5742_v26 = vadd.f32 %v5734_v39, %v5558_v60  ;;  %v6603_v22 = vpop.f32.mrb[69].mxu0 }
 0x586   : > { %v5737_v45 = vpop.f32.mrb[70].mxu0 }
 0x587   : > { %v5751_v33 = vadd.f32 %v5747_v2, %v5742_v26  ;;  %v6604_v35 = vpop.f32.mrb[71].mxu0 }
 0x589   : > { %vm5754_vm1 = vcmp.gt.f32.partialorder %v5751_v33, 0.0  ;;  %v5763_v43 = vmul.f32 %v5759_v4, %v5751_v33 }
 0x58b   : > { %v5766_v15 = vsel %vm5754_vm1, %v5751_v33, %v5763_v43 }
 0x58c   : > { %5770 = vst.msk [vmem:[%s305_s22 + $0x10] sm:$0xff] %vm5769_vm2, %v5766_v15 }
 0x5b3   : > { %v5693_v3 = vpop.f32.mrb[68].mxu1 }
 0x5b4   : > { %v5740_v11 = vadd.f32 %v5693_v3, %v5556_v47  ;;  %v5695_v28 = vpop.f32.mrb[69].mxu1 }
 0x5b5   : > { %v5741_v32 = vadd.f32 %v5695_v28, %v5557_v58  ;;  %v5697_v24 = vpop.f32.mrb[70].mxu1 }
 0x5b6   : > { %v5749_v16 = vadd.f32 %v5747_v2, %v5740_v11  ;;  %v5698_v49 = vpop.f32.mrb[71].mxu1 }
 0x5b7   : > { %v5750_v42 = vadd.f32 %v5747_v2, %v5741_v32 }
 0x5b8   : > { %vm5752_vm3 = vcmp.gt.f32.partialorder %v5749_v16, 0.0  ;;  %v5761_v27 = vmul.f32 %v5759_v4, %v5749_v16 }
 0x5b9   : > { %vm5753_vm4 = vcmp.gt.f32.partialorder %v5750_v42, 0.0  ;;  %v5762_v10 = vmul.f32 %v5759_v4, %v5750_v42 }
 0x5ba   : > { %v5764_v57 = vsel %vm5752_vm3, %v5749_v16, %v5761_v27 }
 0x5bb   : > { %5767 = vst [vmem:[%s305_s22] sm:$0xff] %v5764_v57  ;;  %v5765_v0 = vsel %vm5753_vm4, %v5750_v42, %v5762_v10 }
 0x5bc   : > { %5768 = vst [vmem:[%s305_s22 + $0x8] sm:$0xff] %v5765_v0 }
 0x5bd PF: > { %s18_s27 = sadd.s32 1, %s6977_s27  }
 0x5be   : > { %p15_p4 = scmp.ge.s32.totalorder %s18_s27, 4  }
 0x5c0   :  { %17 = sbr.rel (!%p15_p4) target bundleno = 1 (0x1), region = 98 }

</bundles_post_ra>
